<compile_context>
chip_gen: v5e
topology: v5e:2x2
jax: 0.10.0
libtpu: 0.0.40
codegen_flags: <defaults>
</compile_context>

<pallas_src>
import functools
import math

import jax
import jax.numpy as jnp
from jax import lax
from jax.experimental import pallas as pl
from jax.experimental.pallas import tpu as pltpu

LANE = 128
SUBLANE = 8
MATMUL_DTYPE = jnp.bfloat16          # set to jnp.float32 for bit-faithful matmuls
_FULL_UNROLL_MAX_STEPS = 64          # fully unroll the time scan up to this length


# ----------------------------- in-kernel math ------------------------------

def _softplus(z):
    # stable log(1 + exp(z)), max + log form (1 exp + 1 log)
    return jnp.maximum(z, 0.0) + jnp.log(1.0 + jnp.exp(-jnp.abs(z)))


def _log_g(z):
    # torch.where(x >= 0, log(relu(x) + 0.5), -softplus(-x))
    return jnp.where(z >= 0.0, jnp.log(jnp.maximum(z, 0.0) + 0.5), -_softplus(-z))


def _logaddexp(a, b):
    # 1 exp + 1 log on the serial scan critical path (vs 2 exp + 1 log naive)
    return jnp.maximum(a, b) + jnp.log(1.0 + jnp.exp(-jnp.abs(a - b)))


# ------------------------------ fused kernel -------------------------------

def _fused_lm_kernel(x_ref, wg_ref, bg_ref, wfc_ref, bfc_ref, o_ref,
                     act_ref, lf_ref, *, num_layers):
    # x_ref:   (T, Bt, Hp)     time-major embedded tokens (f32, lane-padded)
    # wg_ref:  (L, Hp, 3*Hp)   fused [f | i | h] gate weights (MATMUL_DTYPE)
    # bg_ref:  (L, 1, 3*Hp)    fused gate biases (f32)
    # wfc_ref: (Hp, Vp) MATMUL_DTYPE, bfc_ref: (1, Vp) f32
    # o_ref:   (Tmax, Bt, Vp)  padded logits, Tmax = T + num_layers
    # act_ref: (Tmax, Bt, Hp)  activations / in-place log-space scan buffer
    # lf_ref:  (Tmax, Bt, Hp)  log forget gates
    T, Bt, Hp = x_ref.shape
    Tmax = act_ref.shape[0]
    log_half = jnp.float32(math.log(0.5))     # log_g(0), the h_0 = zeros row

    t_in = T
    for layer in range(num_layers):
        w = wg_ref[layer]                     # (Hp, 3*Hp)
        bias = bg_ref[layer]                  # (1, 3*Hp)

        # --- fused 3-gate projection: ONE MXU matmul over all t_in*Bt rows ---
        if layer == 0:
            xb = x_ref[...].reshape(T * Bt, Hp)
        else:
            xb = act_ref[0:t_in].reshape(t_in * Bt, Hp)   # previous layer's h
        g = jnp.dot(xb.astype(w.dtype), w,
                    preferred_element_type=jnp.float32) + bias
        f_gate = g[:, 0:Hp]
        i_gate = g[:, Hp:2 * Hp]
        h_tilde = g[:, 2 * Hp:3 * Hp]
        diff = _softplus(-f_gate) - _softplus(-i_gate)
        sp_diff = _softplus(diff)
        log_f = -sp_diff                                  # log f_t
        log_v = (diff - sp_diff) + _log_g(h_tilde)        # log i_t + log g(h~_t)

        lf_ref[0:t_in] = log_f.reshape(t_in, Bt, Hp)
        act_ref[1:t_in + 1] = log_v.reshape(t_in, Bt, Hp)  # scan runs in place
        act_ref[0] = jnp.full((Bt, Hp), log_half, jnp.float32)   # log_h_0 row

        # --- stable log-space scan over time on whole (Bt, Hp) tiles ---
        #   log_h_t = logaddexp(log_f_t + log_h_{t-1}, log_v_t)
        def body(t, carry):                               # carry = log_h_t  (Bt, Hp)
            c = _logaddexp(lf_ref[t] + carry, act_ref[t + 1])
            act_ref[t + 1] = c
            return c

        unroll = True if t_in <= _FULL_UNROLL_MAX_STEPS else 8
        carry0 = jnp.full((Bt, Hp), log_half, jnp.float32)
        lax.fori_loop(0, t_in, body, carry0, unroll=unroll)

        # single lane-dense bulk exp over all (t_in + 1) rows of this layer
        t_out = t_in + 1
        act_ref[0:t_out] = jnp.exp(act_ref[0:t_out])
        t_in = t_out

    # --- fused vocab projection: ONE matmul over all Tmax*Bt rows ---
    wfc = wfc_ref[...]
    h_all = act_ref[...].reshape(Tmax * Bt, Hp)
    logits = jnp.dot(h_all.astype(wfc.dtype), wfc,
                     preferred_element_type=jnp.float32) + bfc_ref[...]
    o_ref[...] = logits.reshape(Tmax, Bt, o_ref.shape[2])


def fused_language_model(x_emb, w_gates, b_gates, w_fc, b_fc, *, batch_tile=None):
    T, Bp, Ep = x_emb.shape                  # time-major, batch padded to 8
    L, Ep2, H3 = w_gates.shape
    Hp = H3 // 3
    assert Ep2 == Ep and Hp == Ep, "requires embed_size == hidden_size"
    Vp = w_fc.shape[1]
    Tmax = T + L

    if batch_tile is None:
        # Largest block = best on single-TC v5e/v6e.
        # TODO(synk): on v7x pass batch_tile = Bp // 2 (once Bp >= 16) so the
        # "parallel" grid axis shards the batch across both TensorCores.
        batch_tile = Bp
    assert batch_tile % SUBLANE == 0 and Bp % batch_tile == 0
    nb = Bp // batch_tile

    kernel = functools.partial(_fused_lm_kernel, num_layers=L)

    w_itemsize = jnp.dtype(w_gates.dtype).itemsize
    block_bytes = (T * batch_tile * Ep * 4
                   + L * Ep * H3 * w_itemsize + L * H3 * 4
                   + Hp * Vp * w_itemsize + Vp * 4
                   + Tmax * batch_tile * Vp * 4)
    scratch_bytes = 2 * Tmax * batch_tile * Hp * 4
    vmem_limit = int(min(64 << 20,
                         max(32 << 20, 2 * block_bytes + scratch_bytes + (4 << 20))))

    return pl.pallas_call(
        kernel,
        out_shape=jax.ShapeDtypeStruct((Tmax, Bp, Vp), jnp.float32),
        grid_spec=pltpu.PrefetchScalarGridSpec(
            num_scalar_prefetch=0,
            grid=(nb,),
            in_specs=[
                pl.BlockSpec((T, batch_tile, Ep), lambda i: (0, i, 0)),
                # TODO(synk): for large L*Hp, stream per-layer weights (extra
                # "arbitrary" grid axis / manual double-buffer) instead of
                # keeping all layers resident.
                pl.BlockSpec((L, Ep, H3), lambda i: (0, 0, 0)),
                pl.BlockSpec((L, 1, H3), lambda i: (0, 0, 0)),
                # TODO(synk): for large vocab, tile the FC over the Vp axis.
                pl.BlockSpec((Hp, Vp), lambda i: (0, 0)),
                pl.BlockSpec((1, Vp), lambda i: (0, 0)),
            ],
            out_specs=pl.BlockSpec((Tmax, batch_tile, Vp), lambda i: (0, i, 0)),
            scratch_shapes=[
                pltpu.VMEM((Tmax, batch_tile, Hp), jnp.float32),  # act / log_h
                pltpu.VMEM((Tmax, batch_tile, Hp), jnp.float32),  # log forget gates
            ],
        ),
        compiler_params=pltpu.CompilerParams(
            dimension_semantics=("parallel",),
            vmem_limit_bytes=vmem_limit),
    )(x_emb, w_gates, b_gates, w_fc, b_fc)


# ----------------------------- model + params ------------------------------

def _round_up(n, m):
    return ((n + m - 1) // m) * m


def init_params(key, vocab_size, embed_size, hidden_size, num_layers):
    assert embed_size == hidden_size, (
        "LanguageModel semantics require embed_size == hidden_size "
        "(shared h_0 across layers)")
    params = {}
    k_emb, key = jax.random.split(key)
    params["embedding"] = jax.random.normal(
        k_emb, (vocab_size, embed_size), jnp.float32)

    layers = []
    bound_in = 1.0 / (embed_size ** 0.5)
    for _ in range(num_layers):
        layer = {}
        for name in ("f", "i", "h"):
            kw, kb, key = jax.random.split(key, 3)
            # stored as [in_features, out_features] so kernels compute x @ W + b
            layer["w_" + name] = jax.random.uniform(
                kw, (embed_size, hidden_size), jnp.float32, -bound_in, bound_in)
            layer["b_" + name] = jax.random.uniform(
                kb, (1, hidden_size), jnp.float32, -bound_in, bound_in)
        layers.append(layer)
    params["layers"] = layers

    kw, kb, key = jax.random.split(key, 3)
    bound_h = 1.0 / (hidden_size ** 0.5)
    params["w_fc"] = jax.random.uniform(
        kw, (hidden_size, vocab_size), jnp.float32, -bound_h, bound_h)
    params["b_fc"] = jax.random.uniform(
        kb, (1, vocab_size), jnp.float32, -bound_h, bound_h)
    return params


def pack_params(params, lane=LANE, matmul_dtype=MATMUL_DTYPE):
    """Fuse + zero-pad parameters to lane-dense shapes; weights -> matmul dtype.

    Zero padding is exact: padded input columns always hit zero weight rows and
    padded output columns are sliced off in the wrapper.
    """
    emb = params["embedding"]
    V, E = emb.shape
    H = params["w_fc"].shape[0]
    assert E == H
    Ep = _round_up(E, lane)
    Hp = Ep
    Vp = _round_up(V, lane)

    def pad2(a, rows, cols):
        return jnp.pad(a, ((0, rows - a.shape[0]), (0, cols - a.shape[1])))

    emb_p = jnp.pad(emb, ((0, 0), (0, Ep - E)))

    wg, bg = [], []
    for layer in params["layers"]:
        wg.append(jnp.concatenate([pad2(layer["w_f"], Ep, Hp),
                                   pad2(layer["w_i"], Ep, Hp),
                                   pad2(layer["w_h"], Ep, Hp)], axis=1))
        bg.append(jnp.concatenate([pad2(layer["b_f"], 1, Hp),
                                   pad2(layer["b_i"], 1, Hp),
                                   pad2(layer["b_h"], 1, Hp)], axis=1))
    w_gates = jnp.stack(wg).astype(matmul_dtype)    # (L, Ep, 3*Hp)
    b_gates = jnp.stack(bg)                         # (L, 1, 3*Hp)  f32
    w_fc_p = pad2(params["w_fc"], Hp, Vp).astype(matmul_dtype)   # (Hp, Vp)
    b_fc_p = pad2(params["b_fc"], 1, Vp)                         # (1, Vp) f32
    return emb_p, w_gates, b_gates, w_fc_p, b_fc_p, V


def language_model_forward(params, tokens, *, batch_tile=None):
    # tokens: (B, T) int32
    emb_p, w_gates, b_gates, w_fc_p, b_fc_p, vocab = pack_params(params)
    x = emb_p[tokens]                                # embedding gather (XLA glue)
    B, T, Ep = x.shape
    Bp = _round_up(B, SUBLANE)                       # pad batch to full sublanes
    x = jnp.transpose(x, (1, 0, 2))                  # time-major (T, B, Ep)
    if Bp != B:
        x = jnp.pad(x, ((0, 0), (0, Bp - B), (0, 0)))
    logits_p = fused_language_model(x, w_gates, b_gates, w_fc_p, b_fc_p,
                                    batch_tile=batch_tile)      # (Tmax, Bp, Vp)
    # drop batch + vocab padding, back to batch-major
    return jnp.transpose(logits_p[:, :B, :vocab], (1, 0, 2))


# --------------------------- pure-JAX reference ----------------------------

def _ref_matmul(x, w, b):
    # mirrors the kernel's matmul precision: MATMUL_DTYPE operands, f32 accumulate
    y = jnp.dot(x.astype(MATMUL_DTYPE).reshape(-1, x.shape[-1]),
                w.astype(MATMUL_DTYPE), preferred_element_type=jnp.float32)
    return y.reshape(x.shape[:-1] + (w.shape[1],)) + b


def reference_forward(params, tokens):
    x = params["embedding"][tokens]                  # (B, T, E)
    B, _, E = x.shape
    for layer in params["layers"]:
        f = _ref_matmul(x, layer["w_f"], layer["b_f"])
        i = _ref_matmul(x, layer["w_i"], layer["b_i"])
        hh = _ref_matmul(x, layer["w_h"], layer["b_h"])
        diff = _softplus(-f) - _softplus(-i)
        log_f = -_softplus(diff)
        log_i = diff - _softplus(diff)               # == -softplus(-diff)
        log_h0 = _log_g(jnp.zeros((B, 1, E), jnp.float32))
        log_v = log_i + _log_g(hh)

        def step(carry, inp):
            lf_t, lv_t = inp
            nxt = jnp.logaddexp(lf_t + carry, lv_t)
            return nxt, nxt

        _, hs = lax.scan(step, log_h0[:, 0, :],
                         (jnp.moveaxis(log_f, 1, 0), jnp.moveaxis(log_v, 1, 0)))
        log_h = jnp.concatenate([log_h0, jnp.moveaxis(hs, 0, 1)], axis=1)
        x = jnp.exp(log_h)                           # keeps the h_0 step
    return _ref_matmul(x, params["w_fc"], params["b_fc"])


# ---------------------------------- main -----------------------------------

if __name__ == "__main__":
    vocab_size = 32
    embed_size = 32
    hidden_size = 32     # must equal embed_size (see faithfulness notes)
    num_layers = 2
    B, T = 2, 8

    key = jax.random.PRNGKey(0)
    k_tok, k_par = jax.random.split(key)
    tokens = jax.random.randint(k_tok, (B, T), 0, vocab_size, dtype=jnp.int32)
    params = init_params(k_par, vocab_size, embed_size, hidden_size, num_layers)

    out = jax.jit(language_model_forward)(params, tokens)
    out = jax.block_until_ready(out)

    # each MinLSTM layer keeps the prepended h_0 step -> time grows by 1/layer
    assert out.shape == (B, T + num_layers, vocab_size), out.shape
    assert bool(jnp.all(jnp.isfinite(out)))

    ref = reference_forward(params, tokens)
    assert bool(jnp.allclose(out, ref, atol=2e-3, rtol=2e-3)), (
        float(jnp.max(jnp.abs(out - ref))))

    print("KERNEL_OK")
</pallas_src>

<mosaic_0001>
module attributes {stable_mosaic.version = 11 : i64} {
  func.func @_fused_lm_kernel(%arg0: i32, %arg1: memref<8x8x128xf32, #tpu.memory_space<vmem>>, %arg2: memref<2x128x384xbf16, #tpu.memory_space<vmem>>, %arg3: memref<2x1x384xf32, #tpu.memory_space<vmem>>, %arg4: memref<128x128xbf16, #tpu.memory_space<vmem>>, %arg5: memref<1x128xf32, #tpu.memory_space<vmem>>, %arg6: memref<10x8x128xf32, #tpu.memory_space<vmem>>, %arg7: memref<10x8x128xf32, #tpu.memory_space<vmem>>, %arg8: memref<10x8x128xf32, #tpu.memory_space<vmem>>) attributes {dimension_semantics = [#tpu.dimension_semantics<parallel>], iteration_bounds = array<i64: 1>, scalar_prefetch = 0 : i64, scratch_operands = 2 : i64, tpu.core_type = #tpu.core_type<tc>, window_params = [{transform_indices = @transform_0, window_bounds = array<i64: 8, 8, 128>}, {pipeline_mode = #tpu.pipeline_mode<synchronous>, transform_indices = @transform_1, window_bounds = array<i64: 2, 128, 384>}, {pipeline_mode = #tpu.pipeline_mode<synchronous>, transform_indices = @transform_2, window_bounds = array<i64: 2, 1, 384>}, {pipeline_mode = #tpu.pipeline_mode<synchronous>, transform_indices = @transform_3, window_bounds = array<i64: 128, 128>}, {pipeline_mode = #tpu.pipeline_mode<synchronous>, transform_indices = @transform_4, window_bounds = array<i64: 1, 128>}, {transform_indices = @transform_5, window_bounds = array<i64: 10, 8, 128>}]} {
    %c0 = arith.constant 0 : index
    %c0_0 = arith.constant 0 : index
    %c0_1 = arith.constant 0 : index
    %0 = vector.load %arg2[%c0, %c0_0, %c0_1] : memref<2x128x384xbf16, #tpu.memory_space<vmem>>, vector<1x128x384xbf16>
    %1 = vector.shape_cast %0 : vector<1x128x384xbf16> to vector<128x384xbf16>
    %c0_2 = arith.constant 0 : index
    %c0_3 = arith.constant 0 : index
    %c0_4 = arith.constant 0 : index
    %2 = vector.load %arg3[%c0_2, %c0_3, %c0_4] : memref<2x1x384xf32, #tpu.memory_space<vmem>>, vector<1x1x384xf32>
    %3 = vector.shape_cast %2 : vector<1x1x384xf32> to vector<1x384xf32>
    %c0_5 = arith.constant 0 : index
    %c0_6 = arith.constant 0 : index
    %c0_7 = arith.constant 0 : index
    %4 = vector.load %arg1[%c0_5, %c0_6, %c0_7] : memref<8x8x128xf32, #tpu.memory_space<vmem>>, vector<8x8x128xf32>
    %5 = vector.shape_cast %4 : vector<8x8x128xf32> to vector<64x128xf32>
    %6 = arith.truncf %5 : vector<64x128xf32> to vector<64x128xbf16>
    %cst = arith.constant dense<0.000000e+00> : vector<64x384xf32>
    %7 = tpu.matmul %6, %1, %cst {dimension_numbers = #tpu.dot_dimension_numbers<[1], [0], [0], [1], [0, 0, 1, 1], [], []>} : vector<64x128xbf16>, vector<128x384xbf16>, vector<64x384xf32> -> vector<64x384xf32>
    %8 = vector.broadcast %3 : vector<1x384xf32> to vector<64x384xf32>
    %9 = arith.addf %7, %8 : vector<64x384xf32>
    %10 = vector.extract_strided_slice %9 {offsets = [0, 0], sizes = [64, 128], strides = [1, 1]} : vector<64x384xf32> to vector<64x128xf32>
    %11 = vector.extract_strided_slice %9 {offsets = [0, 128], sizes = [64, 128], strides = [1, 1]} : vector<64x384xf32> to vector<64x128xf32>
    %12 = vector.extract_strided_slice %9 {offsets = [0, 256], sizes = [64, 128], strides = [1, 1]} : vector<64x384xf32> to vector<64x128xf32>
    %cst_8 = arith.constant 0.000000e+00 : f32
    %13 = vector.broadcast %cst_8 : f32 to vector<64x128xf32>
    %14 = arith.subf %13, %10 : vector<64x128xf32>
    %cst_9 = arith.constant 0.000000e+00 : f32
    %15 = vector.broadcast %cst_9 : f32 to vector<64x128xf32>
    %16 = arith.maximumf %14, %15 : vector<64x128xf32>
    %17 = math.absf %14 : vector<64x128xf32>
    %cst_10 = arith.constant 0.000000e+00 : f32
    %18 = vector.broadcast %cst_10 : f32 to vector<64x128xf32>
    %19 = arith.subf %18, %17 : vector<64x128xf32>
    %20 = math.exp %19 : vector<64x128xf32>
    %cst_11 = arith.constant 1.000000e+00 : f32
    %21 = vector.broadcast %cst_11 : f32 to vector<64x128xf32>
    %22 = arith.addf %21, %20 : vector<64x128xf32>
    %23 = math.log %22 : vector<64x128xf32>
    %24 = arith.addf %16, %23 : vector<64x128xf32>
    %cst_12 = arith.constant 0.000000e+00 : f32
    %25 = vector.broadcast %cst_12 : f32 to vector<64x128xf32>
    %26 = arith.subf %25, %11 : vector<64x128xf32>
    %cst_13 = arith.constant 0.000000e+00 : f32
    %27 = vector.broadcast %cst_13 : f32 to vector<64x128xf32>
    %28 = arith.maximumf %26, %27 : vector<64x128xf32>
    %29 = math.absf %26 : vector<64x128xf32>
    %cst_14 = arith.constant 0.000000e+00 : f32
    %30 = vector.broadcast %cst_14 : f32 to vector<64x128xf32>
    %31 = arith.subf %30, %29 : vector<64x128xf32>
    %32 = math.exp %31 : vector<64x128xf32>
    %cst_15 = arith.constant 1.000000e+00 : f32
    %33 = vector.broadcast %cst_15 : f32 to vector<64x128xf32>
    %34 = arith.addf %33, %32 : vector<64x128xf32>
    %35 = math.log %34 : vector<64x128xf32>
    %36 = arith.addf %28, %35 : vector<64x128xf32>
    %37 = arith.subf %24, %36 : vector<64x128xf32>
    %cst_16 = arith.constant 0.000000e+00 : f32
    %38 = vector.broadcast %cst_16 : f32 to vector<64x128xf32>
    %39 = arith.maximumf %37, %38 : vector<64x128xf32>
    %40 = math.absf %37 : vector<64x128xf32>
    %cst_17 = arith.constant 0.000000e+00 : f32
    %41 = vector.broadcast %cst_17 : f32 to vector<64x128xf32>
    %42 = arith.subf %41, %40 : vector<64x128xf32>
    %43 = math.exp %42 : vector<64x128xf32>
    %cst_18 = arith.constant 1.000000e+00 : f32
    %44 = vector.broadcast %cst_18 : f32 to vector<64x128xf32>
    %45 = arith.addf %44, %43 : vector<64x128xf32>
    %46 = math.log %45 : vector<64x128xf32>
    %47 = arith.addf %39, %46 : vector<64x128xf32>
    %cst_19 = arith.constant 0.000000e+00 : f32
    %48 = vector.broadcast %cst_19 : f32 to vector<64x128xf32>
    %49 = arith.subf %48, %47 : vector<64x128xf32>
    %50 = arith.subf %37, %47 : vector<64x128xf32>
    %cst_20 = arith.constant 0.000000e+00 : f32
    %51 = vector.broadcast %cst_20 : f32 to vector<64x128xf32>
    %52 = arith.cmpf oge, %12, %51 : vector<64x128xf32>
    %cst_21 = arith.constant 0.000000e+00 : f32
    %53 = vector.broadcast %cst_21 : f32 to vector<64x128xf32>
    %54 = arith.maximumf %12, %53 : vector<64x128xf32>
    %cst_22 = arith.constant 5.000000e-01 : f32
    %55 = vector.broadcast %cst_22 : f32 to vector<64x128xf32>
    %56 = arith.addf %54, %55 : vector<64x128xf32>
    %57 = math.log %56 : vector<64x128xf32>
    %cst_23 = arith.constant 0.000000e+00 : f32
    %58 = vector.broadcast %cst_23 : f32 to vector<64x128xf32>
    %59 = arith.subf %58, %12 : vector<64x128xf32>
    %cst_24 = arith.constant 0.000000e+00 : f32
    %60 = vector.broadcast %cst_24 : f32 to vector<64x128xf32>
    %61 = arith.maximumf %59, %60 : vector<64x128xf32>
    %62 = math.absf %59 : vector<64x128xf32>
    %cst_25 = arith.constant 0.000000e+00 : f32
    %63 = vector.broadcast %cst_25 : f32 to vector<64x128xf32>
    %64 = arith.subf %63, %62 : vector<64x128xf32>
    %65 = math.exp %64 : vector<64x128xf32>
    %cst_26 = arith.constant 1.000000e+00 : f32
    %66 = vector.broadcast %cst_26 : f32 to vector<64x128xf32>
    %67 = arith.addf %66, %65 : vector<64x128xf32>
    %68 = math.log %67 : vector<64x128xf32>
    %69 = arith.addf %61, %68 : vector<64x128xf32>
    %cst_27 = arith.constant 0.000000e+00 : f32
    %70 = vector.broadcast %cst_27 : f32 to vector<64x128xf32>
    %71 = arith.subf %70, %69 : vector<64x128xf32>
    %72 = arith.select %52, %57, %71 : vector<64x128xi1>, vector<64x128xf32>
    %73 = arith.addf %50, %72 : vector<64x128xf32>
    %74 = vector.shape_cast %49 : vector<64x128xf32> to vector<8x8x128xf32>
    %c0_28 = arith.constant 0 : index
    %c0_29 = arith.constant 0 : index
    %c0_30 = arith.constant 0 : index
    %75 = vector.load %arg8[%c0_28, %c0_29, %c0_30] : memref<10x8x128xf32, #tpu.memory_space<vmem>>, vector<8x8x128xf32>
    tpu.vector_store %arg8[%c0_28, %c0_29, %c0_30], %74 {strides = array<i32>} : memref<10x8x128xf32, #tpu.memory_space<vmem>>, vector<8x8x128xf32>,
    %76 = vector.shape_cast %73 : vector<64x128xf32> to vector<8x8x128xf32>
    %c1 = arith.constant 1 : index
    %c0_31 = arith.constant 0 : index
    %c0_32 = arith.constant 0 : index
    %77 = vector.load %arg7[%c1, %c0_31, %c0_32] : memref<10x8x128xf32, #tpu.memory_space<vmem>>, vector<8x8x128xf32>
    tpu.vector_store %arg7[%c1, %c0_31, %c0_32], %76 {strides = array<i32>} : memref<10x8x128xf32, #tpu.memory_space<vmem>>, vector<8x8x128xf32>,
    %cst_33 = arith.constant -0.693147182 : f32
    %78 = vector.broadcast %cst_33 : f32 to vector<8x128xf32>
    %c0_34 = arith.constant 0 : index
    %c0_35 = arith.constant 0 : index
    %c0_36 = arith.constant 0 : index
    %79 = vector.load %arg7[%c0_34, %c0_35, %c0_36] : memref<10x8x128xf32, #tpu.memory_space<vmem>>, vector<1x8x128xf32>
    %80 = vector.shape_cast %79 : vector<1x8x128xf32> to vector<8x128xf32>
    %81 = vector.shape_cast %78 : vector<8x128xf32> to vector<1x8x128xf32>
    tpu.vector_store %arg7[%c0_34, %c0_35, %c0_36], %81 {strides = array<i32>} : memref<10x8x128xf32, #tpu.memory_space<vmem>>, vector<1x8x128xf32>,
    %cst_37 = arith.constant -0.693147182 : f32
    %82 = vector.broadcast %cst_37 : f32 to vector<8x128xf32>
    %c0_i32 = arith.constant 0 : i32
    %83 = arith.index_cast %c0_i32 : i32 to index
    %c0_38 = arith.constant 0 : index
    %c0_39 = arith.constant 0 : index
    %84 = vector.load %arg8[%83, %c0_38, %c0_39] : memref<10x8x128xf32, #tpu.memory_space<vmem>>, vector<1x8x128xf32>
    %85 = vector.shape_cast %84 : vector<1x8x128xf32> to vector<8x128xf32>
    %86 = arith.addf %85, %82 : vector<8x128xf32>
    %c1_i32 = arith.constant 1 : i32
    %87 = arith.addi %c0_i32, %c1_i32 : i32
    %88 = arith.index_cast %87 : i32 to index
    %c0_40 = arith.constant 0 : index
    %c0_41 = arith.constant 0 : index
    %89 = vector.load %arg7[%88, %c0_40, %c0_41] : memref<10x8x128xf32, #tpu.memory_space<vmem>>, vector<1x8x128xf32>
    %90 = vector.shape_cast %89 : vector<1x8x128xf32> to vector<8x128xf32>
    %91 = arith.maximumf %86, %90 : vector<8x128xf32>
    %92 = arith.subf %86, %90 : vector<8x128xf32>
    %93 = math.absf %92 : vector<8x128xf32>
    %cst_42 = arith.constant 0.000000e+00 : f32
    %94 = vector.broadcast %cst_42 : f32 to vector<8x128xf32>
    %95 = arith.subf %94, %93 : vector<8x128xf32>
    %96 = math.exp %95 : vector<8x128xf32>
    %cst_43 = arith.constant 1.000000e+00 : f32
    %97 = vector.broadcast %cst_43 : f32 to vector<8x128xf32>
    %98 = arith.addf %97, %96 : vector<8x128xf32>
    %99 = math.log %98 : vector<8x128xf32>
    %100 = arith.addf %91, %99 : vector<8x128xf32>
    %c1_i32_44 = arith.constant 1 : i32
    %101 = arith.addi %c0_i32, %c1_i32_44 : i32
    %102 = arith.index_cast %101 : i32 to index
    %c0_45 = arith.constant 0 : index
    %c0_46 = arith.constant 0 : index
    %103 = vector.load %arg7[%102, %c0_45, %c0_46] : memref<10x8x128xf32, #tpu.memory_space<vmem>>, vector<1x8x128xf32>
    %104 = vector.shape_cast %103 : vector<1x8x128xf32> to vector<8x128xf32>
    %105 = vector.shape_cast %100 : vector<8x128xf32> to vector<1x8x128xf32>
    tpu.vector_store %arg7[%102, %c0_45, %c0_46], %105 {strides = array<i32>} : memref<10x8x128xf32, #tpu.memory_space<vmem>>, vector<1x8x128xf32>,
    %c1_i32_47 = arith.constant 1 : i32
    %106 = arith.index_cast %c1_i32_47 : i32 to index
    %c0_48 = arith.constant 0 : index
    %c0_49 = arith.constant 0 : index
    %107 = vector.load %arg8[%106, %c0_48, %c0_49] : memref<10x8x128xf32, #tpu.memory_space<vmem>>, vector<1x8x128xf32>
    %108 = vector.shape_cast %107 : vector<1x8x128xf32> to vector<8x128xf32>
    %109 = arith.addf %108, %100 : vector<8x128xf32>
    %c1_i32_50 = arith.constant 1 : i32
    %110 = arith.addi %c1_i32_47, %c1_i32_50 : i32
    %111 = arith.index_cast %110 : i32 to index
    %c0_51 = arith.constant 0 : index
    %c0_52 = arith.constant 0 : index
    %112 = vector.load %arg7[%111, %c0_51, %c0_52] : memref<10x8x128xf32, #tpu.memory_space<vmem>>, vector<1x8x128xf32>
    %113 = vector.shape_cast %112 : vector<1x8x128xf32> to vector<8x128xf32>
    %114 = arith.maximumf %109, %113 : vector<8x128xf32>
    %115 = arith.subf %109, %113 : vector<8x128xf32>
    %116 = math.absf %115 : vector<8x128xf32>
    %cst_53 = arith.constant 0.000000e+00 : f32
    %117 = vector.broadcast %cst_53 : f32 to vector<8x128xf32>
    %118 = arith.subf %117, %116 : vector<8x128xf32>
    %119 = math.exp %118 : vector<8x128xf32>
    %cst_54 = arith.constant 1.000000e+00 : f32
    %120 = vector.broadcast %cst_54 : f32 to vector<8x128xf32>
    %121 = arith.addf %120, %119 : vector<8x128xf32>
    %122 = math.log %121 : vector<8x128xf32>
    %123 = arith.addf %114, %122 : vector<8x128xf32>
    %c1_i32_55 = arith.constant 1 : i32
    %124 = arith.addi %c1_i32_47, %c1_i32_55 : i32
    %125 = arith.index_cast %124 : i32 to index
    %c0_56 = arith.constant 0 : index
    %c0_57 = arith.constant 0 : index
    %126 = vector.load %arg7[%125, %c0_56, %c0_57] : memref<10x8x128xf32, #tpu.memory_space<vmem>>, vector<1x8x128xf32>
    %127 = vector.shape_cast %126 : vector<1x8x128xf32> to vector<8x128xf32>
    %128 = vector.shape_cast %123 : vector<8x128xf32> to vector<1x8x128xf32>
    tpu.vector_store %arg7[%125, %c0_56, %c0_57], %128 {strides = array<i32>} : memref<10x8x128xf32, #tpu.memory_space<vmem>>, vector<1x8x128xf32>,
    %c2_i32 = arith.constant 2 : i32
    %129 = arith.index_cast %c2_i32 : i32 to index
    %c0_58 = arith.constant 0 : index
    %c0_59 = arith.constant 0 : index
    %130 = vector.load %arg8[%129, %c0_58, %c0_59] : memref<10x8x128xf32, #tpu.memory_space<vmem>>, vector<1x8x128xf32>
    %131 = vector.shape_cast %130 : vector<1x8x128xf32> to vector<8x128xf32>
    %132 = arith.addf %131, %123 : vector<8x128xf32>
    %c1_i32_60 = arith.constant 1 : i32
    %133 = arith.addi %c2_i32, %c1_i32_60 : i32
    %134 = arith.index_cast %133 : i32 to index
    %c0_61 = arith.constant 0 : index
    %c0_62 = arith.constant 0 : index
    %135 = vector.load %arg7[%134, %c0_61, %c0_62] : memref<10x8x128xf32, #tpu.memory_space<vmem>>, vector<1x8x128xf32>
    %136 = vector.shape_cast %135 : vector<1x8x128xf32> to vector<8x128xf32>
    %137 = arith.maximumf %132, %136 : vector<8x128xf32>
    %138 = arith.subf %132, %136 : vector<8x128xf32>
    %139 = math.absf %138 : vector<8x128xf32>
    %cst_63 = arith.constant 0.000000e+00 : f32
    %140 = vector.broadcast %cst_63 : f32 to vector<8x128xf32>
    %141 = arith.subf %140, %139 : vector<8x128xf32>
    %142 = math.exp %141 : vector<8x128xf32>
    %cst_64 = arith.constant 1.000000e+00 : f32
    %143 = vector.broadcast %cst_64 : f32 to vector<8x128xf32>
    %144 = arith.addf %143, %142 : vector<8x128xf32>
    %145 = math.log %144 : vector<8x128xf32>
    %146 = arith.addf %137, %145 : vector<8x128xf32>
    %c1_i32_65 = arith.constant 1 : i32
    %147 = arith.addi %c2_i32, %c1_i32_65 : i32
    %148 = arith.index_cast %147 : i32 to index
    %c0_66 = arith.constant 0 : index
    %c0_67 = arith.constant 0 : index
    %149 = vector.load %arg7[%148, %c0_66, %c0_67] : memref<10x8x128xf32, #tpu.memory_space<vmem>>, vector<1x8x128xf32>
    %150 = vector.shape_cast %149 : vector<1x8x128xf32> to vector<8x128xf32>
    %151 = vector.shape_cast %146 : vector<8x128xf32> to vector<1x8x128xf32>
    tpu.vector_store %arg7[%148, %c0_66, %c0_67], %151 {strides = array<i32>} : memref<10x8x128xf32, #tpu.memory_space<vmem>>, vector<1x8x128xf32>,
    %c3_i32 = arith.constant 3 : i32
    %152 = arith.index_cast %c3_i32 : i32 to index
    %c0_68 = arith.constant 0 : index
    %c0_69 = arith.constant 0 : index
    %153 = vector.load %arg8[%152, %c0_68, %c0_69] : memref<10x8x128xf32, #tpu.memory_space<vmem>>, vector<1x8x128xf32>
    %154 = vector.shape_cast %153 : vector<1x8x128xf32> to vector<8x128xf32>
    %155 = arith.addf %154, %146 : vector<8x128xf32>
    %c1_i32_70 = arith.constant 1 : i32
    %156 = arith.addi %c3_i32, %c1_i32_70 : i32
    %157 = arith.index_cast %156 : i32 to index
    %c0_71 = arith.constant 0 : index
    %c0_72 = arith.constant 0 : index
    %158 = vector.load %arg7[%157, %c0_71, %c0_72] : memref<10x8x128xf32, #tpu.memory_space<vmem>>, vector<1x8x128xf32>
    %159 = vector.shape_cast %158 : vector<1x8x128xf32> to vector<8x128xf32>
    %160 = arith.maximumf %155, %159 : vector<8x128xf32>
    %161 = arith.subf %155, %159 : vector<8x128xf32>
    %162 = math.absf %161 : vector<8x128xf32>
    %cst_73 = arith.constant 0.000000e+00 : f32
    %163 = vector.broadcast %cst_73 : f32 to vector<8x128xf32>
    %164 = arith.subf %163, %162 : vector<8x128xf32>
    %165 = math.exp %164 : vector<8x128xf32>
    %cst_74 = arith.constant 1.000000e+00 : f32
    %166 = vector.broadcast %cst_74 : f32 to vector<8x128xf32>
    %167 = arith.addf %166, %165 : vector<8x128xf32>
    %168 = math.log %167 : vector<8x128xf32>
    %169 = arith.addf %160, %168 : vector<8x128xf32>
    %c1_i32_75 = arith.constant 1 : i32
    %170 = arith.addi %c3_i32, %c1_i32_75 : i32
    %171 = arith.index_cast %170 : i32 to index
    %c0_76 = arith.constant 0 : index
    %c0_77 = arith.constant 0 : index
    %172 = vector.load %arg7[%171, %c0_76, %c0_77] : memref<10x8x128xf32, #tpu.memory_space<vmem>>, vector<1x8x128xf32>
    %173 = vector.shape_cast %172 : vector<1x8x128xf32> to vector<8x128xf32>
    %174 = vector.shape_cast %169 : vector<8x128xf32> to vector<1x8x128xf32>
    tpu.vector_store %arg7[%171, %c0_76, %c0_77], %174 {strides = array<i32>} : memref<10x8x128xf32, #tpu.memory_space<vmem>>, vector<1x8x128xf32>,
    %c4_i32 = arith.constant 4 : i32
    %175 = arith.index_cast %c4_i32 : i32 to index
    %c0_78 = arith.constant 0 : index
    %c0_79 = arith.constant 0 : index
    %176 = vector.load %arg8[%175, %c0_78, %c0_79] : memref<10x8x128xf32, #tpu.memory_space<vmem>>, vector<1x8x128xf32>
    %177 = vector.shape_cast %176 : vector<1x8x128xf32> to vector<8x128xf32>
    %178 = arith.addf %177, %169 : vector<8x128xf32>
    %c1_i32_80 = arith.constant 1 : i32
    %179 = arith.addi %c4_i32, %c1_i32_80 : i32
    %180 = arith.index_cast %179 : i32 to index
    %c0_81 = arith.constant 0 : index
    %c0_82 = arith.constant 0 : index
    %181 = vector.load %arg7[%180, %c0_81, %c0_82] : memref<10x8x128xf32, #tpu.memory_space<vmem>>, vector<1x8x128xf32>
    %182 = vector.shape_cast %181 : vector<1x8x128xf32> to vector<8x128xf32>
    %183 = arith.maximumf %178, %182 : vector<8x128xf32>
    %184 = arith.subf %178, %182 : vector<8x128xf32>
    %185 = math.absf %184 : vector<8x128xf32>
    %cst_83 = arith.constant 0.000000e+00 : f32
    %186 = vector.broadcast %cst_83 : f32 to vector<8x128xf32>
    %187 = arith.subf %186, %185 : vector<8x128xf32>
    %188 = math.exp %187 : vector<8x128xf32>
    %cst_84 = arith.constant 1.000000e+00 : f32
    %189 = vector.broadcast %cst_84 : f32 to vector<8x128xf32>
    %190 = arith.addf %189, %188 : vector<8x128xf32>
    %191 = math.log %190 : vector<8x128xf32>
    %192 = arith.addf %183, %191 : vector<8x128xf32>
    %c1_i32_85 = arith.constant 1 : i32
    %193 = arith.addi %c4_i32, %c1_i32_85 : i32
    %194 = arith.index_cast %193 : i32 to index
    %c0_86 = arith.constant 0 : index
    %c0_87 = arith.constant 0 : index
    %195 = vector.load %arg7[%194, %c0_86, %c0_87] : memref<10x8x128xf32, #tpu.memory_space<vmem>>, vector<1x8x128xf32>
    %196 = vector.shape_cast %195 : vector<1x8x128xf32> to vector<8x128xf32>
    %197 = vector.shape_cast %192 : vector<8x128xf32> to vector<1x8x128xf32>
    tpu.vector_store %arg7[%194, %c0_86, %c0_87], %197 {strides = array<i32>} : memref<10x8x128xf32, #tpu.memory_space<vmem>>, vector<1x8x128xf32>,
    %c5_i32 = arith.constant 5 : i32
    %198 = arith.index_cast %c5_i32 : i32 to index
    %c0_88 = arith.constant 0 : index
    %c0_89 = arith.constant 0 : index
    %199 = vector.load %arg8[%198, %c0_88, %c0_89] : memref<10x8x128xf32, #tpu.memory_space<vmem>>, vector<1x8x128xf32>
    %200 = vector.shape_cast %199 : vector<1x8x128xf32> to vector<8x128xf32>
    %201 = arith.addf %200, %192 : vector<8x128xf32>
    %c1_i32_90 = arith.constant 1 : i32
    %202 = arith.addi %c5_i32, %c1_i32_90 : i32
    %203 = arith.index_cast %202 : i32 to index
    %c0_91 = arith.constant 0 : index
    %c0_92 = arith.constant 0 : index
    %204 = vector.load %arg7[%203, %c0_91, %c0_92] : memref<10x8x128xf32, #tpu.memory_space<vmem>>, vector<1x8x128xf32>
    %205 = vector.shape_cast %204 : vector<1x8x128xf32> to vector<8x128xf32>
    %206 = arith.maximumf %201, %205 : vector<8x128xf32>
    %207 = arith.subf %201, %205 : vector<8x128xf32>
    %208 = math.absf %207 : vector<8x128xf32>
    %cst_93 = arith.constant 0.000000e+00 : f32
    %209 = vector.broadcast %cst_93 : f32 to vector<8x128xf32>
    %210 = arith.subf %209, %208 : vector<8x128xf32>
    %211 = math.exp %210 : vector<8x128xf32>
    %cst_94 = arith.constant 1.000000e+00 : f32
    %212 = vector.broadcast %cst_94 : f32 to vector<8x128xf32>
    %213 = arith.addf %212, %211 : vector<8x128xf32>
    %214 = math.log %213 : vector<8x128xf32>
    %215 = arith.addf %206, %214 : vector<8x128xf32>
    %c1_i32_95 = arith.constant 1 : i32
    %216 = arith.addi %c5_i32, %c1_i32_95 : i32
    %217 = arith.index_cast %216 : i32 to index
    %c0_96 = arith.constant 0 : index
    %c0_97 = arith.constant 0 : index
    %218 = vector.load %arg7[%217, %c0_96, %c0_97] : memref<10x8x128xf32, #tpu.memory_space<vmem>>, vector<1x8x128xf32>
    %219 = vector.shape_cast %218 : vector<1x8x128xf32> to vector<8x128xf32>
    %220 = vector.shape_cast %215 : vector<8x128xf32> to vector<1x8x128xf32>
    tpu.vector_store %arg7[%217, %c0_96, %c0_97], %220 {strides = array<i32>} : memref<10x8x128xf32, #tpu.memory_space<vmem>>, vector<1x8x128xf32>,
    %c6_i32 = arith.constant 6 : i32
    %221 = arith.index_cast %c6_i32 : i32 to index
    %c0_98 = arith.constant 0 : index
    %c0_99 = arith.constant 0 : index
    %222 = vector.load %arg8[%221, %c0_98, %c0_99] : memref<10x8x128xf32, #tpu.memory_space<vmem>>, vector<1x8x128xf32>
    %223 = vector.shape_cast %222 : vector<1x8x128xf32> to vector<8x128xf32>
    %224 = arith.addf %223, %215 : vector<8x128xf32>
    %c1_i32_100 = arith.constant 1 : i32
    %225 = arith.addi %c6_i32, %c1_i32_100 : i32
    %226 = arith.index_cast %225 : i32 to index
    %c0_101 = arith.constant 0 : index
    %c0_102 = arith.constant 0 : index
    %227 = vector.load %arg7[%226, %c0_101, %c0_102] : memref<10x8x128xf32, #tpu.memory_space<vmem>>, vector<1x8x128xf32>
    %228 = vector.shape_cast %227 : vector<1x8x128xf32> to vector<8x128xf32>
    %229 = arith.maximumf %224, %228 : vector<8x128xf32>
    %230 = arith.subf %224, %228 : vector<8x128xf32>
    %231 = math.absf %230 : vector<8x128xf32>
    %cst_103 = arith.constant 0.000000e+00 : f32
    %232 = vector.broadcast %cst_103 : f32 to vector<8x128xf32>
    %233 = arith.subf %232, %231 : vector<8x128xf32>
    %234 = math.exp %233 : vector<8x128xf32>
    %cst_104 = arith.constant 1.000000e+00 : f32
    %235 = vector.broadcast %cst_104 : f32 to vector<8x128xf32>
    %236 = arith.addf %235, %234 : vector<8x128xf32>
    %237 = math.log %236 : vector<8x128xf32>
    %238 = arith.addf %229, %237 : vector<8x128xf32>
    %c1_i32_105 = arith.constant 1 : i32
    %239 = arith.addi %c6_i32, %c1_i32_105 : i32
    %240 = arith.index_cast %239 : i32 to index
    %c0_106 = arith.constant 0 : index
    %c0_107 = arith.constant 0 : index
    %241 = vector.load %arg7[%240, %c0_106, %c0_107] : memref<10x8x128xf32, #tpu.memory_space<vmem>>, vector<1x8x128xf32>
    %242 = vector.shape_cast %241 : vector<1x8x128xf32> to vector<8x128xf32>
    %243 = vector.shape_cast %238 : vector<8x128xf32> to vector<1x8x128xf32>
    tpu.vector_store %arg7[%240, %c0_106, %c0_107], %243 {strides = array<i32>} : memref<10x8x128xf32, #tpu.memory_space<vmem>>, vector<1x8x128xf32>,
    %c7_i32 = arith.constant 7 : i32
    %244 = arith.index_cast %c7_i32 : i32 to index
    %c0_108 = arith.constant 0 : index
    %c0_109 = arith.constant 0 : index
    %245 = vector.load %arg8[%244, %c0_108, %c0_109] : memref<10x8x128xf32, #tpu.memory_space<vmem>>, vector<1x8x128xf32>
    %246 = vector.shape_cast %245 : vector<1x8x128xf32> to vector<8x128xf32>
    %247 = arith.addf %246, %238 : vector<8x128xf32>
    %c1_i32_110 = arith.constant 1 : i32
    %248 = arith.addi %c7_i32, %c1_i32_110 : i32
    %249 = arith.index_cast %248 : i32 to index
    %c0_111 = arith.constant 0 : index
    %c0_112 = arith.constant 0 : index
    %250 = vector.load %arg7[%249, %c0_111, %c0_112] : memref<10x8x128xf32, #tpu.memory_space<vmem>>, vector<1x8x128xf32>
    %251 = vector.shape_cast %250 : vector<1x8x128xf32> to vector<8x128xf32>
    %252 = arith.maximumf %247, %251 : vector<8x128xf32>
    %253 = arith.subf %247, %251 : vector<8x128xf32>
    %254 = math.absf %253 : vector<8x128xf32>
    %cst_113 = arith.constant 0.000000e+00 : f32
    %255 = vector.broadcast %cst_113 : f32 to vector<8x128xf32>
    %256 = arith.subf %255, %254 : vector<8x128xf32>
    %257 = math.exp %256 : vector<8x128xf32>
    %cst_114 = arith.constant 1.000000e+00 : f32
    %258 = vector.broadcast %cst_114 : f32 to vector<8x128xf32>
    %259 = arith.addf %258, %257 : vector<8x128xf32>
    %260 = math.log %259 : vector<8x128xf32>
    %261 = arith.addf %252, %260 : vector<8x128xf32>
    %c1_i32_115 = arith.constant 1 : i32
    %262 = arith.addi %c7_i32, %c1_i32_115 : i32
    %263 = arith.index_cast %262 : i32 to index
    %c0_116 = arith.constant 0 : index
    %c0_117 = arith.constant 0 : index
    %264 = vector.load %arg7[%263, %c0_116, %c0_117] : memref<10x8x128xf32, #tpu.memory_space<vmem>>, vector<1x8x128xf32>
    %265 = vector.shape_cast %264 : vector<1x8x128xf32> to vector<8x128xf32>
    %266 = vector.shape_cast %261 : vector<8x128xf32> to vector<1x8x128xf32>
    tpu.vector_store %arg7[%263, %c0_116, %c0_117], %266 {strides = array<i32>} : memref<10x8x128xf32, #tpu.memory_space<vmem>>, vector<1x8x128xf32>,
    %c8_i32 = arith.constant 8 : i32
    %c0_118 = arith.constant 0 : index
    %c0_119 = arith.constant 0 : index
    %c0_120 = arith.constant 0 : index
    %267 = vector.load %arg7[%c0_118, %c0_119, %c0_120] : memref<10x8x128xf32, #tpu.memory_space<vmem>>, vector<9x8x128xf32>
    %268 = math.exp %267 : vector<9x8x128xf32>
    %c0_121 = arith.constant 0 : index
    %c0_122 = arith.constant 0 : index
    %c0_123 = arith.constant 0 : index
    %269 = vector.load %arg7[%c0_121, %c0_122, %c0_123] : memref<10x8x128xf32, #tpu.memory_space<vmem>>, vector<9x8x128xf32>
    tpu.vector_store %arg7[%c0_121, %c0_122, %c0_123], %268 {strides = array<i32>} : memref<10x8x128xf32, #tpu.memory_space<vmem>>, vector<9x8x128xf32>,
    %c1_124 = arith.constant 1 : index
    %c0_125 = arith.constant 0 : index
    %c0_126 = arith.constant 0 : index
    %270 = vector.load %arg2[%c1_124, %c0_125, %c0_126] : memref<2x128x384xbf16, #tpu.memory_space<vmem>>, vector<1x128x384xbf16>
    %271 = vector.shape_cast %270 : vector<1x128x384xbf16> to vector<128x384xbf16>
    %c1_127 = arith.constant 1 : index
    %c0_128 = arith.constant 0 : index
    %c0_129 = arith.constant 0 : index
    %272 = vector.load %arg3[%c1_127, %c0_128, %c0_129] : memref<2x1x384xf32, #tpu.memory_space<vmem>>, vector<1x1x384xf32>
    %273 = vector.shape_cast %272 : vector<1x1x384xf32> to vector<1x384xf32>
    %c0_130 = arith.constant 0 : index
    %c0_131 = arith.constant 0 : index
    %c0_132 = arith.constant 0 : index
    %274 = vector.load %arg7[%c0_130, %c0_131, %c0_132] : memref<10x8x128xf32, #tpu.memory_space<vmem>>, vector<9x8x128xf32>
    %275 = vector.shape_cast %274 : vector<9x8x128xf32> to vector<72x128xf32>
    %276 = arith.truncf %275 : vector<72x128xf32> to vector<72x128xbf16>
    %cst_133 = arith.constant dense<0.000000e+00> : vector<72x384xf32>
    %277 = tpu.matmul %276, %271, %cst_133 {dimension_numbers = #tpu.dot_dimension_numbers<[1], [0], [0], [1], [0, 0, 1, 1], [], []>} : vector<72x128xbf16>, vector<128x384xbf16>, vector<72x384xf32> -> vector<72x384xf32>
    %278 = vector.broadcast %273 : vector<1x384xf32> to vector<72x384xf32>
    %279 = arith.addf %277, %278 : vector<72x384xf32>
    %280 = vector.extract_strided_slice %279 {offsets = [0, 0], sizes = [72, 128], strides = [1, 1]} : vector<72x384xf32> to vector<72x128xf32>
    %281 = vector.extract_strided_slice %279 {offsets = [0, 128], sizes = [72, 128], strides = [1, 1]} : vector<72x384xf32> to vector<72x128xf32>
    %282 = vector.extract_strided_slice %279 {offsets = [0, 256], sizes = [72, 128], strides = [1, 1]} : vector<72x384xf32> to vector<72x128xf32>
    %cst_134 = arith.constant 0.000000e+00 : f32
    %283 = vector.broadcast %cst_134 : f32 to vector<72x128xf32>
    %284 = arith.subf %283, %280 : vector<72x128xf32>
    %cst_135 = arith.constant 0.000000e+00 : f32
    %285 = vector.broadcast %cst_135 : f32 to vector<72x128xf32>
    %286 = arith.maximumf %284, %285 : vector<72x128xf32>
    %287 = math.absf %284 : vector<72x128xf32>
    %cst_136 = arith.constant 0.000000e+00 : f32
    %288 = vector.broadcast %cst_136 : f32 to vector<72x128xf32>
    %289 = arith.subf %288, %287 : vector<72x128xf32>
    %290 = math.exp %289 : vector<72x128xf32>
    %cst_137 = arith.constant 1.000000e+00 : f32
    %291 = vector.broadcast %cst_137 : f32 to vector<72x128xf32>
    %292 = arith.addf %291, %290 : vector<72x128xf32>
    %293 = math.log %292 : vector<72x128xf32>
    %294 = arith.addf %286, %293 : vector<72x128xf32>
    %cst_138 = arith.constant 0.000000e+00 : f32
    %295 = vector.broadcast %cst_138 : f32 to vector<72x128xf32>
    %296 = arith.subf %295, %281 : vector<72x128xf32>
    %cst_139 = arith.constant 0.000000e+00 : f32
    %297 = vector.broadcast %cst_139 : f32 to vector<72x128xf32>
    %298 = arith.maximumf %296, %297 : vector<72x128xf32>
    %299 = math.absf %296 : vector<72x128xf32>
    %cst_140 = arith.constant 0.000000e+00 : f32
    %300 = vector.broadcast %cst_140 : f32 to vector<72x128xf32>
    %301 = arith.subf %300, %299 : vector<72x128xf32>
    %302 = math.exp %301 : vector<72x128xf32>
    %cst_141 = arith.constant 1.000000e+00 : f32
    %303 = vector.broadcast %cst_141 : f32 to vector<72x128xf32>
    %304 = arith.addf %303, %302 : vector<72x128xf32>
    %305 = math.log %304 : vector<72x128xf32>
    %306 = arith.addf %298, %305 : vector<72x128xf32>
    %307 = arith.subf %294, %306 : vector<72x128xf32>
    %cst_142 = arith.constant 0.000000e+00 : f32
    %308 = vector.broadcast %cst_142 : f32 to vector<72x128xf32>
    %309 = arith.maximumf %307, %308 : vector<72x128xf32>
    %310 = math.absf %307 : vector<72x128xf32>
    %cst_143 = arith.constant 0.000000e+00 : f32
    %311 = vector.broadcast %cst_143 : f32 to vector<72x128xf32>
    %312 = arith.subf %311, %310 : vector<72x128xf32>
    %313 = math.exp %312 : vector<72x128xf32>
    %cst_144 = arith.constant 1.000000e+00 : f32
    %314 = vector.broadcast %cst_144 : f32 to vector<72x128xf32>
    %315 = arith.addf %314, %313 : vector<72x128xf32>
    %316 = math.log %315 : vector<72x128xf32>
    %317 = arith.addf %309, %316 : vector<72x128xf32>
    %cst_145 = arith.constant 0.000000e+00 : f32
    %318 = vector.broadcast %cst_145 : f32 to vector<72x128xf32>
    %319 = arith.subf %318, %317 : vector<72x128xf32>
    %320 = arith.subf %307, %317 : vector<72x128xf32>
    %cst_146 = arith.constant 0.000000e+00 : f32
    %321 = vector.broadcast %cst_146 : f32 to vector<72x128xf32>
    %322 = arith.cmpf oge, %282, %321 : vector<72x128xf32>
    %cst_147 = arith.constant 0.000000e+00 : f32
    %323 = vector.broadcast %cst_147 : f32 to vector<72x128xf32>
    %324 = arith.maximumf %282, %323 : vector<72x128xf32>
    %cst_148 = arith.constant 5.000000e-01 : f32
    %325 = vector.broadcast %cst_148 : f32 to vector<72x128xf32>
    %326 = arith.addf %324, %325 : vector<72x128xf32>
    %327 = math.log %326 : vector<72x128xf32>
    %cst_149 = arith.constant 0.000000e+00 : f32
    %328 = vector.broadcast %cst_149 : f32 to vector<72x128xf32>
    %329 = arith.subf %328, %282 : vector<72x128xf32>
    %cst_150 = arith.constant 0.000000e+00 : f32
    %330 = vector.broadcast %cst_150 : f32 to vector<72x128xf32>
    %331 = arith.maximumf %329, %330 : vector<72x128xf32>
    %332 = math.absf %329 : vector<72x128xf32>
    %cst_151 = arith.constant 0.000000e+00 : f32
    %333 = vector.broadcast %cst_151 : f32 to vector<72x128xf32>
    %334 = arith.subf %333, %332 : vector<72x128xf32>
    %335 = math.exp %334 : vector<72x128xf32>
    %cst_152 = arith.constant 1.000000e+00 : f32
    %336 = vector.broadcast %cst_152 : f32 to vector<72x128xf32>
    %337 = arith.addf %336, %335 : vector<72x128xf32>
    %338 = math.log %337 : vector<72x128xf32>
    %339 = arith.addf %331, %338 : vector<72x128xf32>
    %cst_153 = arith.constant 0.000000e+00 : f32
    %340 = vector.broadcast %cst_153 : f32 to vector<72x128xf32>
    %341 = arith.subf %340, %339 : vector<72x128xf32>
    %342 = arith.select %322, %327, %341 : vector<72x128xi1>, vector<72x128xf32>
    %343 = arith.addf %320, %342 : vector<72x128xf32>
    %344 = vector.shape_cast %319 : vector<72x128xf32> to vector<9x8x128xf32>
    %c0_154 = arith.constant 0 : index
    %c0_155 = arith.constant 0 : index
    %c0_156 = arith.constant 0 : index
    %345 = vector.load %arg8[%c0_154, %c0_155, %c0_156] : memref<10x8x128xf32, #tpu.memory_space<vmem>>, vector<9x8x128xf32>
    tpu.vector_store %arg8[%c0_154, %c0_155, %c0_156], %344 {strides = array<i32>} : memref<10x8x128xf32, #tpu.memory_space<vmem>>, vector<9x8x128xf32>,
    %346 = vector.shape_cast %343 : vector<72x128xf32> to vector<9x8x128xf32>
    %c1_157 = arith.constant 1 : index
    %c0_158 = arith.constant 0 : index
    %c0_159 = arith.constant 0 : index
    %347 = vector.load %arg7[%c1_157, %c0_158, %c0_159] : memref<10x8x128xf32, #tpu.memory_space<vmem>>, vector<9x8x128xf32>
    tpu.vector_store %arg7[%c1_157, %c0_158, %c0_159], %346 {strides = array<i32>} : memref<10x8x128xf32, #tpu.memory_space<vmem>>, vector<9x8x128xf32>,
    %cst_160 = arith.constant -0.693147182 : f32
    %348 = vector.broadcast %cst_160 : f32 to vector<8x128xf32>
    %c0_161 = arith.constant 0 : index
    %c0_162 = arith.constant 0 : index
    %c0_163 = arith.constant 0 : index
    %349 = vector.load %arg7[%c0_161, %c0_162, %c0_163] : memref<10x8x128xf32, #tpu.memory_space<vmem>>, vector<1x8x128xf32>
    %350 = vector.shape_cast %349 : vector<1x8x128xf32> to vector<8x128xf32>
    %351 = vector.shape_cast %348 : vector<8x128xf32> to vector<1x8x128xf32>
    tpu.vector_store %arg7[%c0_161, %c0_162, %c0_163], %351 {strides = array<i32>} : memref<10x8x128xf32, #tpu.memory_space<vmem>>, vector<1x8x128xf32>,
    %cst_164 = arith.constant -0.693147182 : f32
    %352 = vector.broadcast %cst_164 : f32 to vector<8x128xf32>
    %c0_i32_165 = arith.constant 0 : i32
    %353 = arith.index_cast %c0_i32_165 : i32 to index
    %c0_166 = arith.constant 0 : index
    %c0_167 = arith.constant 0 : index
    %354 = vector.load %arg8[%353, %c0_166, %c0_167] : memref<10x8x128xf32, #tpu.memory_space<vmem>>, vector<1x8x128xf32>
    %355 = vector.shape_cast %354 : vector<1x8x128xf32> to vector<8x128xf32>
    %356 = arith.addf %355, %352 : vector<8x128xf32>
    %c1_i32_168 = arith.constant 1 : i32
    %357 = arith.addi %c0_i32_165, %c1_i32_168 : i32
    %358 = arith.index_cast %357 : i32 to index
    %c0_169 = arith.constant 0 : index
    %c0_170 = arith.constant 0 : index
    %359 = vector.load %arg7[%358, %c0_169, %c0_170] : memref<10x8x128xf32, #tpu.memory_space<vmem>>, vector<1x8x128xf32>
    %360 = vector.shape_cast %359 : vector<1x8x128xf32> to vector<8x128xf32>
    %361 = arith.maximumf %356, %360 : vector<8x128xf32>
    %362 = arith.subf %356, %360 : vector<8x128xf32>
    %363 = math.absf %362 : vector<8x128xf32>
    %cst_171 = arith.constant 0.000000e+00 : f32
    %364 = vector.broadcast %cst_171 : f32 to vector<8x128xf32>
    %365 = arith.subf %364, %363 : vector<8x128xf32>
    %366 = math.exp %365 : vector<8x128xf32>
    %cst_172 = arith.constant 1.000000e+00 : f32
    %367 = vector.broadcast %cst_172 : f32 to vector<8x128xf32>
    %368 = arith.addf %367, %366 : vector<8x128xf32>
    %369 = math.log %368 : vector<8x128xf32>
    %370 = arith.addf %361, %369 : vector<8x128xf32>
    %c1_i32_173 = arith.constant 1 : i32
    %371 = arith.addi %c0_i32_165, %c1_i32_173 : i32
    %372 = arith.index_cast %371 : i32 to index
    %c0_174 = arith.constant 0 : index
    %c0_175 = arith.constant 0 : index
    %373 = vector.load %arg7[%372, %c0_174, %c0_175] : memref<10x8x128xf32, #tpu.memory_space<vmem>>, vector<1x8x128xf32>
    %374 = vector.shape_cast %373 : vector<1x8x128xf32> to vector<8x128xf32>
    %375 = vector.shape_cast %370 : vector<8x128xf32> to vector<1x8x128xf32>
    tpu.vector_store %arg7[%372, %c0_174, %c0_175], %375 {strides = array<i32>} : memref<10x8x128xf32, #tpu.memory_space<vmem>>, vector<1x8x128xf32>,
    %c1_i32_176 = arith.constant 1 : i32
    %376 = arith.index_cast %c1_i32_176 : i32 to index
    %c0_177 = arith.constant 0 : index
    %c0_178 = arith.constant 0 : index
    %377 = vector.load %arg8[%376, %c0_177, %c0_178] : memref<10x8x128xf32, #tpu.memory_space<vmem>>, vector<1x8x128xf32>
    %378 = vector.shape_cast %377 : vector<1x8x128xf32> to vector<8x128xf32>
    %379 = arith.addf %378, %370 : vector<8x128xf32>
    %c1_i32_179 = arith.constant 1 : i32
    %380 = arith.addi %c1_i32_176, %c1_i32_179 : i32
    %381 = arith.index_cast %380 : i32 to index
    %c0_180 = arith.constant 0 : index
    %c0_181 = arith.constant 0 : index
    %382 = vector.load %arg7[%381, %c0_180, %c0_181] : memref<10x8x128xf32, #tpu.memory_space<vmem>>, vector<1x8x128xf32>
    %383 = vector.shape_cast %382 : vector<1x8x128xf32> to vector<8x128xf32>
    %384 = arith.maximumf %379, %383 : vector<8x128xf32>
    %385 = arith.subf %379, %383 : vector<8x128xf32>
    %386 = math.absf %385 : vector<8x128xf32>
    %cst_182 = arith.constant 0.000000e+00 : f32
    %387 = vector.broadcast %cst_182 : f32 to vector<8x128xf32>
    %388 = arith.subf %387, %386 : vector<8x128xf32>
    %389 = math.exp %388 : vector<8x128xf32>
    %cst_183 = arith.constant 1.000000e+00 : f32
    %390 = vector.broadcast %cst_183 : f32 to vector<8x128xf32>
    %391 = arith.addf %390, %389 : vector<8x128xf32>
    %392 = math.log %391 : vector<8x128xf32>
    %393 = arith.addf %384, %392 : vector<8x128xf32>
    %c1_i32_184 = arith.constant 1 : i32
    %394 = arith.addi %c1_i32_176, %c1_i32_184 : i32
    %395 = arith.index_cast %394 : i32 to index
    %c0_185 = arith.constant 0 : index
    %c0_186 = arith.constant 0 : index
    %396 = vector.load %arg7[%395, %c0_185, %c0_186] : memref<10x8x128xf32, #tpu.memory_space<vmem>>, vector<1x8x128xf32>
    %397 = vector.shape_cast %396 : vector<1x8x128xf32> to vector<8x128xf32>
    %398 = vector.shape_cast %393 : vector<8x128xf32> to vector<1x8x128xf32>
    tpu.vector_store %arg7[%395, %c0_185, %c0_186], %398 {strides = array<i32>} : memref<10x8x128xf32, #tpu.memory_space<vmem>>, vector<1x8x128xf32>,
    %c2_i32_187 = arith.constant 2 : i32
    %399 = arith.index_cast %c2_i32_187 : i32 to index
    %c0_188 = arith.constant 0 : index
    %c0_189 = arith.constant 0 : index
    %400 = vector.load %arg8[%399, %c0_188, %c0_189] : memref<10x8x128xf32, #tpu.memory_space<vmem>>, vector<1x8x128xf32>
    %401 = vector.shape_cast %400 : vector<1x8x128xf32> to vector<8x128xf32>
    %402 = arith.addf %401, %393 : vector<8x128xf32>
    %c1_i32_190 = arith.constant 1 : i32
    %403 = arith.addi %c2_i32_187, %c1_i32_190 : i32
    %404 = arith.index_cast %403 : i32 to index
    %c0_191 = arith.constant 0 : index
    %c0_192 = arith.constant 0 : index
    %405 = vector.load %arg7[%404, %c0_191, %c0_192] : memref<10x8x128xf32, #tpu.memory_space<vmem>>, vector<1x8x128xf32>
    %406 = vector.shape_cast %405 : vector<1x8x128xf32> to vector<8x128xf32>
    %407 = arith.maximumf %402, %406 : vector<8x128xf32>
    %408 = arith.subf %402, %406 : vector<8x128xf32>
    %409 = math.absf %408 : vector<8x128xf32>
    %cst_193 = arith.constant 0.000000e+00 : f32
    %410 = vector.broadcast %cst_193 : f32 to vector<8x128xf32>
    %411 = arith.subf %410, %409 : vector<8x128xf32>
    %412 = math.exp %411 : vector<8x128xf32>
    %cst_194 = arith.constant 1.000000e+00 : f32
    %413 = vector.broadcast %cst_194 : f32 to vector<8x128xf32>
    %414 = arith.addf %413, %412 : vector<8x128xf32>
    %415 = math.log %414 : vector<8x128xf32>
    %416 = arith.addf %407, %415 : vector<8x128xf32>
    %c1_i32_195 = arith.constant 1 : i32
    %417 = arith.addi %c2_i32_187, %c1_i32_195 : i32
    %418 = arith.index_cast %417 : i32 to index
    %c0_196 = arith.constant 0 : index
    %c0_197 = arith.constant 0 : index
    %419 = vector.load %arg7[%418, %c0_196, %c0_197] : memref<10x8x128xf32, #tpu.memory_space<vmem>>, vector<1x8x128xf32>
    %420 = vector.shape_cast %419 : vector<1x8x128xf32> to vector<8x128xf32>
    %421 = vector.shape_cast %416 : vector<8x128xf32> to vector<1x8x128xf32>
    tpu.vector_store %arg7[%418, %c0_196, %c0_197], %421 {strides = array<i32>} : memref<10x8x128xf32, #tpu.memory_space<vmem>>, vector<1x8x128xf32>,
    %c3_i32_198 = arith.constant 3 : i32
    %422 = arith.index_cast %c3_i32_198 : i32 to index
    %c0_199 = arith.constant 0 : index
    %c0_200 = arith.constant 0 : index
    %423 = vector.load %arg8[%422, %c0_199, %c0_200] : memref<10x8x128xf32, #tpu.memory_space<vmem>>, vector<1x8x128xf32>
    %424 = vector.shape_cast %423 : vector<1x8x128xf32> to vector<8x128xf32>
    %425 = arith.addf %424, %416 : vector<8x128xf32>
    %c1_i32_201 = arith.constant 1 : i32
    %426 = arith.addi %c3_i32_198, %c1_i32_201 : i32
    %427 = arith.index_cast %426 : i32 to index
    %c0_202 = arith.constant 0 : index
    %c0_203 = arith.constant 0 : index
    %428 = vector.load %arg7[%427, %c0_202, %c0_203] : memref<10x8x128xf32, #tpu.memory_space<vmem>>, vector<1x8x128xf32>
    %429 = vector.shape_cast %428 : vector<1x8x128xf32> to vector<8x128xf32>
    %430 = arith.maximumf %425, %429 : vector<8x128xf32>
    %431 = arith.subf %425, %429 : vector<8x128xf32>
    %432 = math.absf %431 : vector<8x128xf32>
    %cst_204 = arith.constant 0.000000e+00 : f32
    %433 = vector.broadcast %cst_204 : f32 to vector<8x128xf32>
    %434 = arith.subf %433, %432 : vector<8x128xf32>
    %435 = math.exp %434 : vector<8x128xf32>
    %cst_205 = arith.constant 1.000000e+00 : f32
    %436 = vector.broadcast %cst_205 : f32 to vector<8x128xf32>
    %437 = arith.addf %436, %435 : vector<8x128xf32>
    %438 = math.log %437 : vector<8x128xf32>
    %439 = arith.addf %430, %438 : vector<8x128xf32>
    %c1_i32_206 = arith.constant 1 : i32
    %440 = arith.addi %c3_i32_198, %c1_i32_206 : i32
    %441 = arith.index_cast %440 : i32 to index
    %c0_207 = arith.constant 0 : index
    %c0_208 = arith.constant 0 : index
    %442 = vector.load %arg7[%441, %c0_207, %c0_208] : memref<10x8x128xf32, #tpu.memory_space<vmem>>, vector<1x8x128xf32>
    %443 = vector.shape_cast %442 : vector<1x8x128xf32> to vector<8x128xf32>
    %444 = vector.shape_cast %439 : vector<8x128xf32> to vector<1x8x128xf32>
    tpu.vector_store %arg7[%441, %c0_207, %c0_208], %444 {strides = array<i32>} : memref<10x8x128xf32, #tpu.memory_space<vmem>>, vector<1x8x128xf32>,
    %c4_i32_209 = arith.constant 4 : i32
    %445 = arith.index_cast %c4_i32_209 : i32 to index
    %c0_210 = arith.constant 0 : index
    %c0_211 = arith.constant 0 : index
    %446 = vector.load %arg8[%445, %c0_210, %c0_211] : memref<10x8x128xf32, #tpu.memory_space<vmem>>, vector<1x8x128xf32>
    %447 = vector.shape_cast %446 : vector<1x8x128xf32> to vector<8x128xf32>
    %448 = arith.addf %447, %439 : vector<8x128xf32>
    %c1_i32_212 = arith.constant 1 : i32
    %449 = arith.addi %c4_i32_209, %c1_i32_212 : i32
    %450 = arith.index_cast %449 : i32 to index
    %c0_213 = arith.constant 0 : index
    %c0_214 = arith.constant 0 : index
    %451 = vector.load %arg7[%450, %c0_213, %c0_214] : memref<10x8x128xf32, #tpu.memory_space<vmem>>, vector<1x8x128xf32>
    %452 = vector.shape_cast %451 : vector<1x8x128xf32> to vector<8x128xf32>
    %453 = arith.maximumf %448, %452 : vector<8x128xf32>
    %454 = arith.subf %448, %452 : vector<8x128xf32>
    %455 = math.absf %454 : vector<8x128xf32>
    %cst_215 = arith.constant 0.000000e+00 : f32
    %456 = vector.broadcast %cst_215 : f32 to vector<8x128xf32>
    %457 = arith.subf %456, %455 : vector<8x128xf32>
    %458 = math.exp %457 : vector<8x128xf32>
    %cst_216 = arith.constant 1.000000e+00 : f32
    %459 = vector.broadcast %cst_216 : f32 to vector<8x128xf32>
    %460 = arith.addf %459, %458 : vector<8x128xf32>
    %461 = math.log %460 : vector<8x128xf32>
    %462 = arith.addf %453, %461 : vector<8x128xf32>
    %c1_i32_217 = arith.constant 1 : i32
    %463 = arith.addi %c4_i32_209, %c1_i32_217 : i32
    %464 = arith.index_cast %463 : i32 to index
    %c0_218 = arith.constant 0 : index
    %c0_219 = arith.constant 0 : index
    %465 = vector.load %arg7[%464, %c0_218, %c0_219] : memref<10x8x128xf32, #tpu.memory_space<vmem>>, vector<1x8x128xf32>
    %466 = vector.shape_cast %465 : vector<1x8x128xf32> to vector<8x128xf32>
    %467 = vector.shape_cast %462 : vector<8x128xf32> to vector<1x8x128xf32>
    tpu.vector_store %arg7[%464, %c0_218, %c0_219], %467 {strides = array<i32>} : memref<10x8x128xf32, #tpu.memory_space<vmem>>, vector<1x8x128xf32>,
    %c5_i32_220 = arith.constant 5 : i32
    %468 = arith.index_cast %c5_i32_220 : i32 to index
    %c0_221 = arith.constant 0 : index
    %c0_222 = arith.constant 0 : index
    %469 = vector.load %arg8[%468, %c0_221, %c0_222] : memref<10x8x128xf32, #tpu.memory_space<vmem>>, vector<1x8x128xf32>
    %470 = vector.shape_cast %469 : vector<1x8x128xf32> to vector<8x128xf32>
    %471 = arith.addf %470, %462 : vector<8x128xf32>
    %c1_i32_223 = arith.constant 1 : i32
    %472 = arith.addi %c5_i32_220, %c1_i32_223 : i32
    %473 = arith.index_cast %472 : i32 to index
    %c0_224 = arith.constant 0 : index
    %c0_225 = arith.constant 0 : index
    %474 = vector.load %arg7[%473, %c0_224, %c0_225] : memref<10x8x128xf32, #tpu.memory_space<vmem>>, vector<1x8x128xf32>
    %475 = vector.shape_cast %474 : vector<1x8x128xf32> to vector<8x128xf32>
    %476 = arith.maximumf %471, %475 : vector<8x128xf32>
    %477 = arith.subf %471, %475 : vector<8x128xf32>
    %478 = math.absf %477 : vector<8x128xf32>
    %cst_226 = arith.constant 0.000000e+00 : f32
    %479 = vector.broadcast %cst_226 : f32 to vector<8x128xf32>
    %480 = arith.subf %479, %478 : vector<8x128xf32>
    %481 = math.exp %480 : vector<8x128xf32>
    %cst_227 = arith.constant 1.000000e+00 : f32
    %482 = vector.broadcast %cst_227 : f32 to vector<8x128xf32>
    %483 = arith.addf %482, %481 : vector<8x128xf32>
    %484 = math.log %483 : vector<8x128xf32>
    %485 = arith.addf %476, %484 : vector<8x128xf32>
    %c1_i32_228 = arith.constant 1 : i32
    %486 = arith.addi %c5_i32_220, %c1_i32_228 : i32
    %487 = arith.index_cast %486 : i32 to index
    %c0_229 = arith.constant 0 : index
    %c0_230 = arith.constant 0 : index
    %488 = vector.load %arg7[%487, %c0_229, %c0_230] : memref<10x8x128xf32, #tpu.memory_space<vmem>>, vector<1x8x128xf32>
    %489 = vector.shape_cast %488 : vector<1x8x128xf32> to vector<8x128xf32>
    %490 = vector.shape_cast %485 : vector<8x128xf32> to vector<1x8x128xf32>
    tpu.vector_store %arg7[%487, %c0_229, %c0_230], %490 {strides = array<i32>} : memref<10x8x128xf32, #tpu.memory_space<vmem>>, vector<1x8x128xf32>,
    %c6_i32_231 = arith.constant 6 : i32
    %491 = arith.index_cast %c6_i32_231 : i32 to index
    %c0_232 = arith.constant 0 : index
    %c0_233 = arith.constant 0 : index
    %492 = vector.load %arg8[%491, %c0_232, %c0_233] : memref<10x8x128xf32, #tpu.memory_space<vmem>>, vector<1x8x128xf32>
    %493 = vector.shape_cast %492 : vector<1x8x128xf32> to vector<8x128xf32>
    %494 = arith.addf %493, %485 : vector<8x128xf32>
    %c1_i32_234 = arith.constant 1 : i32
    %495 = arith.addi %c6_i32_231, %c1_i32_234 : i32
    %496 = arith.index_cast %495 : i32 to index
    %c0_235 = arith.constant 0 : index
    %c0_236 = arith.constant 0 : index
    %497 = vector.load %arg7[%496, %c0_235, %c0_236] : memref<10x8x128xf32, #tpu.memory_space<vmem>>, vector<1x8x128xf32>
    %498 = vector.shape_cast %497 : vector<1x8x128xf32> to vector<8x128xf32>
    %499 = arith.maximumf %494, %498 : vector<8x128xf32>
    %500 = arith.subf %494, %498 : vector<8x128xf32>
    %501 = math.absf %500 : vector<8x128xf32>
    %cst_237 = arith.constant 0.000000e+00 : f32
    %502 = vector.broadcast %cst_237 : f32 to vector<8x128xf32>
    %503 = arith.subf %502, %501 : vector<8x128xf32>
    %504 = math.exp %503 : vector<8x128xf32>
    %cst_238 = arith.constant 1.000000e+00 : f32
    %505 = vector.broadcast %cst_238 : f32 to vector<8x128xf32>
    %506 = arith.addf %505, %504 : vector<8x128xf32>
    %507 = math.log %506 : vector<8x128xf32>
    %508 = arith.addf %499, %507 : vector<8x128xf32>
    %c1_i32_239 = arith.constant 1 : i32
    %509 = arith.addi %c6_i32_231, %c1_i32_239 : i32
    %510 = arith.index_cast %509 : i32 to index
    %c0_240 = arith.constant 0 : index
    %c0_241 = arith.constant 0 : index
    %511 = vector.load %arg7[%510, %c0_240, %c0_241] : memref<10x8x128xf32, #tpu.memory_space<vmem>>, vector<1x8x128xf32>
    %512 = vector.shape_cast %511 : vector<1x8x128xf32> to vector<8x128xf32>
    %513 = vector.shape_cast %508 : vector<8x128xf32> to vector<1x8x128xf32>
    tpu.vector_store %arg7[%510, %c0_240, %c0_241], %513 {strides = array<i32>} : memref<10x8x128xf32, #tpu.memory_space<vmem>>, vector<1x8x128xf32>,
    %c7_i32_242 = arith.constant 7 : i32
    %514 = arith.index_cast %c7_i32_242 : i32 to index
    %c0_243 = arith.constant 0 : index
    %c0_244 = arith.constant 0 : index
    %515 = vector.load %arg8[%514, %c0_243, %c0_244] : memref<10x8x128xf32, #tpu.memory_space<vmem>>, vector<1x8x128xf32>
    %516 = vector.shape_cast %515 : vector<1x8x128xf32> to vector<8x128xf32>
    %517 = arith.addf %516, %508 : vector<8x128xf32>
    %c1_i32_245 = arith.constant 1 : i32
    %518 = arith.addi %c7_i32_242, %c1_i32_245 : i32
    %519 = arith.index_cast %518 : i32 to index
    %c0_246 = arith.constant 0 : index
    %c0_247 = arith.constant 0 : index
    %520 = vector.load %arg7[%519, %c0_246, %c0_247] : memref<10x8x128xf32, #tpu.memory_space<vmem>>, vector<1x8x128xf32>
    %521 = vector.shape_cast %520 : vector<1x8x128xf32> to vector<8x128xf32>
    %522 = arith.maximumf %517, %521 : vector<8x128xf32>
    %523 = arith.subf %517, %521 : vector<8x128xf32>
    %524 = math.absf %523 : vector<8x128xf32>
    %cst_248 = arith.constant 0.000000e+00 : f32
    %525 = vector.broadcast %cst_248 : f32 to vector<8x128xf32>
    %526 = arith.subf %525, %524 : vector<8x128xf32>
    %527 = math.exp %526 : vector<8x128xf32>
    %cst_249 = arith.constant 1.000000e+00 : f32
    %528 = vector.broadcast %cst_249 : f32 to vector<8x128xf32>
    %529 = arith.addf %528, %527 : vector<8x128xf32>
    %530 = math.log %529 : vector<8x128xf32>
    %531 = arith.addf %522, %530 : vector<8x128xf32>
    %c1_i32_250 = arith.constant 1 : i32
    %532 = arith.addi %c7_i32_242, %c1_i32_250 : i32
    %533 = arith.index_cast %532 : i32 to index
    %c0_251 = arith.constant 0 : index
    %c0_252 = arith.constant 0 : index
    %534 = vector.load %arg7[%533, %c0_251, %c0_252] : memref<10x8x128xf32, #tpu.memory_space<vmem>>, vector<1x8x128xf32>
    %535 = vector.shape_cast %534 : vector<1x8x128xf32> to vector<8x128xf32>
    %536 = vector.shape_cast %531 : vector<8x128xf32> to vector<1x8x128xf32>
    tpu.vector_store %arg7[%533, %c0_251, %c0_252], %536 {strides = array<i32>} : memref<10x8x128xf32, #tpu.memory_space<vmem>>, vector<1x8x128xf32>,
    %c8_i32_253 = arith.constant 8 : i32
    %537 = arith.index_cast %c8_i32_253 : i32 to index
    %c0_254 = arith.constant 0 : index
    %c0_255 = arith.constant 0 : index
    %538 = vector.load %arg8[%537, %c0_254, %c0_255] : memref<10x8x128xf32, #tpu.memory_space<vmem>>, vector<1x8x128xf32>
    %539 = vector.shape_cast %538 : vector<1x8x128xf32> to vector<8x128xf32>
    %540 = arith.addf %539, %531 : vector<8x128xf32>
    %c1_i32_256 = arith.constant 1 : i32
    %541 = arith.addi %c8_i32_253, %c1_i32_256 : i32
    %542 = arith.index_cast %541 : i32 to index
    %c0_257 = arith.constant 0 : index
    %c0_258 = arith.constant 0 : index
    %543 = vector.load %arg7[%542, %c0_257, %c0_258] : memref<10x8x128xf32, #tpu.memory_space<vmem>>, vector<1x8x128xf32>
    %544 = vector.shape_cast %543 : vector<1x8x128xf32> to vector<8x128xf32>
    %545 = arith.maximumf %540, %544 : vector<8x128xf32>
    %546 = arith.subf %540, %544 : vector<8x128xf32>
    %547 = math.absf %546 : vector<8x128xf32>
    %cst_259 = arith.constant 0.000000e+00 : f32
    %548 = vector.broadcast %cst_259 : f32 to vector<8x128xf32>
    %549 = arith.subf %548, %547 : vector<8x128xf32>
    %550 = math.exp %549 : vector<8x128xf32>
    %cst_260 = arith.constant 1.000000e+00 : f32
    %551 = vector.broadcast %cst_260 : f32 to vector<8x128xf32>
    %552 = arith.addf %551, %550 : vector<8x128xf32>
    %553 = math.log %552 : vector<8x128xf32>
    %554 = arith.addf %545, %553 : vector<8x128xf32>
    %c1_i32_261 = arith.constant 1 : i32
    %555 = arith.addi %c8_i32_253, %c1_i32_261 : i32
    %556 = arith.index_cast %555 : i32 to index
    %c0_262 = arith.constant 0 : index
    %c0_263 = arith.constant 0 : index
    %557 = vector.load %arg7[%556, %c0_262, %c0_263] : memref<10x8x128xf32, #tpu.memory_space<vmem>>, vector<1x8x128xf32>
    %558 = vector.shape_cast %557 : vector<1x8x128xf32> to vector<8x128xf32>
    %559 = vector.shape_cast %554 : vector<8x128xf32> to vector<1x8x128xf32>
    tpu.vector_store %arg7[%556, %c0_262, %c0_263], %559 {strides = array<i32>} : memref<10x8x128xf32, #tpu.memory_space<vmem>>, vector<1x8x128xf32>,
    %c9_i32 = arith.constant 9 : i32
    %c0_264 = arith.constant 0 : index
    %c0_265 = arith.constant 0 : index
    %c0_266 = arith.constant 0 : index
    %560 = vector.load %arg7[%c0_264, %c0_265, %c0_266] : memref<10x8x128xf32, #tpu.memory_space<vmem>>, vector<10x8x128xf32>
    %561 = math.exp %560 : vector<10x8x128xf32>
    %c0_267 = arith.constant 0 : index
    %c0_268 = arith.constant 0 : index
    %c0_269 = arith.constant 0 : index
    %562 = vector.load %arg7[%c0_267, %c0_268, %c0_269] : memref<10x8x128xf32, #tpu.memory_space<vmem>>, vector<10x8x128xf32>
    tpu.vector_store %arg7[%c0_267, %c0_268, %c0_269], %561 {strides = array<i32>} : memref<10x8x128xf32, #tpu.memory_space<vmem>>, vector<10x8x128xf32>,
    %c0_270 = arith.constant 0 : index
    %c0_271 = arith.constant 0 : index
    %563 = vector.load %arg4[%c0_270, %c0_271] : memref<128x128xbf16, #tpu.memory_space<vmem>>, vector<128x128xbf16>
    %c0_272 = arith.constant 0 : index
    %c0_273 = arith.constant 0 : index
    %c0_274 = arith.constant 0 : index
    %564 = vector.load %arg7[%c0_272, %c0_273, %c0_274] : memref<10x8x128xf32, #tpu.memory_space<vmem>>, vector<10x8x128xf32>
    %565 = vector.shape_cast %564 : vector<10x8x128xf32> to vector<80x128xf32>
    %566 = arith.truncf %565 : vector<80x128xf32> to vector<80x128xbf16>
    %cst_275 = arith.constant dense<0.000000e+00> : vector<80x128xf32>
    %567 = tpu.matmul %566, %563, %cst_275 {dimension_numbers = #tpu.dot_dimension_numbers<[1], [0], [0], [1], [0, 0, 1, 1], [], []>} : vector<80x128xbf16>, vector<128x128xbf16>, vector<80x128xf32> -> vector<80x128xf32>
    %c0_276 = arith.constant 0 : index
    %c0_277 = arith.constant 0 : index
    %568 = vector.load %arg5[%c0_276, %c0_277] : memref<1x128xf32, #tpu.memory_space<vmem>>, vector<1x128xf32>
    %569 = vector.broadcast %568 : vector<1x128xf32> to vector<80x128xf32>
    %570 = arith.addf %567, %569 : vector<80x128xf32>
    %571 = vector.shape_cast %570 : vector<80x128xf32> to vector<10x8x128xf32>
    %c0_278 = arith.constant 0 : index
    %c0_279 = arith.constant 0 : index
    %c0_280 = arith.constant 0 : index
    %572 = vector.load %arg6[%c0_278, %c0_279, %c0_280] : memref<10x8x128xf32, #tpu.memory_space<vmem>>, vector<10x8x128xf32>
    tpu.vector_store %arg6[%c0_278, %c0_279, %c0_280], %571 {strides = array<i32>} : memref<10x8x128xf32, #tpu.memory_space<vmem>>, vector<10x8x128xf32>,
    return
  }
  func.func @transform_0(%arg0: i32) -> (i32, i32, i32) {
    %c0_i32 = arith.constant 0 : i32
    %c0_i32_0 = arith.constant 0 : i32
    %c0_i32_1 = arith.constant 0 : i32
    return %c0_i32, %arg0, %c0_i32_0 : i32, i32, i32
  }
  func.func @transform_1(%arg0: i32) -> (i32, i32, i32) {
    %c0_i32 = arith.constant 0 : i32
    %c0_i32_0 = arith.constant 0 : i32
    %c0_i32_1 = arith.constant 0 : i32
    %c0_i32_2 = arith.constant 0 : i32
    return %c0_i32, %c0_i32_0, %c0_i32_1 : i32, i32, i32
  }
  func.func @transform_2(%arg0: i32) -> (i32, i32, i32) {
    %c0_i32 = arith.constant 0 : i32
    %c0_i32_0 = arith.constant 0 : i32
    %c0_i32_1 = arith.constant 0 : i32
    %c0_i32_2 = arith.constant 0 : i32
    return %c0_i32, %c0_i32_0, %c0_i32_1 : i32, i32, i32
  }
  func.func @transform_3(%arg0: i32) -> (i32, i32) {
    %c0_i32 = arith.constant 0 : i32
    %c0_i32_0 = arith.constant 0 : i32
    %c0_i32_1 = arith.constant 0 : i32
    return %c0_i32, %c0_i32_0 : i32, i32
  }
  func.func @transform_4(%arg0: i32) -> (i32, i32) {
    %c0_i32 = arith.constant 0 : i32
    %c0_i32_0 = arith.constant 0 : i32
    %c0_i32_1 = arith.constant 0 : i32
    return %c0_i32, %c0_i32_0 : i32, i32
  }
  func.func @transform_5(%arg0: i32) -> (i32, i32, i32) {
    %c0_i32 = arith.constant 0 : i32
    %c0_i32_0 = arith.constant 0 : i32
    %c0_i32_1 = arith.constant 0 : i32
    return %c0_i32, %arg0, %c0_i32_0 : i32, i32, i32
  }
}

</mosaic_0001>

<bundles_post_ra>
// kernel: language_model_forward.1
= control target key start
LH: loop header
LB: loop body
LE: loop exit
PB: predicated region body
PF: predicated region fallthrough
CT: control target
= control target key end

     0   :  { %s3696_s1 = inlined_call_operand.vmem [shape: bf16[2,128,384], index: 1, kind: input, shape index: {}]   ;;  %s3697_s0 = inlined_call_operand.vmem [shape: f32[8,8,128], index: 0, kind: input, shape index: {}]   ;;  %s3698_s2 = inlined_call_operand.vmem [shape: f32[2,1,384], index: 2, kind: input, shape index: {}]   ;;  %s3699_s3 = inlined_call_operand.vmem [shape: bf16[128,128], index: 3, kind: input, shape index: {}]   ;;  %s3700_s4 = inlined_call_operand.vmem [shape: f32[1,128], index: 4, kind: input, shape index: {}]   ;;  %s3701_s5 = inlined_call_operand.vmem [shape: f32[10,8,128], index: 5, kind: output, shape index: {}]  }
   0x1   :  { %v2004_v0 = vld [vmem:[%s3696_s1 + $0xa8] sm:$0xf]  ;;  %v2197_v1 = vld [vmem:[%s3696_s1 + $0xb0] sm:$0xf0]  ;;  %v2196_v2 = vld [vmem:[%s3696_s1 + $0xac] sm:$0xf] }
   0x2   :  { %v2005_v3 = vor.u32 %v2197_v1, %v2004_v0  ;;  %v2006_v4 = vld [vmem:[%s3696_s1 + $0xb4] sm:$0xf0]  ;;  %v2012_v5 = vld [vmem:[%s3696_s1 + $0xb0] sm:$0xf]  ;;  %v2198_v6 = vld [vmem:[%s3696_s1 + $0xb8] sm:$0xf0] }
   0x3   :  { %v2009_v7 = vor.u32 %v2196_v2, %v2006_v4  ;;  %v2013_v8 = vor.u32 %v2198_v6, %v2012_v5  ;;  %v1992_v9 = vld [vmem:[%s3696_s1 + $0x90] sm:$0xf]  ;;  %v2194_v10 = vld [vmem:[%s3696_s1 + $0x98] sm:$0xf0]  ;;  %v2193_v11 = vld [vmem:[%s3696_s1 + $0x94] sm:$0xf] }
   0x4   :  { %200 = vmatpush.bf16.msra.mxu0 %v2005_v3  ;;  %v1993_v12 = vor.u32 %v2194_v10, %v1992_v9  ;;  %v1994_v13 = vld [vmem:[%s3696_s1 + $0x9c] sm:$0xf0]  ;;  %v2000_v14 = vld [vmem:[%s3696_s1 + $0x98] sm:$0xf]  ;;  %v2195_v15 = vld [vmem:[%s3696_s1 + $0xa0] sm:$0xf0]  ;;  %2231 = vmatpush.bf16.msra.mxu3 %v2005_v3 }
   0x5   :  { %229 = vmatpush.bf16.msra.mxu1 %v2009_v7  ;;  %258 = vmatpush.bf16.msra.mxu2 %v2013_v8  ;;  %v1997_v16 = vor.u32 %v2193_v11, %v1994_v13  ;;  %v2001_v17 = vor.u32 %v2195_v15, %v2000_v14  ;;  %v1980_v18 = vld [vmem:[%s3696_s1 + $0x78] sm:$0xf]  ;;  %v2191_v19 = vld [vmem:[%s3696_s1 + $0x80] sm:$0xf0]  ;;  %v2190_v20 = vld [vmem:[%s3696_s1 + $0x7c] sm:$0xf] }
   0x6   :  { %v1982_v21 = vld [vmem:[%s3696_s1 + $0x84] sm:$0xf0]  ;;  %v1988_v22 = vld [vmem:[%s3696_s1 + $0x80] sm:$0xf]  ;;  %v2192_v23 = vld [vmem:[%s3696_s1 + $0x88] sm:$0xf0]  ;;  %v1981_v24 = vor.u32 %v2191_v19, %v1980_v18 }
   0x7   :  { %v1985_v25 = vor.u32 %v2190_v20, %v1982_v21  ;;  %v1989_v26 = vor.u32 %v2192_v23, %v1988_v22  ;;  %v1968_v27 = vld [vmem:[%s3696_s1 + $0x60] sm:$0xf]  ;;  %v2188_v28 = vld [vmem:[%s3696_s1 + $0x68] sm:$0xf0]  ;;  %v2187_v29 = vld [vmem:[%s3696_s1 + $0x64] sm:$0xf] }
   0x8   :  { %201 = vmatpush.bf16.msra.mxu0 %v1993_v12  ;;  %2232 = vmatpush.bf16.msra.mxu3 %v1993_v12  ;;  %v1970_v30 = vld [vmem:[%s3696_s1 + $0x6c] sm:$0xf0]  ;;  %v1976_v31 = vld [vmem:[%s3696_s1 + $0x68] sm:$0xf]  ;;  %v2189_v32 = vld [vmem:[%s3696_s1 + $0x70] sm:$0xf0]  ;;  %v1969_v33 = vor.u32 %v2188_v28, %v1968_v27 }
   0x9   :  { %230 = vmatpush.bf16.msra.mxu1 %v1997_v16  ;;  %259 = vmatpush.bf16.msra.mxu2 %v2001_v17  ;;  %v1973_v34 = vor.u32 %v2187_v29, %v1970_v30  ;;  %v1977_v35 = vor.u32 %v2189_v32, %v1976_v31  ;;  %v1956_v36 = vld [vmem:[%s3696_s1 + $0x48] sm:$0xf]  ;;  %v2185_v37 = vld [vmem:[%s3696_s1 + $0x50] sm:$0xf0]  ;;  %v2184_v38 = vld [vmem:[%s3696_s1 + $0x4c] sm:$0xf] }
   0xa   :  { %v1958_v39 = vld [vmem:[%s3696_s1 + $0x54] sm:$0xf0]  ;;  %v1964_v40 = vld [vmem:[%s3696_s1 + $0x50] sm:$0xf]  ;;  %v2186_v41 = vld [vmem:[%s3696_s1 + $0x58] sm:$0xf0]  ;;  %v1957_v42 = vor.u32 %v2185_v37, %v1956_v36 }
   0xb   :  { %v1961_v43 = vor.u32 %v2184_v38, %v1958_v39  ;;  %v1965_v44 = vor.u32 %v2186_v41, %v1964_v40  ;;  %v1944_v45 = vld [vmem:[%s3696_s1 + $0x30] sm:$0xf]  ;;  %v2182_v46 = vld [vmem:[%s3696_s1 + $0x38] sm:$0xf0]  ;;  %v2181_v47 = vld [vmem:[%s3696_s1 + $0x34] sm:$0xf] }
   0xc   :  { %202 = vmatpush.bf16.msra.mxu0 %v1981_v24  ;;  %2233 = vmatpush.bf16.msra.mxu3 %v1981_v24  ;;  %v1946_v48 = vld [vmem:[%s3696_s1 + $0x3c] sm:$0xf0]  ;;  %v1952_v49 = vld [vmem:[%s3696_s1 + $0x38] sm:$0xf]  ;;  %v2183_v50 = vld [vmem:[%s3696_s1 + $0x40] sm:$0xf0]  ;;  %v1945_v51 = vor.u32 %v2182_v46, %v1944_v45 }
   0xd   :  { %231 = vmatpush.bf16.msra.mxu1 %v1985_v25  ;;  %260 = vmatpush.bf16.msra.mxu2 %v1989_v26  ;;  %v1949_v52 = vor.u32 %v2181_v47, %v1946_v48  ;;  %v1953_v53 = vor.u32 %v2183_v50, %v1952_v49  ;;  %v1932_v54 = vld [vmem:[%s3696_s1 + $0x18] sm:$0xf]  ;;  %v2179_v55 = vld [vmem:[%s3696_s1 + $0x20] sm:$0xf0]  ;;  %v2178_v56 = vld [vmem:[%s3696_s1 + $0x1c] sm:$0xf] }
   0xe   :  { %v1934_v57 = vld [vmem:[%s3696_s1 + $0x24] sm:$0xf0]  ;;  %v1940_v58 = vld [vmem:[%s3696_s1 + $0x20] sm:$0xf]  ;;  %v2180_v59 = vld [vmem:[%s3696_s1 + $0x28] sm:$0xf0]  ;;  %v1933_v60 = vor.u32 %v2179_v55, %v1932_v54 }
   0xf   :  { %v1937_v61 = vor.u32 %v2178_v56, %v1934_v57  ;;  %v1941_v62 = vor.u32 %v2180_v59, %v1940_v58  ;;  %v1920_v63 = vld [vmem:[%s3696_s1] sm:$0xf]  ;;  %v2176_v0 = vld [vmem:[%s3696_s1 + $0x8] sm:$0xf0]  ;;  %v2175_v1 = vld [vmem:[%s3696_s1 + $0x4] sm:$0xf] }
  0x10   :  { %203 = vmatpush.bf16.msra.mxu0 %v1969_v33  ;;  %2234 = vmatpush.bf16.msra.mxu3 %v1969_v33  ;;  %v1922_v2 = vld [vmem:[%s3696_s1 + $0xc] sm:$0xf0]  ;;  %v1928_v3 = vld [vmem:[%s3696_s1 + $0x8] sm:$0xf]  ;;  %v2177_v4 = vld [vmem:[%s3696_s1 + $0x10] sm:$0xf0]  ;;  %v1921_v6 = vor.u32 %v2176_v0, %v1920_v63 }
  0x11   :  { %232 = vmatpush.bf16.msra.mxu1 %v1973_v34  ;;  %261 = vmatpush.bf16.msra.mxu2 %v1977_v35  ;;  %v53_v5 = vld [vmem:[%s3697_s0] sm:$0xff]  ;;  %v54_v7 = vld [vmem:[%s3697_s0 + $0x8] sm:$0xff]  ;;  %v1925_v10 = vor.u32 %v2175_v1, %v1922_v2  ;;  %v1929_v11 = vor.u32 %v2177_v4, %v1928_v3  ;;  %v55_v14 = vld [vmem:[%s3697_s0 + $0x10] sm:$0xff] }
  0x12   :  { %v57_v8 = vld [vmem:[%s3697_s0 + $0x20] sm:$0xff]  ;;  %v58_v9 = vld [vmem:[%s3697_s0 + $0x28] sm:$0xff]  ;;  %v61_v12 = vpack.c.bf16 %v54_v7, %v53_v5  ;;  %v56_v15 = vld [vmem:[%s3697_s0 + $0x18] sm:$0xff] }
  0x13   :  { %v63_v13 = vpack.c.bf16 %v58_v9, %v57_v8  ;;  %v59_v16 = vld [vmem:[%s3697_s0 + $0x30] sm:$0xff]  ;;  %v60_v17 = vld [vmem:[%s3697_s0 + $0x38] sm:$0xff]  ;;  %v62_v18 = vpack.c.bf16 %v56_v15, %v55_v14  ;;  %v52_v20 = vld [vmem:[%s3698_s2] sm:$0x7] }
  0x14   :  { %204 = vmatpush.bf16.msra.mxu0 %v1957_v42  ;;  %2235 = vmatpush.bf16.msra.mxu3 %v1957_v42  ;;  %v64_v19 = vpack.c.bf16 %v60_v17, %v59_v16  ;;  %v2869_v21 = vperm.slane %v52_v20, 0  ;;  %v2871_v22 = vperm.slane %v52_v20, 1  ;;  %v2875_v29 = vperm.slane %v52_v20, 2 }
  0x15   :  { %233 = vmatpush.bf16.msra.mxu1 %v1961_v43  ;;  %262 = vmatpush.bf16.msra.mxu2 %v1965_v44 }
  0x18   :  { %205 = vmatpush.bf16.msra.mxu0 %v1945_v51  ;;  %2236 = vmatpush.bf16.msra.mxu3 %v1945_v51 }
  0x19   :  { %234 = vmatpush.bf16.msra.mxu1 %v1949_v52  ;;  %263 = vmatpush.bf16.msra.mxu2 %v1953_v53 }
  0x1c   :  { %206 = vmatpush.bf16.msra.mxu0 %v1933_v60  ;;  %2237 = vmatpush.bf16.msra.mxu3 %v1933_v60 }
  0x1d   :  { %235 = vmatpush.bf16.msra.mxu1 %v1937_v61  ;;  %264 = vmatpush.bf16.msra.mxu2 %v1941_v62 }
  0x20   :  { %207 = vmatpush.bf16.msra.mxu0 %v1921_v6  ;;  %2238 = vmatpush.bf16.msra.mxu3 %v1921_v6 }
  0x21   :  { %236 = vmatpush.bf16.msra.mxu1 %v1925_v10  ;;  %265 = vmatpush.bf16.msra.mxu2 %v1929_v11 }
  0x23   :  { %208 = vmatmul.bf16.vlgmr.msra.gmra.mxu0 %v61_v12  ;;  %218 = vmatmul.bf16.vlgmr.msra.gmra.mxu3 %v63_v13 }
  0x24   :  { %237 = vmatmul.bf16.vlgmr.msra.gmra.mxu1 %v61_v12  ;;  %266 = vmatmul.bf16.vlgmr.msra.gmra.mxu2 %v61_v12 }
  0x33   :  { %213 = vmatmul.bf16.gmra.mxu0 %v62_v18  ;;  %223 = vmatmul.bf16.gmra.mxu3 %v64_v19 }
  0x34   :  { %242 = vmatmul.bf16.gmra.mxu1 %v62_v18  ;;  %271 = vmatmul.bf16.gmra.mxu2 %v62_v18 }
  0x44   :  { %247 = vmatmul.bf16.gmra.mxu1 %v63_v13  ;;  %276 = vmatmul.bf16.gmra.mxu2 %v63_v13 }
  0x54   :  { %252 = vmatmul.bf16.gmra.mxu1 %v64_v19  ;;  %281 = vmatmul.bf16.gmra.mxu2 %v64_v19 }
  0xa0   :  { %v209_v23 = vpop.f32.mrf.mxu0 }
  0xa1   :  { %v210_v24 = vadd.f32 %v209_v23, %v2869_v21  ;;  %v238_v25 = vpop.f32.mrf.mxu1 }
  0xa2   :  { %v239_v26 = vadd.f32 %v238_v25, %v2871_v22 }
  0xa3   :  { %v287_v27 = vsub.f32 0.0, %v210_v24 }
  0xa4   :  { %v367_v28 = vsub.f32 0.0, %v239_v26 }
  0xa5   :  { %v303_v30 = vand.u32 2147483647, %v287_v27  ;;  %v295_v4 = vmax.f32 %v287_v27, 0.0 }
  0xa6   :  { %v383_v31 = vand.u32 2147483647, %v367_v28  ;;  %v375_v8 = vmax.f32 %v367_v28, 0.0 }
  0xa7   :  { %v311_v32 = vsub.f32 0.0, %v303_v30  ;;  %v267_v33 = vpop.f32.mrf.mxu2 }
  0xa8   :  { %v391_v34 = vsub.f32 0.0, %v383_v31  ;;  %v2878_v35 = vadd.f32 %v267_v33, %v2875_v29  ;;  %v211_v36 = vpop.f32.mrf.mxu0 }
  0xa9   :  { %v319_v37 = vmul.f32 1.442695, %v311_v32  ;;  %v212_v38 = vadd.f32 %v211_v36, %v2869_v21  ;;  %v240_v39 = vpop.f32.mrf.mxu1 }
  0xaa   :  { %v399_v40 = vmul.f32 1.442695, %v391_v34  ;;  %v583_v41 = vsub.f32 0.0, %v2878_v35  ;;  %v241_v43 = vadd.f32 %v240_v39, %v2871_v22  ;;  %vm543_vm0 = vcmp.ge.f32.partialorder %v2878_v35, 0.0 }
  0xab   :  { %2257 = vpow2.f32 %v319_v37  ;;  %v288_v42 = vsub.f32 0.0, %v212_v38  ;;  %v551_v38 = vmax.f32 %v2878_v35, 0.0  ;;  %v2217_v35 = vld [vmem:[%s3696_s1 + $0x154] sm:$0xf] }
  0xac   :  { %2259 = vpow2.f32 %v399_v40  ;;  %v599_v44 = vand.u32 2147483647, %v583_v41  ;;  %v368_v46 = vsub.f32 0.0, %v241_v43 }
  0xad   :  { %v304_v45 = vand.u32 2147483647, %v288_v42  ;;  %v296_v28 = vmax.f32 %v288_v42, 0.0 }
  0xae   :  { %v384_v48 = vand.u32 2147483647, %v368_v46  ;;  %v607_v51 = vsub.f32 0.0, %v599_v44  ;;  %v376_v31 = vmax.f32 %v368_v46, 0.0  ;;  %v2133_v44 = vld [vmem:[%s3696_s1 + $0x168] sm:$0xf] }
  0xaf   :  { %v312_v47 = vsub.f32 0.0, %v304_v45  ;;  %v269_v17 = vpop.f32.mrf.mxu2  ;;  %v2221_v45 = vld [vmem:[%s3696_s1 + $0x170] sm:$0xf0] }
  0xb0   :  { %v214_v49 = vpop.f32.mrf.mxu0  ;;  %v392_v53 = vsub.f32 0.0, %v384_v48  ;;  %v615_v60 = vmul.f32 1.442695, %v607_v51  ;;  %v2901_v25 = vadd.f32 %v269_v17, %v2875_v29  ;;  %v2220_v48 = vld [vmem:[%s3696_s1 + $0x16c] sm:$0xf]  ;;  %v2134_v51 = vor.u32 %v2221_v45, %v2133_v44 }
  0xb1   :  { %v2258_v50 = vpop.eup %2257  ;;  %v321_v52 = vmul.f32 1.442695, %v312_v47  ;;  %v243_v56 = vpop.f32.mrf.mxu1  ;;  %v2886_v59 = vadd.f32 %v214_v49, %v2869_v21  ;;  %v559_v47 = vadd.f32 0.5, %v551_v38  ;;  %v2135_v49 = vld [vmem:[%s3696_s1 + $0x174] sm:$0xf0] }
  0xb2   :  { %v2260_v54 = vpop.eup %2259  ;;  %v335_v55 = vadd.f32 1.0, %v2258_v50  ;;  %v401_v58 = vmul.f32 1.442695, %v392_v53  ;;  %v2889_v61 = vadd.f32 %v243_v56, %v2871_v22  ;;  %v584_v37 = vsub.f32 0.0, %v2901_v25  ;;  %1051 = vmatpush.bf16.msrb.mxu3 %v2134_v51 }
  0xb3   :  { %v415_v57 = vadd.f32 1.0, %v2260_v54  ;;  %2261 = vpow2.f32 %v321_v52  ;;  %v289_v62 = vsub.f32 0.0, %v2886_v59  ;;  %v2123_v59 = vld [vmem:[%s3696_s1 + $0x15c] sm:$0xf0]  ;;  %vm544_vm1 = vcmp.ge.f32.partialorder %v2901_v25, 0.0 }
  0xb4   :  { %2263 = vlog2.f32 %v335_v55  ;;  %v369_v0 = vsub.f32 0.0, %v2889_v61  ;;  %v600_v42 = vand.u32 2147483647, %v584_v37 }
  0xb5   :  { %2265 = vlog2.f32 %v415_v57  ;;  %v305_v6 = vand.u32 2147483647, %v289_v62  ;;  %v297_v38 = vmax.f32 %v289_v62, 0.0 }
  0xb6   :  { %2267 = vpow2.f32 %v401_v58  ;;  %v385_v12 = vand.u32 2147483647, %v369_v0  ;;  %v608_v58 = vsub.f32 0.0, %v600_v42 }
  0xb7   :  { %2269 = vpow2.f32 %v615_v60  ;;  %v313_v15 = vsub.f32 0.0, %v305_v6  ;;  %v2138_v60 = vor.u32 %v2220_v48, %v2135_v49  ;;  %v2109_v49 = vld [vmem:[%s3696_s1 + $0x138] sm:$0xf] }
  0xb8   :  { %v393_v18 = vsub.f32 0.0, %v385_v12  ;;  %v216_v43 = vpop.f32.mrf.mxu0 }
  0xb9   :  { %v2262_v63 = vpop.eup %2261  ;;  %v323_v26 = vmul.f32 1.442695, %v313_v15  ;;  %v2923_v54 = vadd.f32 %v216_v43, %v2869_v21  ;;  %v245_v55 = vpop.f32.mrf.mxu1  ;;  %1084 = vmatpush.bf16.msrb.mxu0 %v2138_v60 }
  0xba   :  { %v2264_v1 = vpop.eup %2263  ;;  %v336_v2 = vadd.f32 1.0, %v2262_v63  ;;  %v403_v32 = vmul.f32 1.442695, %v393_v18  ;;  %v591_v63 = vmax.f32 %v583_v41, 0.0  ;;  %v2121_v41 = vld [vmem:[%s3696_s1 + $0x150] sm:$0xf] }
  0xbb   :  { %v2266_v3 = vpop.eup %2265  ;;  %v344_v5 = vmul.f32 0.6931472, %v2264_v1  ;;  %v290_v6 = vsub.f32 0.0, %v2923_v54 }
  0xbc   :  { %v2268_v7 = vpop.eup %2267  ;;  %v424_v9 = vmul.f32 0.6931472, %v2266_v3  ;;  %2271 = vlog2.f32 %v336_v2  ;;  %v2928_v3 = vadd.f32 %v245_v55, %v2871_v22  ;;  %v2111_v55 = vld [vmem:[%s3696_s1 + $0x144] sm:$0xf0] }
  0xbd   :  { %v359_v10 = vadd.f32 %v344_v5, %v295_v4  ;;  %v416_v11 = vadd.f32 1.0, %v2268_v7  ;;  %v2270_v14 = vpop.eup %2269  ;;  %v617_v7 = vmul.f32 1.442695, %v608_v58 }
  0xbe   :  { %v439_v13 = vadd.f32 %v424_v9, %v375_v8  ;;  %v631_v23 = vadd.f32 1.0, %v2270_v14  ;;  %v370_v9 = vsub.f32 0.0, %v2928_v3 }
  0xbf   :  { %2273 = vlog2.f32 %v416_v11 }
  0xc0   :  { %v2897_v16 = vsub.f32 %v359_v10, %v439_v13  ;;  %2275 = vlog2.f32 %v631_v23  ;;  %v2218_v10 = vld [vmem:[%s3696_s1 + $0x158] sm:$0xf0]  ;;  %v306_v13 = vand.u32 2147483647, %v290_v6  ;;  %v386_v23 = vand.u32 2147483647, %v370_v9 }
  0xc1   :  { %2277 = vpow2.f32 %v323_v26  ;;  %v2122_v18 = vor.u32 %v2218_v10, %v2121_v41 }
  0xc2   :  { %v2272_v19 = vpop.eup %2271  ;;  %v463_v20 = vand.u32 2147483647, %v2897_v16  ;;  %v455_v15 = vmax.f32 %v2897_v16, 0.0  ;;  %v394_v42 = vsub.f32 0.0, %v386_v23 }
  0xc3   :  { %v346_v24 = vmul.f32 0.6931472, %v2272_v19  ;;  %1052 = vmatpush.bf16.msrb.mxu3 %v2122_v18  ;;  %v2208_v18 = vld [vmem:[%s3696_s1 + $0x10c] sm:$0xf] }
  0xc4   :  { %v471_v27 = vsub.f32 0.0, %v463_v20  ;;  %v405_v48 = vmul.f32 1.442695, %v394_v42 }
  0xc5   :  { %v2274_v30 = vpop.eup %2273  ;;  %v360_v34 = vadd.f32 %v346_v24, %v296_v28  ;;  %v272_v24 = vpop.f32.mrf.mxu2 }
  0xc6   :  { %v479_v33 = vmul.f32 1.442695, %v471_v27  ;;  %v426_v36 = vmul.f32 0.6931472, %v2274_v30  ;;  %v2276_v46 = vpop.eup %2275  ;;  %v314_v27 = vsub.f32 0.0, %v306_v13 }
  0xc7   :  { %v2278_v50 = vpop.eup %2277  ;;  %v640_v1 = vmul.f32 0.6931472, %v2276_v46 }
  0xc8   :  { %2279 = vpow2.f32 %v479_v33  ;;  %v440_v39 = vadd.f32 %v426_v36, %v376_v31  ;;  %v337_v2 = vadd.f32 1.0, %v2278_v50  ;;  %v2946_v33 = vadd.f32 %v272_v24, %v2875_v29  ;;  %v2215_v50 = vld [vmem:[%s3696_s1 + $0x140] sm:$0xf0]  ;;  %v219_v24 = vpop.f32.mrf.mxu3 }
  0xc9   :  { %2281 = vpow2.f32 %v403_v32  ;;  %v655_v8 = vadd.f32 %v640_v1, %v591_v63  ;;  %v2097_v63 = vld [vmem:[%s3696_s1 + $0x120] sm:$0xf]  ;;  %v2212_v1 = vld [vmem:[%s3696_s1 + $0x128] sm:$0xf0] }
  0xca   :  { %v2905_v40 = vsub.f32 %v360_v34, %v440_v39  ;;  %2283 = vlog2.f32 %v559_v47  ;;  %v377_v39 = vmax.f32 %v369_v0, 0.0  ;;  %v585_v47 = vsub.f32 0.0, %v2946_v33 }
  0xcb   :  { %v663_v20 = vsub.f32 0.0, %v655_v8  ;;  %vm545_vm2 = vcmp.ge.f32.partialorder %v2946_v33, 0.0 }
  0xcc   :  { %v464_v53 = vand.u32 2147483647, %v2905_v40  ;;  %v601_v41 = vand.u32 2147483647, %v585_v47 }
  0xce   :  { %v2280_v52 = vpop.eup %2279  ;;  %v472_v4 = vsub.f32 0.0, %v464_v53  ;;  %v2214_v53 = vld [vmem:[%s3696_s1 + $0x13c] sm:$0xf]  ;;  %v609_v23 = vsub.f32 0.0, %v601_v41  ;;  %v2200_v41 = vld [vmem:[%s3696_s1 + $0xc8] sm:$0xf0] }
  0xcf   :  { %v2282_v56 = vpop.eup %2281  ;;  %v495_v57 = vadd.f32 1.0, %v2280_v52  ;;  %v2126_v52 = vor.u32 %v2217_v35, %v2123_v59 }
  0xd0   :  { %v417_v5 = vadd.f32 1.0, %v2282_v56  ;;  %v2284_v11 = vpop.eup %2283  ;;  %v481_v12 = vmul.f32 1.442695, %v472_v4  ;;  %v2114_v4 = vor.u32 %v2214_v53, %v2111_v55  ;;  %v2061_v53 = vld [vmem:[%s3696_s1 + $0xd8] sm:$0xf] }
  0xd1   :  { %2285 = vlog2.f32 %v495_v57  ;;  %v568_v19 = vmul.f32 0.6931472, %v2284_v11  ;;  %1085 = vmatpush.bf16.msrb.mxu0 %v2126_v52  ;;  %v2098_v11 = vor.u32 %v2212_v1, %v2097_v63  ;;  %v2203_v55 = vld [vmem:[%s3696_s1 + $0xe0] sm:$0xf0]  ;;  %v456_v63 = vmax.f32 %v2905_v40, 0.0 }
  0xd2   :  { %2287 = vlog2.f32 %v337_v2  ;;  %v2110_v2 = vor.u32 %v2215_v50, %v2109_v49 }
  0xd3   :  { %2289 = vlog2.f32 %v417_v5  ;;  %v671_v36 = vsel %vm543_vm0, %v568_v19, %v663_v20  ;;  %v2211_v5 = vld [vmem:[%s3696_s1 + $0x124] sm:$0xf]  ;;  %v2087_v19 = vld [vmem:[%s3696_s1 + $0x114] sm:$0xf0] }
  0xd4   :  { %2291 = vpow2.f32 %v617_v7  ;;  %v2099_v7 = vld [vmem:[%s3696_s1 + $0x12c] sm:$0xf0]  ;;  %1053 = vmatpush.bf16.msrb.mxu3 %v2110_v2 }
  0xd5   :  { %2293 = vpow2.f32 %v481_v12  ;;  %v552_v12 = vmax.f32 %v2901_v25, 0.0  ;;  %1086 = vmatpush.bf16.msrb.mxu0 %v2114_v4  ;;  %v2102_v13 = vor.u32 %v2211_v5, %v2099_v7 }
  0xd7   :  { %v2286_v14 = vpop.eup %2285 }
  0xd8   :  { %v504_v17 = vmul.f32 0.6931472, %v2286_v14  ;;  %v2288_v28 = vpop.eup %2287  ;;  %v2085_v14 = vld [vmem:[%s3696_s1 + $0x108] sm:$0xf]  ;;  %1054 = vmatpush.bf16.msrb.mxu3 %v2098_v11 }
  0xd9   :  { %v2290_v30 = vpop.eup %2289  ;;  %v348_v45 = vmul.f32 0.6931472, %v2288_v28  ;;  %v3008_v28 = vadd.f32 %v219_v24, %v2869_v21  ;;  %1087 = vmatpush.bf16.msrb.mxu0 %v2102_v13  ;;  %v2051_v13 = vld [vmem:[%s3696_s1 + $0xcc] sm:$0xf0] }
  0xda   :  { %v519_v26 = vadd.f32 %v504_v17, %v455_v15  ;;  %v2292_v34 = vpop.eup %2291  ;;  %v428_v46 = vmul.f32 0.6931472, %v2290_v30  ;;  %v2209_v15 = vld [vmem:[%s3696_s1 + $0x110] sm:$0xf0] }
  0xdb   :  { %v2294_v62 = vpop.eup %2293  ;;  %v632_v0 = vadd.f32 1.0, %v2292_v34  ;;  %v361_v57 = vadd.f32 %v348_v45, %v297_v38  ;;  %v2086_v30 = vor.u32 %v2209_v15, %v2085_v14  ;;  %v2090_v34 = vor.u32 %v2208_v18, %v2087_v19  ;;  %v2206_v38 = vld [vmem:[%s3696_s1 + $0xf8] sm:$0xf0]  ;;  %v2205_v45 = vld [vmem:[%s3696_s1 + $0xf4] sm:$0xf] }
  0xdc   :  { %v527_v31 = vsub.f32 0.0, %v519_v26  ;;  %v535_v32 = vsub.f32 %v2897_v16, %v519_v26  ;;  %v325_v16 = vmul.f32 1.442695, %v314_v27  ;;  %v496_v56 = vadd.f32 1.0, %v2294_v62 }
  0xdd   :  { %v441_v58 = vadd.f32 %v428_v46, %v377_v39  ;;  %v291_v49 = vsub.f32 0.0, %v3008_v28  ;;  %1055 = vmatpush.bf16.msrb.mxu3 %v2086_v30  ;;  %1088 = vmatpush.bf16.msrb.mxu0 %v2090_v34  ;;  %v2093_v28 = vld [vmem:[%s3696_s1 + $0x110] sm:$0xf] }
  0xde   :  { %v2952_v43 = vadd.f32 %v671_v36, %v535_v32  ;;  %v2954_v44 = vadd.f32 -0.6931472, %v527_v31  ;;  %2295 = vpow2.f32 %v325_v16  ;;  %v560_v31 = vadd.f32 0.5, %v552_v12  ;;  %v248_v32 = vpop.f32.mrf.mxu1  ;;  %v2073_v36 = vld [vmem:[%s3696_s1 + $0xf0] sm:$0xf] }
  0xdf   :  { %2297 = vlog2.f32 %v632_v0  ;;  %v2991_v10 = vsub.f32 %v361_v57, %v441_v58  ;;  %v3017_v42 = vadd.f32 %v248_v32, %v2871_v22  ;;  %v2075_v16 = vld [vmem:[%s3696_s1 + $0xfc] sm:$0xf0]  ;;  %v2074_v50 = vor.u32 %v2206_v38, %v2073_v36  ;;  %v2202_v58 = vld [vmem:[%s3696_s1 + $0xdc] sm:$0xf]  ;;  %v2199_v12 = vld [vmem:[%s3696_s1 + $0xc4] sm:$0xf] }
  0xe0   :  { %v709_v61 = vsub.f32 %v2954_v44, %v2952_v43  ;;  %2299 = vpow2.f32 %v405_v48  ;;  %v2078_v52 = vor.u32 %v2205_v45, %v2075_v16  ;;  %v307_v4 = vand.u32 2147483647, %v291_v49 }
  0xe1   :  { %2301 = vlog2.f32 %v496_v56  ;;  %v465_v27 = vand.u32 2147483647, %v2991_v10  ;;  %v592_v56 = vmax.f32 %v584_v37, 0.0  ;;  %v371_v57 = vsub.f32 0.0, %v3017_v42  ;;  %1056 = vmatpush.bf16.msrb.mxu3 %v2074_v50 }
  0xe2   :  { %v710_v51 = vand.u32 2147483647, %v709_v61  ;;  %v619_v61 = vmul.f32 1.442695, %v609_v23  ;;  %v2062_v37 = vor.u32 %v2203_v55, %v2061_v53  ;;  %1089 = vmatpush.bf16.msrb.mxu0 %v2078_v52  ;;  %v315_v18 = vsub.f32 0.0, %v307_v4 }
  0xe3   :  { %v473_v48 = vsub.f32 0.0, %v465_v27  ;;  %v387_v11 = vand.u32 2147483647, %v371_v57  ;;  %v708_v23 = vmax.f32 %v2954_v44, %v2952_v43  ;;  %v274_v27 = vpop.f32.mrf.mxu2  ;;  %v2054_v30 = vor.u32 %v2199_v12, %v2051_v13 }
  0xe4   :  { %v711_v60 = vsub.f32 0.0, %v710_v51  ;;  %v2296_v17 = vpop.eup %2295  ;;  %v378_v43 = vmax.f32 %v370_v9, 0.0  ;;  %v2667_v9 = vmov -1.0   ;;  %v553_v55 = vmax.f32 %v2946_v33, 0.0 }
  0xe5   :  { %v2298_v20 = vpop.eup %2297  ;;  %v338_v59 = vadd.f32 1.0, %v2296_v17  ;;  %v483_v2 = vmul.f32 1.442695, %v473_v48  ;;  %1057 = vmatpush.bf16.msrb.mxu3 %v2062_v37  ;;  %v395_v32 = vsub.f32 0.0, %v387_v11 }
  0xe6   :  { %v712_v8 = vmul.f32 1.442695, %v711_v60  ;;  %v2300_v26 = vpop.eup %2299  ;;  %v642_v35 = vmul.f32 0.6931472, %v2298_v20  ;;  %v2063_v60 = vld [vmem:[%s3696_s1 + $0xe4] sm:$0xf0] }
  0xe7   :  { %v2302_v39 = vpop.eup %2301  ;;  %v418_v62 = vadd.f32 1.0, %v2300_v26  ;;  %v2066_v7 = vor.u32 %v2202_v58, %v2063_v60  ;;  %v407_v54 = vmul.f32 1.442695, %v395_v32  ;;  %v561_v37 = vadd.f32 0.5, %v553_v55 }
  0xe8   :  { %2303 = vpow2.f32 %v712_v8  ;;  %v506_v51 = vmul.f32 0.6931472, %v2302_v39  ;;  %v656_v1 = vadd.f32 %v642_v35, %v592_v56  ;;  %v2049_v8 = vld [vmem:[%s3696_s1 + $0xc0] sm:$0xf]  ;;  %v298_v39 = vmax.f32 %v290_v6, 0.0 }
  0xe9   :  { %2305 = vlog2.f32 %v560_v31  ;;  %v2050_v19 = vor.u32 %v2200_v41, %v2049_v8  ;;  %1090 = vmatpush.bf16.msrb.mxu0 %v2066_v7  ;;  %v2141_v8 = vld [vmem:[%s3696_s1 + $0x170] sm:$0xf]  ;;  %v2222_v41 = vld [vmem:[%s3696_s1 + $0x178] sm:$0xf0] }
  0xea   :  { %v520_v5 = vadd.f32 %v506_v51, %v456_v63  ;;  %v664_v17 = vsub.f32 0.0, %v656_v1 }
  0xeb   :  { %1058 = vmatpush.bf16.msrb.mxu3 %v2050_v19  ;;  %v593_v19 = vmax.f32 %v585_v47, 0.0 }
  0xec   :  { %v536_v26 = vsub.f32 %v2905_v40, %v520_v5  ;;  %v528_v38 = vsub.f32 0.0, %v520_v5  ;;  %v3067_v40 = vadd.f32 %v274_v27, %v2875_v29  ;;  %v2219_v27 = vld [vmem:[%s3696_s1 + $0x160] sm:$0xf0] }
  0xed   :  { %1091 = vmatpush.bf16.msrb.mxu0 %v2054_v30 }
  0xee   :  { %v2304_v46 = vpop.eup %2303  ;;  %v586_v48 = vsub.f32 0.0, %v3067_v40  ;;  %vm546_vm3 = vcmp.ge.f32.partialorder %v3067_v40, 0.0 }
  0xef   :  { %v714_v0 = vadd.f32 1.0, %v2304_v46  ;;  %v2306_v14 = vpop.eup %2305 }
  0xf0   :  { %v570_v31 = vmul.f32 0.6931472, %v2306_v14  ;;  %v602_v60 = vand.u32 2147483647, %v586_v48  ;;  %v2142_v14 = vor.u32 %v2222_v41, %v2141_v8 }
  0xf1   :  { %2307 = vlog2.f32 %v714_v0 }
  0xf2   :  { %2309 = vlog2.f32 %v338_v59  ;;  %v672_v16 = vsel %vm544_vm1, %v570_v31, %v664_v17  ;;  %v327_v59 = vmul.f32 1.442695, %v315_v18  ;;  %v610_v12 = vsub.f32 0.0, %v602_v60  ;;  %v250_v18 = vpop.f32.mrf.mxu1  ;;  %2239 = vmatpush.bf16.msrb.mxu1 %v2142_v14  ;;  %1117 = vmatpush.bf16.msra.mxu0 %v2142_v14 }
  0xf3   :  { %2311 = vlog2.f32 %v418_v62  ;;  %v3069_v44 = vadd.f32 %v672_v16, %v536_v26  ;;  %v2129_v26 = vld [vmem:[%s3696_s1 + $0x158] sm:$0xf] }
  0xf4   :  { %2313 = vpow2.f32 %v619_v61  ;;  %v621_v31 = vmul.f32 1.442695, %v610_v12 }
  0xf5   :  { %2315 = vpow2.f32 %v483_v2  ;;  %v221_v2 = vpop.f32.mrf.mxu3 }
  0xf6   :  { %2317 = vpow2.f32 %v2667_v9  ;;  %v3093_v13 = vadd.f32 %v221_v2, %v2869_v21 }
  0xf7   :  { %v2308_v15 = vpop.eup %2307 }
  0xf8   :  { %v2310_v20 = vpop.eup %2309  ;;  %v716_v24 = vmul.f32 0.6931472, %v2308_v15  ;;  %v292_v32 = vsub.f32 0.0, %v3093_v13 }
  0xf9   :  { %v2312_v34 = vpop.eup %2311  ;;  %v350_v35 = vmul.f32 0.6931472, %v2310_v20 }
  0xfa   :  { %v717_v36 = vadd.f32 %v716_v24, %v708_v23  ;;  %v2314_v45 = vpop.eup %2313  ;;  %v430_v62 = vmul.f32 0.6931472, %v2312_v34  ;;  %v3108_v34 = vadd.f32 %v250_v18, %v2871_v22 }
  0xfb   :  { %v2316_v25 = vpop.eup %2315  ;;  %v633_v3 = vadd.f32 1.0, %v2314_v45  ;;  %v362_v51 = vadd.f32 %v350_v35, %v298_v39  ;;  %v457_v39 = vmax.f32 %v2991_v10, 0.0 }
  0xfc   :  { %v3071_v46 = vadd.f32 %v717_v36, %v528_v38  ;;  %v842_v6 = vmul.f32 1.442695, %v717_v36  ;;  %v497_v50 = vadd.f32 1.0, %v2316_v25  ;;  %v442_v52 = vadd.f32 %v430_v62, %v378_v43  ;;  %v3077_v56 = vpop.eup %2317  ;;  %v2117_v43 = vld [vmem:[%s3696_s1 + $0x140] sm:$0xf] }
  0xfd   :  { %v2130_v38 = vor.u32 %v2219_v27, %v2129_v26  ;;  %v2216_v25 = vld [vmem:[%s3696_s1 + $0x148] sm:$0xf0] }
  0xfe   :  { %v725_v61 = vsub.f32 %v3071_v46, %v3069_v44  ;;  %2319 = vpow2.f32 %v842_v6  ;;  %v3081_v1 = vsub.f32 %v362_v51, %v442_v52  ;;  %v2118_v6 = vor.u32 %v2216_v25, %v2117_v43 }
  0xff   :  { %2321 = vpow2.f32 %v327_v59  ;;  %2240 = vmatpush.bf16.msrb.mxu1 %v2130_v38  ;;  %1118 = vmatpush.bf16.msra.mxu0 %v2130_v38  ;;  %v308_v59 = vand.u32 2147483647, %v292_v32  ;;  %v724_v2 = vmax.f32 %v3071_v46, %v3069_v44 }
 0x100   :  { %v726_v0 = vand.u32 2147483647, %v725_v61  ;;  %2323 = vpow2.f32 %v407_v54  ;;  %v466_v15 = vand.u32 2147483647, %v3081_v1  ;;  %v372_v54 = vsub.f32 0.0, %v3108_v34 }
 0x101   :  { %2325 = vlog2.f32 %v633_v3  ;;  %v316_v52 = vsub.f32 0.0, %v308_v59 }
 0x102   :  { %v727_v53 = vsub.f32 0.0, %v726_v0  ;;  %2327 = vlog2.f32 %v497_v50  ;;  %v474_v36 = vsub.f32 0.0, %v466_v15  ;;  %v2105_v50 = vld [vmem:[%s3696_s1 + $0x128] sm:$0xf]  ;;  %v388_v60 = vand.u32 2147483647, %v372_v54  ;;  %v277_v15 = vpop.f32.mrf.mxu2 }
 0x103   :  { %2241 = vmatpush.bf16.msrb.mxu1 %v2118_v6  ;;  %1119 = vmatpush.bf16.msra.mxu0 %v2118_v6  ;;  %v329_v18 = vmul.f32 1.442695, %v316_v52  ;;  %v2057_v6 = vld [vmem:[%s3696_s1 + $0xc8] sm:$0xf] }
 0x104   :  { %v728_v58 = vmul.f32 1.442695, %v727_v53  ;;  %v2320_v63 = vpop.eup %2319  ;;  %v485_v62 = vmul.f32 1.442695, %v474_v36  ;;  %v2213_v53 = vld [vmem:[%s3696_s1 + $0x130] sm:$0xf0] }
 0x105   :  { %v2322_v4 = vpop.eup %2321  ;;  %v3084_v7 = vpack.c.bf16 %v2320_v63, %v3077_v56  ;;  %v2106_v63 = vor.u32 %v2213_v53, %v2105_v50  ;;  %v396_v42 = vsub.f32 0.0, %v388_v60  ;;  %v554_v36 = vmax.f32 %v3067_v40, 0.0 }
 0x106   :  { %2329 = vpow2.f32 %v728_v58  ;;  %v2324_v5 = vpop.eup %2323  ;;  %v339_v17 = vadd.f32 1.0, %v2322_v4  ;;  %v299_v58 = vmax.f32 %v291_v49, 0.0  ;;  %v2210_v49 = vld [vmem:[%s3696_s1 + $0x118] sm:$0xf0] }
 0x107   :  { %v2326_v11 = vpop.eup %2325  ;;  %1059 = vmatmul.bf16.vlgmr.msrb.gmra.mxu3 %v3084_v7  ;;  %1092 = vmatmul.bf16.vlgmr.msrb.gmra.mxu0 %v3084_v7  ;;  %2331 = vlog2.f32 %v561_v37  ;;  %v419_v20 = vadd.f32 1.0, %v2324_v5  ;;  %v379_v37 = vmax.f32 %v371_v57, 0.0 }
 0x108   :  { %v2328_v23 = vpop.eup %2327  ;;  %v644_v24 = vmul.f32 0.6931472, %v2326_v11  ;;  %2333 = vlog2.f32 %v339_v17  ;;  %2242 = vmatpush.bf16.msrb.mxu1 %v2106_v63  ;;  %1120 = vmatpush.bf16.msra.mxu0 %v2106_v63  ;;  %v2094_v11 = vor.u32 %v2210_v49, %v2093_v28  ;;  %v594_v63 = vmax.f32 %v586_v48, 0.0 }
 0x109   :  { %v508_v45 = vmul.f32 0.6931472, %v2328_v23  ;;  %2335 = vlog2.f32 %v419_v20  ;;  %v2081_v20 = vld [vmem:[%s3696_s1 + $0xf8] sm:$0xf]  ;;  %v2207_v23 = vld [vmem:[%s3696_s1 + $0x100] sm:$0xf0] }
 0x10a   :  { %v657_v16 = vadd.f32 %v644_v24, %v593_v19  ;;  %v3150_v19 = vadd.f32 %v277_v15, %v2875_v29  ;;  %v458_v48 = vmax.f32 %v3081_v1, 0.0  ;;  %v279_v40 = vpop.f32.mrf.mxu2 }
 0x10b   :  { %v521_v61 = vadd.f32 %v508_v45, %v457_v39  ;;  %v2069_v45 = vld [vmem:[%s3696_s1 + $0xe0] sm:$0xf] }
 0x10c   :  { %v2330_v30 = vpop.eup %2329  ;;  %v665_v0 = vsub.f32 0.0, %v657_v16  ;;  %2243 = vmatpush.bf16.msrb.mxu1 %v2094_v11  ;;  %1121 = vmatpush.bf16.msra.mxu0 %v2094_v11  ;;  %v587_v39 = vsub.f32 0.0, %v3150_v19  ;;  %v2204_v16 = vld [vmem:[%s3696_s1 + $0xe8] sm:$0xf0]  ;;  %vm547_vm4 = vcmp.ge.f32.partialorder %v3150_v19, 0.0 }
 0x10d   :  { %v730_v47 = vadd.f32 1.0, %v2330_v30  ;;  %v2332_v35 = vpop.eup %2331  ;;  %v537_v33 = vsub.f32 %v2991_v10, %v521_v61  ;;  %v529_v46 = vsub.f32 0.0, %v521_v61  ;;  %v2082_v30 = vor.u32 %v2207_v23, %v2081_v20  ;;  %v2201_v61 = vld [vmem:[%s3696_s1 + $0xd0] sm:$0xf0] }
 0x10e   :  { %v2334_v3 = vpop.eup %2333  ;;  %v572_v9 = vmul.f32 0.6931472, %v2332_v35  ;;  %v2070_v59 = vor.u32 %v2204_v16, %v2069_v45 }
 0x10f   :  { %2337 = vlog2.f32 %v730_v47  ;;  %v2336_v51 = vpop.eup %2335  ;;  %v352_v41 = vmul.f32 0.6931472, %v2334_v3  ;;  %v562_v3 = vadd.f32 0.5, %v554_v36 }
 0x110   :  { %2339 = vpow2.f32 %v621_v31  ;;  %v673_v8 = vsel %vm545_vm2, %v572_v9, %v665_v0  ;;  %v432_v10 = vmul.f32 0.6931472, %v2336_v51  ;;  %v409_v31 = vmul.f32 1.442695, %v396_v42  ;;  %2244 = vmatpush.bf16.msrb.mxu1 %v2082_v30  ;;  %1122 = vmatpush.bf16.msra.mxu0 %v2082_v30 }
 0x111   :  { %2341 = vpow2.f32 %v485_v62  ;;  %v3144_v57 = vadd.f32 %v673_v8, %v537_v33  ;;  %v363_v26 = vadd.f32 %v352_v41, %v299_v58  ;;  %v603_v62 = vand.u32 2147483647, %v587_v39  ;;  %v253_v8 = vpop.f32.mrf.mxu1 }
 0x112   :  { %v443_v27 = vadd.f32 %v432_v10, %v379_v37  ;;  %2343 = vpow2.f32 %v329_v18  ;;  %v2058_v0 = vor.u32 %v2201_v61, %v2057_v6  ;;  %v3185_v49 = vadd.f32 %v253_v8, %v2871_v22 }
 0x113   :  { %v611_v53 = vsub.f32 0.0, %v603_v62  ;;  %v300_v62 = vmax.f32 %v292_v32, 0.0  ;;  %v380_v61 = vmax.f32 %v372_v54, 0.0 }
 0x114   :  { %v3168_v35 = vsub.f32 %v363_v26, %v443_v27  ;;  %2245 = vmatpush.bf16.msrb.mxu1 %v2070_v59  ;;  %1123 = vmatpush.bf16.msra.mxu0 %v2070_v59  ;;  %v373_v15 = vsub.f32 0.0, %v3185_v49 }
 0x115   :  { %v2338_v55 = vpop.eup %2337  ;;  %v623_v28 = vmul.f32 1.442695, %v611_v53 }
 0x116   :  { %v732_v4 = vmul.f32 0.6931472, %v2338_v55  ;;  %v2340_v5 = vpop.eup %2339  ;;  %v467_v9 = vand.u32 2147483647, %v3168_v35  ;;  %v389_v27 = vand.u32 2147483647, %v373_v15 }
 0x117   :  { %v634_v14 = vadd.f32 1.0, %v2340_v5  ;;  %v2342_v17 = vpop.eup %2341 }
 0x118   :  { %v3142_v44 = vadd.f32 %v732_v4, %v724_v2  ;;  %v498_v38 = vadd.f32 1.0, %v2342_v17  ;;  %v2344_v50 = vpop.eup %2343  ;;  %2246 = vmatpush.bf16.msrb.mxu1 %v2058_v0  ;;  %1124 = vmatpush.bf16.msra.mxu0 %v2058_v0  ;;  %v475_v55 = vsub.f32 0.0, %v467_v9  ;;  %v224_v4 = vpop.f32.mrf.mxu3 }
 0x119   :  { %2345 = vlog2.f32 %v634_v14  ;;  %v340_v58 = vadd.f32 1.0, %v2344_v50  ;;  %v3182_v5 = vadd.f32 %v224_v4, %v2869_v21  ;;  %v3207_v50 = vadd.f32 %v279_v40, %v2875_v29 }
 0x11a   :  { %v3147_v12 = vadd.f32 %v3142_v44, %v529_v46  ;;  %2347 = vpow2.f32 %v409_v31  ;;  %v487_v10 = vmul.f32 1.442695, %v475_v55  ;;  %v844_v54 = vmul.f32 1.442695, %v3142_v44 }
 0x11b   :  { %2349 = vlog2.f32 %v498_v38  ;;  %v293_v14 = vsub.f32 0.0, %v3182_v5  ;;  %v588_v55 = vsub.f32 0.0, %v3207_v50  ;;  %vm548_vm5 = vcmp.ge.f32.partialorder %v3207_v50, 0.0 }
 0x11c   :  { %v741_v24 = vsub.f32 %v3147_v12, %v3144_v57  ;;  %v740_v31 = vmax.f32 %v3147_v12, %v3144_v57 }
 0x11e   :  { %v742_v47 = vand.u32 2147483647, %v741_v24  ;;  %v309_v24 = vand.u32 2147483647, %v293_v14 }
 0x11f   :  { %v2346_v51 = vpop.eup %2345 }
 0x120   :  { %v743_v43 = vsub.f32 0.0, %v742_v47  ;;  %v2348_v52 = vpop.eup %2347  ;;  %v646_v2 = vmul.f32 0.6931472, %v2346_v51 }
 0x121   :  { %v2350_v60 = vpop.eup %2349  ;;  %v420_v37 = vadd.f32 1.0, %v2348_v52 }
 0x122   :  { %v744_v25 = vmul.f32 1.442695, %v743_v43  ;;  %v510_v46 = vmul.f32 0.6931472, %v2350_v60  ;;  %v658_v11 = vadd.f32 %v646_v2, %v594_v63  ;;  %v555_v63 = vmax.f32 %v3150_v19, 0.0 }
 0x124   :  { %2351 = vpow2.f32 %v744_v25  ;;  %v522_v17 = vadd.f32 %v510_v46, %v458_v48  ;;  %v666_v20 = vsub.f32 0.0, %v658_v11  ;;  %v317_v25 = vsub.f32 0.0, %v309_v24  ;;  %v255_v24 = vpop.f32.mrf.mxu1 }
 0x125   :  { %2353 = vlog2.f32 %v562_v3  ;;  %v397_v3 = vsub.f32 0.0, %v389_v27  ;;  %v563_v44 = vadd.f32 0.5, %v555_v63  ;;  %v595_v48 = vmax.f32 %v587_v39, 0.0 }
 0x126   :  { %2355 = vlog2.f32 %v340_v58  ;;  %v538_v36 = vsub.f32 %v3081_v1, %v522_v17  ;;  %v530_v59 = vsub.f32 0.0, %v522_v17  ;;  %v331_v13 = vmul.f32 1.442695, %v317_v25 }
 0x127   :  { %v411_v52 = vmul.f32 1.442695, %v397_v3 }
 0x12a   :  { %v2352_v33 = vpop.eup %2351 }
 0x12b   :  { %v746_v41 = vadd.f32 1.0, %v2352_v33  ;;  %v2354_v42 = vpop.eup %2353  ;;  %v604_v33 = vand.u32 2147483647, %v588_v55 }
 0x12c   :  { %v574_v18 = vmul.f32 0.6931472, %v2354_v42  ;;  %v2356_v23 = vpop.eup %2355 }
 0x12d   :  { %2357 = vlog2.f32 %v746_v41  ;;  %v354_v6 = vmul.f32 0.6931472, %v2356_v23 }
 0x12e   :  { %2359 = vlog2.f32 %v420_v37  ;;  %v674_v45 = vsel %vm546_vm3, %v574_v18, %v666_v20  ;;  %v226_v18 = vpop.f32.mrf.mxu3 }
 0x12f   :  { %2361 = vpow2.f32 %v623_v28  ;;  %v3202_v9 = vadd.f32 %v674_v45, %v538_v36  ;;  %v364_v32 = vadd.f32 %v354_v6, %v300_v62 }
 0x130   :  { %2363 = vpow2.f32 %v487_v10  ;;  %v612_v10 = vsub.f32 0.0, %v604_v33  ;;  %v381_v33 = vmax.f32 %v373_v15, 0.0 }
 0x133   :  { %v2358_v26 = vpop.eup %2357 }
 0x134   :  { %v2360_v30 = vpop.eup %2359  ;;  %v748_v47 = vmul.f32 0.6931472, %v2358_v26 }
 0x135   :  { %v2362_v38 = vpop.eup %2361  ;;  %v434_v1 = vmul.f32 0.6931472, %v2360_v30  ;;  %v625_v30 = vmul.f32 1.442695, %v612_v10  ;;  %v556_v10 = vmax.f32 %v3207_v50, 0.0 }
 0x136   :  { %v2364_v16 = vpop.eup %2363  ;;  %v749_v43 = vadd.f32 %v748_v47, %v740_v31  ;;  %v635_v12 = vadd.f32 1.0, %v2362_v38  ;;  %v459_v31 = vmax.f32 %v3168_v35, 0.0  ;;  %v3223_v38 = vadd.f32 %v226_v18, %v2869_v21 }
 0x137   :  { %v499_v0 = vadd.f32 1.0, %v2364_v16  ;;  %v444_v34 = vadd.f32 %v434_v1, %v380_v61  ;;  %v3226_v16 = vadd.f32 %v255_v24, %v2871_v22  ;;  %v564_v15 = vadd.f32 0.5, %v556_v10 }
 0x138   :  { %v3204_v57 = vadd.f32 %v749_v43, %v530_v59  ;;  %2365 = vlog2.f32 %v635_v12  ;;  %v846_v58 = vmul.f32 1.442695, %v749_v43  ;;  %v294_v25 = vsub.f32 0.0, %v3223_v38 }
 0x139   :  { %2367 = vlog2.f32 %v499_v0  ;;  %v3214_v4 = vsub.f32 %v364_v32, %v444_v34  ;;  %v374_v21 = vsub.f32 0.0, %v3226_v16 }
 0x13a   :  { %v757_v51 = vsub.f32 %v3204_v57, %v3202_v9  ;;  %2369 = vpow2.f32 %v331_v13  ;;  %v756_v22 = vmax.f32 %v3204_v57, %v3202_v9  ;;  %v310_v12 = vand.u32 2147483647, %v294_v25 }
 0x13b   :  { %2371 = vpow2.f32 %v411_v52  ;;  %v468_v28 = vand.u32 2147483647, %v3214_v4  ;;  %v390_v13 = vand.u32 2147483647, %v374_v21 }
 0x13c   :  { %v758_v53 = vand.u32 2147483647, %v757_v51  ;;  %2373 = vpow2.f32 %v844_v54 }
 0x13d   :  { %2375 = vpow2.f32 %v846_v58  ;;  %v476_v23 = vsub.f32 0.0, %v468_v28  ;;  %v301_v58 = vmax.f32 %v293_v14, 0.0 }
 0x13e   :  { %v759_v60 = vsub.f32 0.0, %v758_v53  ;;  %v2366_v37 = vpop.eup %2365 }
 0x13f   :  { %v2368_v8 = vpop.eup %2367  ;;  %v648_v17 = vmul.f32 0.6931472, %v2366_v37  ;;  %v489_v59 = vmul.f32 1.442695, %v476_v23 }
 0x140   :  { %v760_v2 = vmul.f32 1.442695, %v759_v60  ;;  %v2370_v41 = vpop.eup %2369  ;;  %v512_v47 = vmul.f32 0.6931472, %v2368_v8  ;;  %v398_v60 = vsub.f32 0.0, %v390_v13 }
 0x141   :  { %v2372_v46 = vpop.eup %2371  ;;  %v341_v36 = vadd.f32 1.0, %v2370_v41  ;;  %v659_v45 = vadd.f32 %v648_v17, %v595_v48 }
 0x142   :  { %2377 = vpow2.f32 %v760_v2  ;;  %v2374_v11 = vpop.eup %2373  ;;  %v421_v39 = vadd.f32 1.0, %v2372_v46  ;;  %v523_v40 = vadd.f32 %v512_v47, %v459_v31  ;;  %v413_v5 = vmul.f32 1.442695, %v398_v60 }
 0x143   :  { %2379 = vlog2.f32 %v563_v44  ;;  %v2376_v42 = vpop.eup %2375  ;;  %v667_v6 = vsub.f32 0.0, %v659_v45  ;;  %v282_v44 = vpop.f32.mrf.mxu2 }
 0x144   :  { %v912_v26 = vpack.c.bf16 %v2376_v42, %v2374_v11  ;;  %v539_v1 = vsub.f32 %v3168_v35, %v523_v40  ;;  %v531_v53 = vsub.f32 0.0, %v523_v40  ;;  %v318_v35 = vsub.f32 0.0, %v310_v12 }
 0x145   :  { %v3252_v41 = vadd.f32 %v282_v44, %v2875_v29 }
 0x146   :  { %1064 = vmatmul.bf16.gmra.mxu3 %v912_v26  ;;  %1097 = vmatmul.bf16.gmra.mxu0 %v912_v26  ;;  %v333_v46 = vmul.f32 1.442695, %v318_v35 }
 0x147   :  { %1130 = vmatmul.bf16.vlgmr.msrb.gmra.mxu1 %v912_v26  ;;  %v589_v48 = vsub.f32 0.0, %v3252_v41  ;;  %vm549_vm6 = vcmp.ge.f32.partialorder %v3252_v41, 0.0 }
 0x148   :  { %v2378_v20 = vpop.eup %2377 }
 0x149   :  { %v762_v27 = vadd.f32 1.0, %v2378_v20  ;;  %v2380_v43 = vpop.eup %2379  ;;  %v605_v18 = vand.u32 2147483647, %v589_v48 }
 0x14a   :  { %v576_v62 = vmul.f32 0.6931472, %v2380_v43  ;;  %v460_v43 = vmax.f32 %v3214_v4, 0.0 }
 0x14b   :  { %2381 = vlog2.f32 %v762_v27  ;;  %v613_v47 = vsub.f32 0.0, %v605_v18  ;;  %v284_v50 = vpop.f32.mrf.mxu2 }
 0x14c   :  { %2383 = vpow2.f32 %v625_v30  ;;  %v675_v51 = vsel %vm547_vm4, %v576_v62, %v667_v6  ;;  %v596_v30 = vmax.f32 %v588_v55, 0.0 }
 0x14d   :  { %2385 = vlog2.f32 %v341_v36  ;;  %v3240_v54 = vadd.f32 %v675_v51, %v539_v1 }
 0x14e   :  { %2387 = vlog2.f32 %v421_v39 }
 0x14f   :  { %2389 = vpow2.f32 %v489_v59 }
 0x151   :  { %v2382_v61 = vpop.eup %2381 }
 0x152   :  { %v764_v3 = vmul.f32 0.6931472, %v2382_v61  ;;  %v2384_v0 = vpop.eup %2383  ;;  %v627_v61 = vmul.f32 1.442695, %v613_v47 }
 0x153   :  { %v2386_v32 = vpop.eup %2385  ;;  %v636_v57 = vadd.f32 1.0, %v2384_v0 }
 0x154   :  { %v3238_v52 = vadd.f32 %v764_v3, %v756_v22  ;;  %v2388_v19 = vpop.eup %2387  ;;  %v356_v2 = vmul.f32 0.6931472, %v2386_v32 }
 0x155   :  { %v2390_v34 = vpop.eup %2389  ;;  %v436_v37 = vmul.f32 0.6931472, %v2388_v19  ;;  %2391 = vlog2.f32 %v636_v57 }
 0x156   :  { %v3243_v9 = vadd.f32 %v3238_v52, %v531_v53  ;;  %v500_v8 = vadd.f32 1.0, %v2390_v34  ;;  %v365_v11 = vadd.f32 %v356_v2, %v301_v58  ;;  %v848_v34 = vmul.f32 1.442695, %v3238_v52 }
 0x157   :  { %v445_v42 = vadd.f32 %v436_v37, %v381_v33 }
 0x158   :  { %v773_v63 = vsub.f32 %v3243_v9, %v3240_v54  ;;  %2393 = vlog2.f32 %v500_v8  ;;  %v772_v51 = vmax.f32 %v3243_v9, %v3240_v54  ;;  %v302_v54 = vmax.f32 %v294_v25, 0.0 }
 0x159   :  { %2395 = vpow2.f32 %v333_v46  ;;  %v3256_v17 = vsub.f32 %v365_v11, %v445_v42 }
 0x15a   :  { %v774_v28 = vand.u32 2147483647, %v773_v63  ;;  %2397 = vpow2.f32 %v413_v5 }
 0x15b   :  { %v2392_v20 = vpop.eup %2391  ;;  %v469_v26 = vand.u32 2147483647, %v3256_v17 }
 0x15c   :  { %v775_v14 = vsub.f32 0.0, %v774_v28  ;;  %v650_v31 = vmul.f32 0.6931472, %v2392_v20  ;;  %v3280_v28 = vadd.f32 %v284_v50, %v2875_v29 }
 0x15d   :  { %v477_v40 = vsub.f32 0.0, %v469_v26  ;;  %v597_v26 = vmax.f32 %v589_v48, 0.0 }
 0x15e   :  { %v776_v49 = vmul.f32 1.442695, %v775_v14  ;;  %v2394_v23 = vpop.eup %2393  ;;  %v660_v6 = vadd.f32 %v650_v31, %v596_v30  ;;  %v557_v14 = vmax.f32 %v3252_v41, 0.0  ;;  %vm550_vm7 = vcmp.ge.f32.partialorder %v3280_v28, 0.0 }
 0x15f   :  { %v2396_v24 = vpop.eup %2395  ;;  %v514_v59 = vmul.f32 0.6931472, %v2394_v23  ;;  %v491_v1 = vmul.f32 1.442695, %v477_v40 }
 0x160   :  { %2399 = vpow2.f32 %v776_v49  ;;  %v2398_v27 = vpop.eup %2397  ;;  %v342_v39 = vadd.f32 1.0, %v2396_v24  ;;  %v668_v55 = vsub.f32 0.0, %v660_v6  ;;  %v565_v29 = vadd.f32 0.5, %v557_v14  ;;  %v3297_v6 = vld [vmem:[%s3698_s2 + $0x3] sm:$0x7] }
 0x161   :  { %2401 = vlog2.f32 %v564_v15  ;;  %v422_v62 = vadd.f32 1.0, %v2398_v27  ;;  %v524_v3 = vadd.f32 %v514_v59, %v460_v43  ;;  %v3313_v50 = vperm.slane %v3297_v6, 0 }
 0x163   :  { %v540_v32 = vsub.f32 %v3214_v4, %v524_v3  ;;  %v532_v58 = vsub.f32 0.0, %v524_v3  ;;  %v382_v4 = vmax.f32 %v374_v21, 0.0  ;;  %v590_v21 = vsub.f32 0.0, %v3280_v28 }
 0x165   :  { %v606_v18 = vand.u32 2147483647, %v590_v21 }
 0x166   :  { %v2400_v36 = vpop.eup %2399 }
 0x167   :  { %v778_v45 = vadd.f32 1.0, %v2400_v36  ;;  %v2402_v22 = vpop.eup %2401  ;;  %v614_v30 = vsub.f32 0.0, %v606_v18  ;;  %v461_v36 = vmax.f32 %v3256_v17, 0.0  ;;  %v598_v18 = vmax.f32 %v590_v21, 0.0 }
 0x168   :  { %v578_v12 = vmul.f32 0.6931472, %v2402_v22 }
 0x169   :  { %2403 = vlog2.f32 %v778_v45  ;;  %v629_v40 = vmul.f32 1.442695, %v614_v30 }
 0x16a   :  { %2405 = vlog2.f32 %v342_v39  ;;  %v676_v19 = vsel %vm548_vm5, %v578_v12, %v668_v55  ;;  %v3303_v55 = vperm.slane %v3297_v6, 1 }
 0x16b   :  { %2407 = vlog2.f32 %v422_v62  ;;  %v3269_v63 = vadd.f32 %v676_v19, %v540_v32 }
 0x16c   :  { %2409 = vpow2.f32 %v627_v61 }
 0x16d   :  { %2411 = vpow2.f32 %v491_v1 }
 0x16e   :  { %2413 = vpow2.f32 %v848_v34 }
 0x16f   :  { %v2404_v0 = vpop.eup %2403 }
 0x170   :  { %v780_v13 = vmul.f32 0.6931472, %v2404_v0  ;;  %v2406_v53 = vpop.eup %2405 }
 0x171   :  { %v2408_v35 = vpop.eup %2407  ;;  %v358_v9 = vmul.f32 0.6931472, %v2406_v53 }
 0x172   :  { %v781_v57 = vadd.f32 %v780_v13, %v772_v51  ;;  %v2410_v60 = vpop.eup %2409  ;;  %v438_v44 = vmul.f32 0.6931472, %v2408_v35 }
 0x173   :  { %v2412_v37 = vpop.eup %2411  ;;  %v637_v8 = vadd.f32 1.0, %v2410_v60  ;;  %v366_v5 = vadd.f32 %v358_v9, %v302_v54 }
 0x174   :  { %v3271_v2 = vadd.f32 %v781_v57, %v532_v58  ;;  %v850_v33 = vmul.f32 1.442695, %v781_v57  ;;  %v501_v10 = vadd.f32 1.0, %v2412_v37  ;;  %v446_v25 = vadd.f32 %v438_v44, %v382_v4  ;;  %v2414_v16 = vpop.eup %2413 }
 0x176   :  { %v789_v52 = vsub.f32 %v3271_v2, %v3269_v63  ;;  %2415 = vpow2.f32 %v850_v33  ;;  %v3284_v15 = vsub.f32 %v366_v5, %v446_v25  ;;  %v788_v0 = vmax.f32 %v3271_v2, %v3269_v63 }
 0x177   :  { %2417 = vlog2.f32 %v637_v8 }
 0x178   :  { %v790_v46 = vand.u32 2147483647, %v789_v52  ;;  %2419 = vlog2.f32 %v501_v10  ;;  %v470_v23 = vand.u32 2147483647, %v3284_v15  ;;  %v558_v10 = vmax.f32 %v3280_v28, 0.0 }
 0x17a   :  { %v791_v38 = vsub.f32 0.0, %v790_v46  ;;  %v478_v45 = vsub.f32 0.0, %v470_v23  ;;  %v566_v14 = vadd.f32 0.5, %v558_v10 }
 0x17c   :  { %v2416_v11 = vpop.eup %2415  ;;  %v792_v42 = vmul.f32 1.442695, %v791_v38  ;;  %v493_v48 = vmul.f32 1.442695, %v478_v45 }
 0x17d   :  { %v913_v49 = vpack.c.bf16 %v2416_v11, %v2414_v16  ;;  %v2418_v20 = vpop.eup %2417 }
 0x17e   :  { %2421 = vpow2.f32 %v792_v42  ;;  %v2420_v24 = vpop.eup %2419  ;;  %v652_v27 = vmul.f32 0.6931472, %v2418_v20 }
 0x17f   :  { %1069 = vmatmul.bf16.gmra.mxu3 %v913_v49  ;;  %1102 = vmatmul.bf16.gmra.mxu0 %v913_v49  ;;  %2423 = vlog2.f32 %v565_v29  ;;  %v516_v39 = vmul.f32 0.6931472, %v2420_v24 }
 0x180   :  { %1135 = vmatmul.bf16.gmra.mxu1 %v913_v49  ;;  %v661_v59 = vadd.f32 %v652_v27, %v597_v26  ;;  %v462_v26 = vmax.f32 %v3284_v15, 0.0 }
 0x181   :  { %v525_v61 = vadd.f32 %v516_v39, %v461_v36 }
 0x182   :  { %v669_v3 = vsub.f32 0.0, %v661_v59 }
 0x183   :  { %v541_v13 = vsub.f32 %v3256_v17, %v525_v61  ;;  %v533_v41 = vsub.f32 0.0, %v525_v61 }
 0x184   :  { %v2422_v31 = vpop.eup %2421  ;;  %v3292_v43 = vpop.f32.mrf.mxu0 }
 0x185   :  { %v794_v47 = vadd.f32 1.0, %v2422_v31  ;;  %v2424_v62 = vpop.eup %2423 }
 0x186   :  { %v580_v22 = vmul.f32 0.6931472, %v2424_v62 }
 0x187   :  { %2425 = vlog2.f32 %v794_v47 }
 0x188   :  { %2427 = vpow2.f32 %v629_v40  ;;  %v677_v53 = vsel %vm549_vm6, %v580_v22, %v669_v3 }
 0x189   :  { %2429 = vpow2.f32 %v493_v48  ;;  %v685_v58 = vadd.f32 %v677_v53, %v541_v13 }
 0x18a   :  { %v3300_v1 = vpop.f32.mrf.mxu3 }
 0x18c   :  { %v1095_v32 = vpop.f32.mrf.mxu0 }
 0x18d   :  { %v2426_v12 = vpop.eup %2425  ;;  %v3309_v19 = vadd.f32 %v1095_v32, %v3303_v55 }
 0x18e   :  { %v796_v51 = vmul.f32 0.6931472, %v2426_v12  ;;  %v2428_v35 = vpop.eup %2427 }
 0x18f   :  { %v1241_v57 = vsub.f32 0.0, %v3309_v19  ;;  %v2430_v2 = vpop.eup %2429  ;;  %v638_v54 = vadd.f32 1.0, %v2428_v35 }
 0x190   :  { %v797_v34 = vadd.f32 %v796_v51, %v788_v0  ;;  %v502_v52 = vadd.f32 1.0, %v2430_v2 }
 0x191   :  { %v1259_v63 = vand.u32 2147483647, %v1241_v57  ;;  %2431 = vlog2.f32 %v638_v54  ;;  %v1250_v32 = vmax.f32 %v1241_v57, 0.0 }
 0x192   :  { %v801_v60 = vadd.f32 %v797_v34, %v533_v41  ;;  %v1062_v17 = vpop.f32.mrf.mxu3  ;;  %v852_v12 = vmul.f32 1.442695, %v797_v34 }
 0x193   :  { %v1268_v9 = vsub.f32 0.0, %v1259_v63  ;;  %v1063_v4 = vadd.f32 %v1062_v17, %v3313_v50 }
 0x194   :  { %v805_v33 = vsub.f32 %v801_v60, %v685_v58  ;;  %v804_v62 = vmax.f32 %v801_v60, %v685_v58 }
 0x195   :  { %v1278_v44 = vmul.f32 1.442695, %v1268_v9  ;;  %v1151_v8 = vsub.f32 0.0, %v1063_v4 }
 0x196   :  { %v806_v37 = vand.u32 2147483647, %v805_v33 }
 0x197   :  { %2433 = vpow2.f32 %v1278_v44  ;;  %v1169_v5 = vand.u32 2147483647, %v1151_v8  ;;  %v2432_v11 = vpop.eup %2431  ;;  %v1160_v53 = vmax.f32 %v1151_v8, 0.0 }
 0x198   :  { %v807_v46 = vsub.f32 0.0, %v806_v37  ;;  %2435 = vlog2.f32 %v502_v52  ;;  %v654_v20 = vmul.f32 0.6931472, %v2432_v11 }
 0x199   :  { %v1178_v25 = vsub.f32 0.0, %v1169_v5 }
 0x19a   :  { %v808_v38 = vmul.f32 1.442695, %v807_v46  ;;  %v662_v31 = vadd.f32 %v654_v20, %v598_v18 }
 0x19b   :  { %v1188_v16 = vmul.f32 1.442695, %v1178_v25 }
 0x19c   :  { %2437 = vpow2.f32 %v808_v38  ;;  %v670_v59 = vsub.f32 0.0, %v662_v31 }
 0x19d   :  { %v2434_v42 = vpop.eup %2433  ;;  %2439 = vpow2.f32 %v1188_v16  ;;  %v3329_v16 = vperm.slane %v3297_v6, 2 }
 0x19e   :  { %2441 = vlog2.f32 %v566_v14  ;;  %v1295_v49 = vadd.f32 1.0, %v2434_v42  ;;  %v2436_v29 = vpop.eup %2435 }
 0x19f   :  { %v518_v27 = vmul.f32 0.6931472, %v2436_v29 }
 0x1a0   :  { %2443 = vlog2.f32 %v1295_v49 }
 0x1a1   :  { %v526_v45 = vadd.f32 %v518_v27, %v462_v26 }
 0x1a2   :  { %v2438_v23 = vpop.eup %2437 }
 0x1a3   :  { %v810_v24 = vadd.f32 1.0, %v2438_v23  ;;  %v2440_v30 = vpop.eup %2439  ;;  %v542_v61 = vsub.f32 %v3284_v15, %v526_v45  ;;  %v534_v13 = vsub.f32 0.0, %v526_v45 }
 0x1a4   :  { %v2442_v47 = vpop.eup %2441  ;;  %v1205_v36 = vadd.f32 1.0, %v2440_v30 }
 0x1a5   :  { %2445 = vlog2.f32 %v810_v24  ;;  %v582_v39 = vmul.f32 0.6931472, %v2442_v47 }
 0x1a6   :  { %2447 = vlog2.f32 %v1205_v36  ;;  %v2444_v40 = vpop.eup %2443 }
 0x1a7   :  { %v678_v22 = vsel %vm550_vm7, %v582_v39, %v670_v59  ;;  %v1306_v3 = vmul.f32 0.6931472, %v2444_v40  ;;  %2449 = vpow2.f32 %v852_v12 }
 0x1a8   :  { %v686_v41 = vadd.f32 %v678_v22, %v542_v61 }
 0x1a9   :  { %v1322_v2 = vadd.f32 %v1306_v3, %v1250_v32 }
 0x1ab   :  { %v2446_v21 = vpop.eup %2445 }
 0x1ac   :  { %v812_v48 = vmul.f32 0.6931472, %v2446_v21  ;;  %v2448_v0 = vpop.eup %2447 }
 0x1ad   :  { %v1216_v19 = vmul.f32 0.6931472, %v2448_v0  ;;  %v2450_v54 = vpop.eup %2449 }
 0x1ae   :  { %v813_v51 = vadd.f32 %v812_v48, %v804_v62 }
 0x1af   :  { %v1232_v33 = vadd.f32 %v1216_v19, %v1160_v53 }
 0x1b0   :  { %v817_v35 = vadd.f32 %v813_v51, %v534_v13  ;;  %v854_v63 = vmul.f32 1.442695, %v813_v51 }
 0x1b1   :  { %v3322_v58 = vsub.f32 %v1232_v33, %v1322_v2 }
 0x1b2   :  { %v821_v28 = vsub.f32 %v817_v35, %v686_v41  ;;  %2451 = vpow2.f32 %v854_v63  ;;  %v820_v46 = vmax.f32 %v817_v35, %v686_v41 }
 0x1b4   :  { %v822_v15 = vand.u32 2147483647, %v821_v28 }
 0x1b6   :  { %v823_v60 = vsub.f32 0.0, %v822_v15 }
 0x1b8   :  { %v2452_v34 = vpop.eup %2451  ;;  %v824_v17 = vmul.f32 1.442695, %v823_v60 }
 0x1b9   :  { %v914_v9 = vpack.c.bf16 %v2452_v34, %v2450_v54 }
 0x1ba   :  { %2453 = vpow2.f32 %v824_v17 }
 0x1bb   :  { %1074 = vmatmul.bf16.gmra.mxu3 %v914_v9  ;;  %1107 = vmatmul.bf16.gmra.mxu0 %v914_v9 }
 0x1bc   :  { %1140 = vmatmul.bf16.gmra.mxu1 %v914_v9 }
 0x1c0   :  { %v2454_v57 = vpop.eup %2453 }
 0x1c1   :  { %v826_v4 = vadd.f32 1.0, %v2454_v57 }
 0x1c3   :  { %2455 = vlog2.f32 %v826_v4  ;;  %v1098_v37 = vpop.f32.mrf.mxu0 }
 0x1c4   :  { %v3325_v52 = vadd.f32 %v1098_v37, %v3303_v55  ;;  %v1131_v25 = vpop.f32.mrf.mxu1 }
 0x1c5   :  { %v3336_v24 = vadd.f32 %v1131_v25, %v3329_v16 }
 0x1c6   :  { %v1242_v8 = vsub.f32 0.0, %v3325_v52 }
 0x1c7   :  { %v1485_v36 = vsub.f32 0.0, %v3336_v24  ;;  %vm1440_vm8 = vcmp.ge.f32.partialorder %v3336_v24, 0.0 }
 0x1c8   :  { %v1260_v5 = vand.u32 2147483647, %v1242_v8  ;;  %v1251_v9 = vmax.f32 %v1242_v8, 0.0 }
 0x1c9   :  { %v2456_v44 = vpop.eup %2455  ;;  %v1065_v14 = vpop.f32.mrf.mxu3  ;;  %v1503_v3 = vand.u32 2147483647, %v1485_v36 }
 0x1ca   :  { %v828_v10 = vmul.f32 0.6931472, %v2456_v44  ;;  %v1269_v11 = vsub.f32 0.0, %v1260_v5  ;;  %v1066_v42 = vadd.f32 %v1065_v14, %v3313_v50 }
 0x1cb   :  { %v1100_v29 = vpop.f32.mrf.mxu0  ;;  %v1512_v32 = vsub.f32 0.0, %v1503_v3 }
 0x1cc   :  { %v829_v38 = vadd.f32 %v828_v10, %v820_v46  ;;  %v1280_v18 = vmul.f32 1.442695, %v1269_v11  ;;  %v1152_v20 = vsub.f32 0.0, %v1066_v42  ;;  %v3333_v23 = vadd.f32 %v1100_v29, %v3303_v55  ;;  %v1133_v40 = vpop.f32.mrf.mxu1 }
 0x1cd   :  { %v3344_v12 = vadd.f32 %v1133_v40, %v3329_v16  ;;  %v1523_v2 = vmul.f32 1.442695, %v1512_v32 }
 0x1ce   :  { %v856_v49 = vmul.f32 1.442695, %v829_v38  ;;  %v1170_v26 = vand.u32 2147483647, %v1152_v20  ;;  %v1243_v27 = vsub.f32 0.0, %v3333_v23  ;;  %v1161_v57 = vmax.f32 %v1152_v20, 0.0 }
 0x1cf   :  { %v1486_v53 = vsub.f32 0.0, %v3344_v12  ;;  %vm1441_vm9 = vcmp.ge.f32.partialorder %v3344_v12, 0.0 }
 0x1d0   :  { %2457 = vpow2.f32 %v856_v49  ;;  %v1179_v6 = vsub.f32 0.0, %v1170_v26  ;;  %v1261_v30 = vand.u32 2147483647, %v1243_v27  ;;  %v1252_v8 = vmax.f32 %v1243_v27, 0.0 }
 0x1d1   :  { %2459 = vpow2.f32 %v1280_v18  ;;  %v1067_v31 = vpop.f32.mrf.mxu3  ;;  %v1504_v33 = vand.u32 2147483647, %v1486_v53  ;;  %v1449_v18 = vmax.f32 %v3336_v24, 0.0 }
 0x1d2   :  { %v1190_v45 = vmul.f32 1.442695, %v1179_v6  ;;  %v1270_v39 = vsub.f32 0.0, %v1261_v30  ;;  %v1068_v59 = vadd.f32 %v1067_v31, %v3313_v50 }
 0x1d3   :  { %v1513_v54 = vsub.f32 0.0, %v1504_v33  ;;  %v1458_v30 = vadd.f32 0.5, %v1449_v18 }
 0x1d4   :  { %2461 = vpow2.f32 %v1190_v45  ;;  %v1282_v48 = vmul.f32 1.442695, %v1270_v39  ;;  %v1153_v61 = vsub.f32 0.0, %v1068_v59 }
 0x1d5   :  { %v1525_v44 = vmul.f32 1.442695, %v1513_v54 }
 0x1d6   :  { %v2458_v47 = vpop.eup %2457  ;;  %2463 = vpow2.f32 %v1282_v48  ;;  %v1171_v0 = vand.u32 2147483647, %v1153_v61  ;;  %v1162_v49 = vmax.f32 %v1153_v61, 0.0  ;;  %v1494_v61 = vmax.f32 %v1485_v36, 0.0 }
 0x1d7   :  { %v915_v21 = vpack.c.bf16 %v2458_v47, %v2458_v47  ;;  %v2460_v62 = vpop.eup %2459 }
 0x1d8   :  { %v1296_v22 = vadd.f32 1.0, %v2460_v62  ;;  %v1180_v51 = vsub.f32 0.0, %v1171_v0 }
 0x1d9   :  { %1079 = vmatmul.bf16.gmra.mxu3 %v915_v21  ;;  %1112 = vmatmul.bf16.gmra.mxu0 %v915_v21 }
 0x1da   :  { %1145 = vmatmul.bf16.gmra.mxu1 %v915_v21  ;;  %2465 = vlog2.f32 %v1296_v22  ;;  %v2462_v13 = vpop.eup %2461  ;;  %v1192_v19 = vmul.f32 1.442695, %v1180_v51  ;;  %v1450_v22 = vmax.f32 %v3344_v12, 0.0 }
 0x1db   :  { %v1206_v41 = vadd.f32 1.0, %v2462_v13 }
 0x1dc   :  { %v2464_v35 = vpop.eup %2463  ;;  %2467 = vpow2.f32 %v1192_v19 }
 0x1dd   :  { %2469 = vlog2.f32 %v1206_v41  ;;  %v1297_v63 = vadd.f32 1.0, %v2464_v35  ;;  %v1459_v41 = vadd.f32 0.5, %v1450_v22 }
 0x1df   :  { %2471 = vlog2.f32 %v1297_v63 }
 0x1e0   :  { %v2466_v28 = vpop.eup %2465  ;;  %2473 = vpow2.f32 %v1523_v2 }
 0x1e1   :  { %v1308_v60 = vmul.f32 0.6931472, %v2466_v28 }
 0x1e2   :  { %v2468_v15 = vpop.eup %2467 }
 0x1e3   :  { %v2470_v34 = vpop.eup %2469  ;;  %v1207_v17 = vadd.f32 1.0, %v2468_v15  ;;  %v1323_v37 = vadd.f32 %v1308_v60, %v1251_v9 }
 0x1e4   :  { %v1218_v4 = vmul.f32 0.6931472, %v2470_v34 }
 0x1e5   :  { %2475 = vlog2.f32 %v1207_v17  ;;  %v2472_v46 = vpop.eup %2471 }
 0x1e6   :  { %v1233_v52 = vadd.f32 %v1218_v4, %v1161_v57  ;;  %v2474_v10 = vpop.eup %2473  ;;  %v1310_v25 = vmul.f32 0.6931472, %v2472_v46  ;;  %2477 = vpow2.f32 %v1525_v44  ;;  %v1495_v44 = vmax.f32 %v1486_v53, 0.0 }
 0x1e7   :  { %v1539_v11 = vadd.f32 1.0, %v2474_v10 }
 0x1e8   :  { %v3350_v5 = vsub.f32 %v1233_v52, %v1323_v37  ;;  %v1324_v20 = vadd.f32 %v1310_v25, %v1252_v8 }
 0x1e9   :  { %1125 = vmatmul.bf16.vlgmr.msra.gmra.mxu0 %v3084_v7  ;;  %2479 = vlog2.f32 %v1539_v11 }
 0x1ea   :  { %v1350_v38 = vand.u32 2147483647, %v3350_v5  ;;  %v1341_v60 = vmax.f32 %v3350_v5, 0.0 }
 0x1eb   :  { %v2476_v14 = vpop.eup %2475 }
 0x1ec   :  { %v1359_v42 = vsub.f32 0.0, %v1350_v38  ;;  %v1220_v29 = vmul.f32 0.6931472, %v2476_v14  ;;  %v2478_v26 = vpop.eup %2477 }
 0x1ed   :  { %v1540_v47 = vadd.f32 1.0, %v2478_v26 }
 0x1ee   :  { %v1370_v7 = vmul.f32 1.442695, %v1359_v42  ;;  %v1234_v23 = vadd.f32 %v1220_v29, %v1162_v49 }
 0x1ef   :  { %v2480_v39 = vpop.eup %2479 }
 0x1f0   :  { %2481 = vpow2.f32 %v1370_v7  ;;  %v3354_v6 = vsub.f32 %v1234_v23, %v1324_v20  ;;  %v1551_v21 = vmul.f32 0.6931472, %v2480_v39 }
 0x1f1   :  { %2483 = vlog2.f32 %v1458_v30 }
 0x1f2   :  { %v1351_v31 = vand.u32 2147483647, %v3354_v6  ;;  %2485 = vlog2.f32 %v1540_v47  ;;  %v1566_v51 = vadd.f32 %v1551_v21, %v1494_v61  ;;  %v1342_v24 = vmax.f32 %v3354_v6, 0.0 }
 0x1f4   :  { %v1360_v45 = vsub.f32 0.0, %v1351_v31  ;;  %v1575_v36 = vsub.f32 0.0, %v1566_v51 }
 0x1f6   :  { %v2482_v59 = vpop.eup %2481  ;;  %v1372_v27 = vmul.f32 1.442695, %v1360_v45 }
 0x1f7   :  { %v1386_v40 = vadd.f32 1.0, %v2482_v59  ;;  %v2484_v0 = vpop.eup %2483 }
 0x1f8   :  { %2487 = vpow2.f32 %v1372_v27  ;;  %v2486_v13 = vpop.eup %2485  ;;  %v1470_v37 = vmul.f32 0.6931472, %v2484_v0 }
 0x1f9   :  { %2489 = vlog2.f32 %v1386_v40  ;;  %v1553_v34 = vmul.f32 0.6931472, %v2486_v13 }
 0x1fa   :  { %v1584_v14 = vsel %vm1440_vm8, %v1470_v37, %v1575_v36 }
 0x1fb   :  { %v1567_v11 = vadd.f32 %v1553_v34, %v1495_v44 }
 0x1fc   :  { %v1103_v62 = vpop.f32.mrf.mxu0 }
 0x1fd   :  { %v3358_v48 = vadd.f32 %v1103_v62, %v3303_v55  ;;  %v1136_v28 = vpop.f32.mrf.mxu1  ;;  %v1576_v31 = vsub.f32 0.0, %v1567_v11 }
 0x1fe   :  { %v2488_v19 = vpop.eup %2487  ;;  %v3379_v46 = vadd.f32 %v1136_v28, %v3329_v16 }
 0x1ff   :  { %v1244_v3 = vsub.f32 0.0, %v3358_v48  ;;  %v2490_v63 = vpop.eup %2489  ;;  %v1387_v2 = vadd.f32 1.0, %v2488_v19 }
 0x200   :  { %v1398_v54 = vmul.f32 0.6931472, %v2490_v63  ;;  %v1487_v18 = vsub.f32 0.0, %v3379_v46  ;;  %vm1442_vm10 = vcmp.ge.f32.partialorder %v3379_v46, 0.0 }
 0x201   :  { %v1262_v32 = vand.u32 2147483647, %v1244_v3  ;;  %2491 = vlog2.f32 %v1387_v2 }
 0x202   :  { %v1070_v35 = vpop.f32.mrf.mxu3  ;;  %v3374_v52 = vadd.f32 %v1398_v54, %v1341_v60  ;;  %2493 = vlog2.f32 %v1459_v41  ;;  %v1505_v21 = vand.u32 2147483647, %v1487_v18 }
 0x203   :  { %v1271_v33 = vsub.f32 0.0, %v1262_v32  ;;  %v3367_v15 = vadd.f32 %v1070_v35, %v3313_v50 }
 0x204   :  { %v1105_v17 = vpop.f32.mrf.mxu0  ;;  %v1431_v25 = vsub.f32 %v3350_v5, %v3374_v52  ;;  %v1514_v32 = vsub.f32 0.0, %v1505_v21 }
 0x205   :  { %v1284_v9 = vmul.f32 1.442695, %v1271_v33  ;;  %v1154_v57 = vsub.f32 0.0, %v3367_v15  ;;  %v3372_v4 = vadd.f32 %v1105_v17, %v3303_v55  ;;  %v1138_v45 = vpop.f32.mrf.mxu1  ;;  %v1253_v17 = vmax.f32 %v1244_v3, 0.0 }
 0x206   :  { %v3389_v8 = vadd.f32 %v1584_v14, %v1431_v25  ;;  %v3402_v61 = vadd.f32 %v1138_v45, %v3329_v16  ;;  %v1527_v12 = vmul.f32 1.442695, %v1514_v32  ;;  %v3422_v3 = vadd.f32 %v3292_v43, %v3303_v55 }
 0x207   :  { %2495 = vpow2.f32 %v1284_v9  ;;  %v1172_v10 = vand.u32 2147483647, %v1154_v57  ;;  %v1245_v38 = vsub.f32 0.0, %v3372_v4  ;;  %v2492_v29 = vpop.eup %2491  ;;  %v1163_v9 = vmax.f32 %v1154_v57, 0.0 }
 0x208   :  { %v2494_v23 = vpop.eup %2493  ;;  %v1400_v26 = vmul.f32 0.6931472, %v2492_v29  ;;  %v1488_v35 = vsub.f32 0.0, %v3402_v61  ;;  %vm1443_vm11 = vcmp.ge.f32.partialorder %v3402_v61, 0.0 }
 0x209   :  { %v1181_v42 = vsub.f32 0.0, %v1172_v10  ;;  %v1263_v53 = vand.u32 2147483647, %v1245_v38  ;;  %v1472_v40 = vmul.f32 0.6931472, %v2494_v23 }
 0x20a   :  { %v1072_v49 = vpop.f32.mrf.mxu3  ;;  %v3394_v39 = vadd.f32 %v1400_v26, %v1342_v24  ;;  %v1506_v28 = vand.u32 2147483647, %v1488_v35 }
 0x20b   :  { %v1194_v7 = vmul.f32 1.442695, %v1181_v42  ;;  %v1272_v20 = vsub.f32 0.0, %v1263_v53  ;;  %v1073_v5 = vadd.f32 %v1072_v49, %v3313_v50  ;;  %v1585_v22 = vsel %vm1441_vm9, %v1472_v40, %v1576_v31 }
 0x20c   :  { %v1432_v62 = vsub.f32 %v3354_v6, %v3394_v39  ;;  %v1515_v54 = vsub.f32 0.0, %v1506_v28  ;;  %v3415_v42 = vadd.f32 %v3300_v1, %v3313_v50  ;;  %v1254_v1 = vmax.f32 %v1245_v38, 0.0 }
 0x20d   :  { %v2496_v30 = vpop.eup %2495  ;;  %2497 = vpow2.f32 %v1194_v7  ;;  %v1286_v47 = vmul.f32 1.442695, %v1272_v20  ;;  %v1155_v27 = vsub.f32 0.0, %v1073_v5  ;;  %v1240_v5 = vsub.f32 0.0, %v3422_v3 }
 0x20e   :  { %v1298_v59 = vadd.f32 1.0, %v2496_v30  ;;  %v3404_v51 = vadd.f32 %v1585_v22, %v1432_v62  ;;  %v1529_v14 = vmul.f32 1.442695, %v1515_v54  ;;  %v1150_v57 = vsub.f32 0.0, %v3415_v42 }
 0x20f   :  { %2499 = vpow2.f32 %v1286_v47  ;;  %v1173_v0 = vand.u32 2147483647, %v1155_v27  ;;  %v1164_v24 = vmax.f32 %v1155_v27, 0.0  ;;  %v1451_v30 = vmax.f32 %v3379_v46, 0.0 }
 0x210   :  { %2501 = vlog2.f32 %v1298_v59  ;;  %v1168_v43 = vand.u32 2147483647, %v1150_v57  ;;  %v1258_v4 = vand.u32 2147483647, %v1240_v5 }
 0x211   :  { %v1182_v19 = vsub.f32 0.0, %v1173_v0  ;;  %v1460_v38 = vadd.f32 0.5, %v1451_v30 }
 0x212   :  { %v1177_v27 = vsub.f32 0.0, %v1168_v43 }
 0x213   :  { %v2498_v13 = vpop.eup %2497  ;;  %v1196_v2 = vmul.f32 1.442695, %v1182_v19 }
 0x214   :  { %v1208_v41 = vadd.f32 1.0, %v2498_v13  ;;  %v1267_v13 = vsub.f32 0.0, %v1258_v4  ;;  %v1186_v19 = vmul.f32 1.442695, %v1177_v27 }
 0x215   :  { %v2500_v63 = vpop.eup %2499 }
 0x216   :  { %2503 = vlog2.f32 %v1208_v41  ;;  %v2502_v6 = vpop.eup %2501  ;;  %v1299_v33 = vadd.f32 1.0, %v2500_v63 }
 0x217   :  { %2505 = vpow2.f32 %v1196_v2  ;;  %v1312_v36 = vmul.f32 0.6931472, %v2502_v6  ;;  %v1276_v2 = vmul.f32 1.442695, %v1267_v13  ;;  %v1452_v6 = vmax.f32 %v3402_v61, 0.0 }
 0x218   :  { %2507 = vpow2.f32 %v1527_v12  ;;  %v1496_v12 = vmax.f32 %v1487_v18, 0.0 }
 0x219   :  { %2509 = vlog2.f32 %v1299_v33  ;;  %v1325_v10 = vadd.f32 %v1312_v36, %v1253_v17 }
 0x21c   :  { %v2504_v60 = vpop.eup %2503 }
 0x21d   :  { %v2506_v34 = vpop.eup %2505  ;;  %v1222_v37 = vmul.f32 0.6931472, %v2504_v60 }
 0x21e   :  { %v1209_v44 = vadd.f32 1.0, %v2506_v34  ;;  %v2508_v11 = vpop.eup %2507 }
 0x21f   :  { %v1235_v25 = vadd.f32 %v1222_v37, %v1163_v9  ;;  %v2510_v49 = vpop.eup %2509  ;;  %v1541_v15 = vadd.f32 1.0, %v2508_v11  ;;  %v1461_v37 = vadd.f32 0.5, %v1452_v6 }
 0x220   :  { %2511 = vlog2.f32 %v1209_v44  ;;  %v1314_v7 = vmul.f32 0.6931472, %v2510_v49 }
 0x221   :  { %v3417_v53 = vsub.f32 %v1235_v25, %v1325_v10  ;;  %2513 = vpow2.f32 %v1529_v14 }
 0x222   :  { %2515 = vlog2.f32 %v1541_v15  ;;  %v1326_v31 = vadd.f32 %v1314_v7, %v1254_v1  ;;  %v1497_v1 = vmax.f32 %v1488_v35, 0.0 }
 0x223   :  { %v1352_v48 = vand.u32 2147483647, %v3417_v53  ;;  %v1343_v17 = vmax.f32 %v3417_v53, 0.0 }
 0x225   :  { %v1361_v29 = vsub.f32 0.0, %v1352_v48 }
 0x226   :  { %v2512_v20 = vpop.eup %2511 }
 0x227   :  { %v1374_v23 = vmul.f32 1.442695, %v1361_v29  ;;  %v1224_v26 = vmul.f32 0.6931472, %v2512_v20  ;;  %v2514_v45 = vpop.eup %2513 }
 0x228   :  { %v1542_v40 = vadd.f32 1.0, %v2514_v45  ;;  %v2516_v62 = vpop.eup %2515 }
 0x229   :  { %2517 = vpow2.f32 %v1374_v23  ;;  %v1236_v47 = vadd.f32 %v1224_v26, %v1164_v24  ;;  %v1555_v63 = vmul.f32 0.6931472, %v2516_v62 }
 0x22a   :  { %2519 = vlog2.f32 %v1460_v38 }
 0x22b   :  { %v3431_v59 = vsub.f32 %v1236_v47, %v1326_v31  ;;  %2521 = vlog2.f32 %v1542_v40  ;;  %v1568_v28 = vadd.f32 %v1555_v63, %v1496_v12 }
 0x22d   :  { %v1353_v21 = vand.u32 2147483647, %v3431_v59  ;;  %v1577_v10 = vsub.f32 0.0, %v1568_v28 }
 0x22f   :  { %v2518_v22 = vpop.eup %2517  ;;  %v1362_v0 = vsub.f32 0.0, %v1353_v21  ;;  %v1344_v21 = vmax.f32 %v3431_v59, 0.0 }
 0x230   :  { %v1388_v32 = vadd.f32 1.0, %v2518_v22  ;;  %v2520_v33 = vpop.eup %2519 }
 0x231   :  { %v1376_v41 = vmul.f32 1.442695, %v1362_v0  ;;  %v2522_v36 = vpop.eup %2521  ;;  %v1474_v49 = vmul.f32 0.6931472, %v2520_v33 }
 0x232   :  { %2523 = vlog2.f32 %v1388_v32  ;;  %v1557_v48 = vmul.f32 0.6931472, %v2522_v36 }
 0x233   :  { %2525 = vpow2.f32 %v1376_v41  ;;  %v1586_v23 = vsel %vm1442_vm10, %v1474_v49, %v1577_v10 }
 0x234   :  { %2527 = vpow2.f32 %v1186_v19  ;;  %v1569_v31 = vadd.f32 %v1557_v48, %v1497_v1 }
 0x235   :  { %2529 = vpow2.f32 %v1276_v2 }
 0x236   :  { %v1578_v0 = vsub.f32 0.0, %v1569_v31 }
 0x238   :  { %v2524_v60 = vpop.eup %2523  ;;  %v1108_v54 = vpop.f32.mrf.mxu0 }
 0x239   :  { %v2526_v34 = vpop.eup %2525  ;;  %v1402_v9 = vmul.f32 0.6931472, %v2524_v60  ;;  %v3441_v44 = vadd.f32 %v1108_v54, %v3303_v55  ;;  %v1141_v24 = vpop.f32.mrf.mxu1 }
 0x23a   :  { %v1389_v25 = vadd.f32 1.0, %v2526_v34  ;;  %v2528_v18 = vpop.eup %2527  ;;  %v3463_v35 = vadd.f32 %v1141_v24, %v3329_v16  ;;  %v1249_v24 = vmax.f32 %v1240_v5, 0.0 }
 0x23b   :  { %v3443_v14 = vadd.f32 %v1402_v9, %v1343_v17  ;;  %v1246_v11 = vsub.f32 0.0, %v3441_v44  ;;  %v2530_v7 = vpop.eup %2529  ;;  %v1204_v20 = vadd.f32 1.0, %v2528_v18 }
 0x23c   :  { %2531 = vlog2.f32 %v1389_v25  ;;  %v1294_v47 = vadd.f32 1.0, %v2530_v7  ;;  %v1489_v63 = vsub.f32 0.0, %v3463_v35  ;;  %vm1444_vm12 = vcmp.ge.f32.partialorder %v3463_v35, 0.0 }
 0x23d   :  { %v1433_v15 = vsub.f32 %v3417_v53, %v3443_v14  ;;  %2533 = vlog2.f32 %v1461_v37  ;;  %v1264_v29 = vand.u32 2147483647, %v1246_v11 }
 0x23e   :  { %v1075_v26 = vpop.f32.mrf.mxu3  ;;  %2535 = vlog2.f32 %v1204_v20  ;;  %v1507_v10 = vand.u32 2147483647, %v1489_v63 }
 0x23f   :  { %v3453_v30 = vadd.f32 %v1586_v23, %v1433_v15  ;;  %v1273_v43 = vsub.f32 0.0, %v1264_v29  ;;  %v3456_v46 = vadd.f32 %v1075_v26, %v3313_v50  ;;  %v1159_v15 = vmax.f32 %v1150_v57, 0.0 }
 0x240   :  { %v1110_v53 = vpop.f32.mrf.mxu0  ;;  %v1516_v7 = vsub.f32 0.0, %v1507_v10 }
 0x241   :  { %v1288_v45 = vmul.f32 1.442695, %v1273_v43  ;;  %v1156_v4 = vsub.f32 0.0, %v3456_v46  ;;  %v3460_v38 = vadd.f32 %v1110_v53, %v3303_v55  ;;  %v1143_v54 = vpop.f32.mrf.mxu1 }
 0x242   :  { %v2532_v27 = vpop.eup %2531  ;;  %v3486_v18 = vadd.f32 %v1143_v54, %v3329_v16 }
 0x243   :  { %v2534_v40 = vpop.eup %2533  ;;  %v1404_v62 = vmul.f32 0.6931472, %v2532_v27  ;;  %2537 = vpow2.f32 %v1288_v45  ;;  %v1174_v22 = vand.u32 2147483647, %v1156_v4  ;;  %v1247_v13 = vsub.f32 0.0, %v3460_v38 }
 0x244   :  { %2539 = vlog2.f32 %v1294_v47  ;;  %v1476_v41 = vmul.f32 0.6931472, %v2534_v40  ;;  %v2536_v28 = vpop.eup %2535  ;;  %v1490_v1 = vsub.f32 0.0, %v3486_v18  ;;  %v1531_v47 = vmul.f32 1.442695, %v1516_v7 }
 0x245   :  { %v3469_v32 = vadd.f32 %v1404_v62, %v1344_v21  ;;  %v1183_v19 = vsub.f32 0.0, %v1174_v22  ;;  %v1265_v2 = vand.u32 2147483647, %v1247_v13  ;;  %v1214_v49 = vmul.f32 0.6931472, %v2536_v28 }
 0x246   :  { %v1077_v12 = vpop.f32.mrf.mxu3  ;;  %v1587_v36 = vsel %vm1443_vm11, %v1476_v41, %v1578_v0  ;;  %v1508_v42 = vand.u32 2147483647, %v1490_v1  ;;  %vm1445_vm13 = vcmp.ge.f32.partialorder %v3486_v18, 0.0 }
 0x247   :  { %v1434_v6 = vsub.f32 %v3431_v59, %v3469_v32  ;;  %v1198_v33 = vmul.f32 1.442695, %v1183_v19  ;;  %v1274_v60 = vsub.f32 0.0, %v1265_v2  ;;  %v3478_v34 = vadd.f32 %v1077_v12, %v3313_v50 }
 0x248   :  { %v1231_v26 = vadd.f32 %v1214_v49, %v1159_v15  ;;  %v1517_v3 = vsub.f32 0.0, %v1508_v42  ;;  %v1255_v2 = vmax.f32 %v1246_v11, 0.0  ;;  %v1165_v12 = vmax.f32 %v1156_v4, 0.0 }
 0x249   :  { %v2538_v17 = vpop.eup %2537  ;;  %v3480_v9 = vadd.f32 %v1587_v36, %v1434_v6  ;;  %2541 = vpow2.f32 %v1198_v33  ;;  %v1290_v61 = vmul.f32 1.442695, %v1274_v60  ;;  %v1157_v25 = vsub.f32 0.0, %v3478_v34 }
 0x24a   :  { %v1300_v37 = vadd.f32 1.0, %v2538_v17  ;;  %v2540_v59 = vpop.eup %2539 }
 0x24b   :  { %v1175_v48 = vand.u32 2147483647, %v1157_v25  ;;  %v1304_v29 = vmul.f32 0.6931472, %v2540_v59 }
 0x24c   :  { %2543 = vlog2.f32 %v1300_v37 }
 0x24d   :  { %2545 = vpow2.f32 %v1290_v61  ;;  %v1184_v20 = vsub.f32 0.0, %v1175_v48  ;;  %v1321_v53 = vadd.f32 %v1304_v29, %v1249_v24 }
 0x24f   :  { %v2542_v23 = vpop.eup %2541  ;;  %v1200_v31 = vmul.f32 1.442695, %v1184_v20  ;;  %v3497_v27 = vsub.f32 %v1231_v26, %v1321_v53 }
 0x250   :  { %v1210_v43 = vadd.f32 1.0, %v2542_v23 }
 0x251   :  { %v1348_v19 = vand.u32 2147483647, %v3497_v27 }
 0x252   :  { %2547 = vlog2.f32 %v1210_v43  ;;  %v2544_v45 = vpop.eup %2543  ;;  %v1453_v43 = vmax.f32 %v3463_v35, 0.0 }
 0x253   :  { %2549 = vpow2.f32 %v1200_v31  ;;  %v2546_v57 = vpop.eup %2545  ;;  %v1316_v62 = vmul.f32 0.6931472, %v2544_v45  ;;  %v1357_v10 = vsub.f32 0.0, %v1348_v19 }
 0x254   :  { %v1301_v40 = vadd.f32 1.0, %v2546_v57  ;;  %2551 = vpow2.f32 %v1531_v47  ;;  %v1166_v47 = vmax.f32 %v1157_v25, 0.0 }
 0x255   :  { %v1327_v36 = vadd.f32 %v1316_v62, %v1255_v2  ;;  %v1366_v7 = vmul.f32 1.442695, %v1357_v10 }
 0x256   :  { %v1113_v21 = vpop.f32.mrf.mxu0  ;;  %2553 = vlog2.f32 %v1301_v40 }
 0x257   :  { %v3500_v5 = vadd.f32 %v1113_v21, %v3303_v55  ;;  %v1146_v22 = vpop.f32.mrf.mxu1  ;;  %v1533_v55 = vmul.f32 1.442695, %v1517_v3 }
 0x258   :  { %v2548_v0 = vpop.eup %2547  ;;  %v3518_v24 = vadd.f32 %v1146_v22, %v3329_v16  ;;  %v1462_v22 = vadd.f32 0.5, %v1453_v43 }
 0x259   :  { %v2550_v41 = vpop.eup %2549  ;;  %v1226_v6 = vmul.f32 0.6931472, %v2548_v0  ;;  %v1248_v33 = vsub.f32 0.0, %v3500_v5 }
 0x25a   :  { %v1211_v28 = vadd.f32 1.0, %v2550_v41  ;;  %v2552_v17 = vpop.eup %2551  ;;  %v1491_v3 = vsub.f32 0.0, %v3518_v24  ;;  %vm1446_vm15 = vcmp.ge.f32.partialorder %v3518_v24, 0.0 }
 0x25b   :  { %v1237_v60 = vadd.f32 %v1226_v6, %v1165_v12  ;;  %v1266_v54 = vand.u32 2147483647, %v1248_v33  ;;  %v1543_v59 = vadd.f32 1.0, %v2552_v17 }
 0x25c   :  { %2555 = vlog2.f32 %v1211_v28  ;;  %v1080_v37 = vpop.f32.mrf.mxu3  ;;  %v2554_v11 = vpop.eup %2553  ;;  %v1509_v6 = vand.u32 2147483647, %v1491_v3 }
 0x25d   :  { %v3510_v61 = vsub.f32 %v1237_v60, %v1327_v36  ;;  %v1275_v44 = vsub.f32 0.0, %v1266_v54  ;;  %v3513_v46 = vadd.f32 %v1080_v37, %v3313_v50  ;;  %2557 = vpow2.f32 %v1533_v55 }
 0x25e   :  { %v1115_v4 = vpop.f32.mrf.mxu0  ;;  %v1318_v23 = vmul.f32 0.6931472, %v2554_v11  ;;  %v1256_v50 = vmax.f32 %v1247_v13, 0.0  ;;  %v1518_v10 = vsub.f32 0.0, %v1509_v6 }
 0x25f   :  { %v1354_v49 = vand.u32 2147483647, %v3510_v61  ;;  %v1148_v48 = vpop.f32.mrf.mxu1  ;;  %v1292_v15 = vmul.f32 1.442695, %v1275_v44  ;;  %v1158_v29 = vsub.f32 0.0, %v3513_v46  ;;  %v1498_v4 = vmax.f32 %v1489_v63, 0.0 }
 0x260   :  { %v1328_v21 = vadd.f32 %v1318_v23, %v1256_v50  ;;  %v1535_v43 = vmul.f32 1.442695, %v1518_v10  ;;  %v2230_v46 = vld [vmem:[%s3699_s3 + $0x38] sm:$0xff] }
 0x261   :  { %v1363_v20 = vsub.f32 0.0, %v1354_v49  ;;  %2559 = vpow2.f32 %v1292_v15  ;;  %v1176_v31 = vand.u32 2147483647, %v1158_v29  ;;  %1870 = vmatpush.bf16.msrb.mxu2 %v2230_v46  ;;  %2247 = vmatpush.bf16.msra.mxu3 %v2230_v46  ;;  %v2226_v46 = vld [vmem:[%s3699_s3 + $0x18] sm:$0xff] }
 0x262   :  { %v2556_v26 = vpop.eup %2555  ;;  %2561 = vlog2.f32 %v1543_v59 }
 0x263   :  { %v1378_v53 = vmul.f32 1.442695, %v1363_v20  ;;  %v1228_v45 = vmul.f32 0.6931472, %v2556_v26  ;;  %v1185_v42 = vsub.f32 0.0, %v1176_v31  ;;  %v2558_v40 = vpop.eup %2557  ;;  %v1454_v20 = vmax.f32 %v3486_v18, 0.0 }
 0x264   :  { %v1082_v57 = vpop.f32.mrf.mxu3  ;;  %v1544_v25 = vadd.f32 1.0, %v2558_v40 }
 0x265   :  { %2563 = vpow2.f32 %v1378_v53  ;;  %v1238_v62 = vadd.f32 %v1228_v45, %v1166_v47  ;;  %v1202_v38 = vmul.f32 1.442695, %v1185_v42  ;;  %v1463_v45 = vadd.f32 0.5, %v1454_v20 }
 0x266   :  { %v1126_v13 = vpop.f32.mrf.mxu0  ;;  %2565 = vpow2.f32 %v1366_v7 }
 0x267   :  { %v3528_v0 = vsub.f32 %v1238_v62, %v1328_v21  ;;  %v3531_v19 = vadd.f32 %v1126_v13, %v3329_v16  ;;  %v2560_v34 = vpop.eup %2559  ;;  %2567 = vpow2.f32 %v1202_v38 }
 0x268   :  { %v2562_v41 = vpop.eup %2561  ;;  %v1302_v12 = vadd.f32 1.0, %v2560_v34  ;;  %2569 = vlog2.f32 %v1462_v22 }
 0x269   :  { %v1355_v2 = vand.u32 2147483647, %v3528_v0  ;;  %v1483_v28 = vsub.f32 0.0, %v3531_v19  ;;  %v1559_v55 = vmul.f32 0.6931472, %v2562_v41  ;;  %2571 = vlog2.f32 %v1544_v25 }
 0x26a   :  { %2573 = vlog2.f32 %v1302_v12  ;;  %v1447_v38 = vmax.f32 %v3531_v19, 0.0  ;;  %v1257_v25 = vmax.f32 %v1248_v33, 0.0  ;;  %v1167_v12 = vmax.f32 %v1158_v29, 0.0 }
 0x26b   :  { %v2564_v36 = vpop.eup %2563  ;;  %v1364_v60 = vsub.f32 0.0, %v1355_v2  ;;  %v1501_v44 = vand.u32 2147483647, %v1483_v28  ;;  %v1570_v26 = vadd.f32 %v1559_v55, %v1498_v4  ;;  %v1499_v55 = vmax.f32 %v1490_v1, 0.0 }
 0x26c   :  { %v1390_v54 = vadd.f32 1.0, %v2564_v36  ;;  %v2566_v17 = vpop.eup %2565  ;;  %vm1438_vm14 = vcmp.ge.f32.partialorder %v3531_v19, 0.0 }
 0x26d   :  { %v1380_v37 = vmul.f32 1.442695, %v1364_v60  ;;  %v2568_v11 = vpop.eup %2567  ;;  %v1510_v48 = vsub.f32 0.0, %v1501_v44  ;;  %v1384_v7 = vadd.f32 1.0, %v2566_v17  ;;  %v1579_v57 = vsub.f32 0.0, %v1570_v26 }
 0x26e   :  { %2575 = vlog2.f32 %v1390_v54  ;;  %v1128_v59 = vpop.f32.mrf.mxu0  ;;  %v1212_v49 = vadd.f32 1.0, %v2568_v11  ;;  %v2570_v23 = vpop.eup %2569  ;;  %v1456_v17 = vadd.f32 0.5, %v1447_v38  ;;  %v1349_v11 = vand.u32 2147483647, %v3322_v58 }
 0x26f   :  { %2577 = vpow2.f32 %v1380_v37  ;;  %v3542_v15 = vadd.f32 %v1128_v59, %v3329_v16  ;;  %v1519_v50 = vmul.f32 1.442695, %v1510_v48  ;;  %v2572_v31 = vpop.eup %2571  ;;  %v1345_v16 = vmax.f32 %v3510_v61, 0.0 }
 0x270   :  { %2579 = vlog2.f32 %v1212_v49  ;;  %v2574_v53 = vpop.eup %2573  ;;  %v1478_v22 = vmul.f32 0.6931472, %v2570_v23  ;;  %v1561_v2 = vmul.f32 0.6931472, %v2572_v31  ;;  %v1339_v23 = vmax.f32 %v3497_v27, 0.0 }
 0x271   :  { %2581 = vpow2.f32 %v1519_v50  ;;  %v1484_v63 = vsub.f32 0.0, %v3542_v15  ;;  %v1320_v62 = vmul.f32 0.6931472, %v2574_v53  ;;  %v1346_v26 = vmax.f32 %v3528_v0, 0.0 }
 0x272   :  { %2583 = vlog2.f32 %v1384_v7  ;;  %v1588_v36 = vsel %vm1444_vm12, %v1478_v22, %v1579_v57  ;;  %v2229_v7 = vld [vmem:[%s3699_s3 + $0x30] sm:$0xff]  ;;  %v1358_v31 = vsub.f32 0.0, %v1349_v11  ;;  %v1492_v38 = vmax.f32 %v1483_v28, 0.0 }
 0x273   :  { %2585 = vpow2.f32 %v1535_v43  ;;  %v1502_v41 = vand.u32 2147483647, %v1484_v63  ;;  %v1329_v33 = vadd.f32 %v1320_v62, %v1257_v25  ;;  %1871 = vmatpush.bf16.msrb.mxu2 %v2229_v7  ;;  %2248 = vmatpush.bf16.msra.mxu3 %v2229_v7  ;;  %vm1439_vm0 = vcmp.ge.f32.partialorder %v3542_v15, 0.0 }
 0x274   :  { %v2576_v47 = vpop.eup %2575  ;;  %v1368_v25 = vmul.f32 1.442695, %v1358_v31 }
 0x275   :  { %v2578_v42 = vpop.eup %2577  ;;  %v1406_v40 = vmul.f32 0.6931472, %v2576_v47  ;;  %v1511_v44 = vsub.f32 0.0, %v1502_v41 }
 0x276   :  { %v1391_v21 = vadd.f32 1.0, %v2578_v42  ;;  %v2580_v13 = vpop.eup %2579 }
 0x277   :  { %v3549_v34 = vadd.f32 %v1406_v40, %v1345_v16  ;;  %v1230_v35 = vmul.f32 0.6931472, %v2580_v13  ;;  %v2582_v6 = vpop.eup %2581  ;;  %v1521_v50 = vmul.f32 1.442695, %v1511_v44 }
 0x278   :  { %2587 = vlog2.f32 %v1391_v21  ;;  %v2584_v5 = vpop.eup %2583  ;;  %v1537_v37 = vadd.f32 1.0, %v2582_v6  ;;  %v2228_v21 = vld [vmem:[%s3699_s3 + $0x28] sm:$0xff] }
 0x279   :  { %v1435_v60 = vsub.f32 %v3510_v61, %v3549_v34  ;;  %2589 = vlog2.f32 %v1463_v45  ;;  %v1239_v54 = vadd.f32 %v1230_v35, %v1167_v12  ;;  %v2586_v29 = vpop.eup %2585  ;;  %v1571_v61 = vadd.f32 %v1561_v2, %v1499_v55  ;;  %1872 = vmatpush.bf16.msrb.mxu2 %v2228_v21  ;;  %2249 = vmatpush.bf16.msra.mxu3 %v2228_v21 }
 0x27a   :  { %2591 = vlog2.f32 %v1537_v37  ;;  %v1394_v1 = vmul.f32 0.6931472, %v2584_v5  ;;  %v1545_v49 = vadd.f32 1.0, %v2586_v29  ;;  %v1455_v12 = vmax.f32 %v3518_v24, 0.0 }
 0x27b   :  { %v3564_v10 = vadd.f32 %v1588_v36, %v1435_v60  ;;  %v3567_v4 = vsub.f32 %v1239_v54, %v1329_v33  ;;  %2593 = vlog2.f32 %v1456_v17  ;;  %v1580_v53 = vsub.f32 0.0, %v1571_v61 }
 0x27c   :  { %v1411_v42 = vadd.f32 %v1394_v1, %v1339_v23  ;;  %2595 = vlog2.f32 %v1545_v49  ;;  %v1464_v54 = vadd.f32 0.5, %v1455_v12  ;;  %v2225_v1 = vld [vmem:[%s3699_s3 + $0x10] sm:$0xff]  ;;  %v1448_v23 = vmax.f32 %v3542_v15, 0.0 }
 0x27d   :  { %v1356_v48 = vand.u32 2147483647, %v3567_v4  ;;  %2597 = vpow2.f32 %v1521_v50  ;;  %v1347_v31 = vmax.f32 %v3567_v4, 0.0 }
 0x27e   :  { %v2588_v59 = vpop.eup %2587  ;;  %v1420_v35 = vsub.f32 0.0, %v1411_v42  ;;  %v1429_v60 = vsub.f32 %v3497_v27, %v1411_v42 }
 0x27f   :  { %v2590_v20 = vpop.eup %2589  ;;  %v1408_v43 = vmul.f32 0.6931472, %v2588_v59  ;;  %v1365_v47 = vsub.f32 0.0, %v1356_v48  ;;  %v1500_v59 = vmax.f32 %v1491_v3, 0.0 }
 0x280   :  { %v2592_v57 = vpop.eup %2591  ;;  %v1480_v16 = vmul.f32 0.6931472, %v2590_v20  ;;  %v3595_v37 = vadd.f32 -0.6931472, %v1420_v35 }
 0x281   :  { %v3575_v45 = vadd.f32 %v1408_v43, %v1346_v26  ;;  %v1382_v40 = vmul.f32 1.442695, %v1365_v47  ;;  %v1547_v13 = vmul.f32 0.6931472, %v2592_v57  ;;  %v2594_v22 = vpop.eup %2593  ;;  %v2224_v26 = vld [vmem:[%s3699_s3 + $0x8] sm:$0xff]  ;;  %v1457_v57 = vadd.f32 0.5, %v1448_v23 }
 0x282   :  { %v1589_v41 = vsel %vm1445_vm13, %v1480_v16, %v1580_v53  ;;  %v1466_v6 = vmul.f32 0.6931472, %v2594_v22  ;;  %v2596_v36 = vpop.eup %2595  ;;  %v2223_v16 = vld [vmem:[%s3699_s3] sm:$0xff] }
 0x283   :  { %v1436_v62 = vsub.f32 %v3528_v0, %v3575_v45  ;;  %2599 = vpow2.f32 %v1382_v40  ;;  %v1564_v2 = vadd.f32 %v1547_v13, %v1492_v38  ;;  %v2227_v0 = vld [vmem:[%s3699_s3 + $0x20] sm:$0xff]  ;;  %v2598_v55 = vpop.eup %2597  ;;  %v1563_v19 = vmul.f32 0.6931472, %v2596_v36 }
 0x284   :  { %2601 = vpow2.f32 %v1368_v25  ;;  %1873 = vmatpush.bf16.msrb.mxu2 %v2227_v0  ;;  %2250 = vmatpush.bf16.msra.mxu3 %v2227_v0  ;;  %v1538_v44 = vadd.f32 1.0, %v2598_v55  ;;  %v1340_v0 = vmax.f32 %v3322_v58, 0.0 }
 0x285   :  { %v3585_v18 = vadd.f32 %v1589_v41, %v1436_v62  ;;  %v1573_v28 = vsub.f32 0.0, %v1564_v2  ;;  %v1572_v7 = vadd.f32 %v1563_v19, %v1500_v59  ;;  %v1493_v2 = vmax.f32 %v1484_v63, 0.0 }
 0x287   :  { %v1582_v5 = vsel %vm1438_vm14, %v1466_v6, %v1573_v28  ;;  %v1581_v3 = vsub.f32 0.0, %v1572_v7 }
 0x288   :  { %v3593_v17 = vadd.f32 %v1582_v5, %v1429_v60  ;;  %1874 = vmatpush.bf16.msrb.mxu2 %v2226_v46  ;;  %2251 = vmatpush.bf16.msra.mxu3 %v2226_v46 }
 0x289   :  { %v2600_v33 = vpop.eup %2599 }
 0x28a   :  { %v1392_v29 = vadd.f32 1.0, %v2600_v33  ;;  %v1623_v27 = vsub.f32 %v3595_v37, %v3593_v17  ;;  %v2602_v11 = vpop.eup %2601  ;;  %v1622_v60 = vmax.f32 %v3595_v37, %v3593_v17 }
 0x28b   :  { %v1385_v48 = vadd.f32 1.0, %v2602_v11 }
 0x28c   :  { %2603 = vlog2.f32 %v1392_v29  ;;  %v1624_v61 = vand.u32 2147483647, %v1623_v27  ;;  %1875 = vmatpush.bf16.msrb.mxu2 %v2225_v1  ;;  %2252 = vmatpush.bf16.msra.mxu3 %v2225_v1 }
 0x28d   :  { %2605 = vlog2.f32 %v1464_v54 }
 0x28e   :  { %v1625_v49 = vsub.f32 0.0, %v1624_v61  ;;  %2607 = vlog2.f32 %v1538_v44 }
 0x290   :  { %v1626_v20 = vmul.f32 1.442695, %v1625_v49  ;;  %1876 = vmatpush.bf16.msrb.mxu2 %v2224_v26  ;;  %2253 = vmatpush.bf16.msra.mxu3 %v2224_v26 }
 0x292   :  { %v2604_v43 = vpop.eup %2603  ;;  %2609 = vpow2.f32 %v1626_v20 }
 0x293   :  { %v2606_v50 = vpop.eup %2605  ;;  %v1410_v53 = vmul.f32 0.6931472, %v2604_v43  ;;  %2611 = vlog2.f32 %v1385_v48 }
 0x294   :  { %v2608_v47 = vpop.eup %2607  ;;  %v1482_v40 = vmul.f32 0.6931472, %v2606_v50  ;;  %1877 = vmatpush.bf16.msrb.mxu2 %v2223_v16  ;;  %2254 = vmatpush.bf16.msra.mxu3 %v2223_v16  ;;  %2613 = vlog2.f32 %v1457_v57  ;;  %v1423_v16 = vsub.f32 0.0, %v3394_v39 }
 0x295   :  { %v3612_v42 = vadd.f32 %v1410_v53, %v1347_v31  ;;  %v1549_v38 = vmul.f32 0.6931472, %v2608_v47 }
 0x296   :  { %v1590_v62 = vsel %vm1446_vm15, %v1482_v40, %v1581_v3 }
 0x297   :  { %v1437_v21 = vsub.f32 %v3567_v4, %v3612_v42  ;;  %v1565_v12 = vadd.f32 %v1549_v38, %v1493_v2 }
 0x298   :  { %v2610_v13 = vpop.eup %2609 }
 0x299   :  { %v3620_v22 = vadd.f32 %v1590_v62, %v1437_v21  ;;  %v2612_v25 = vpop.eup %2611  ;;  %v1628_v41 = vadd.f32 1.0, %v2610_v13  ;;  %v1574_v4 = vsub.f32 0.0, %v1565_v12 }
 0x29a   :  { %v1396_v35 = vmul.f32 0.6931472, %v2612_v25  ;;  %v2614_v24 = vpop.eup %2613 }
 0x29b   :  { %2615 = vlog2.f32 %v1628_v41  ;;  %v1468_v36 = vmul.f32 0.6931472, %v2614_v24 }
 0x29c   :  { %v1412_v6 = vadd.f32 %v1396_v35, %v1340_v0 }
 0x29d   :  { %v1583_v5 = vsel %vm1439_vm0, %v1468_v36, %v1574_v4  ;;  %v1424_v4 = vsub.f32 0.0, %v3443_v14 }
 0x29e   :  { %v1421_v54 = vsub.f32 0.0, %v1412_v6  ;;  %v1430_v63 = vsub.f32 %v3322_v58, %v1412_v6  ;;  %v1422_v58 = vsub.f32 0.0, %v3374_v52 }
 0x2a0   :  { %v1592_v46 = vadd.f32 %v1583_v5, %v1430_v63 }
 0x2a1   :  { %v2616_v28 = vpop.eup %2615 }
 0x2a2   :  { %v1630_v55 = vmul.f32 0.6931472, %v2616_v28 }
 0x2a4   :  { %v1631_v33 = vadd.f32 %v1630_v55, %v1622_v60 }
 0x2a6   :  { %v1634_v29 = vadd.f32 %v1631_v33, %v1421_v54  ;;  %v1759_v27 = vmul.f32 1.442695, %v1631_v33 }
 0x2a8   :  { %v1637_v44 = vsub.f32 %v1634_v29, %v1592_v46  ;;  %2617 = vpow2.f32 %v1759_v27  ;;  %v1636_v49 = vmax.f32 %v1634_v29, %v1592_v46  ;;  %v1425_v27 = vsub.f32 0.0, %v3469_v32  ;;  %v3645_v32 = vld [vmem:[%s3700_s4] ss:$0 sm:$0xff] }
 0x2aa   :  { %v1638_v19 = vand.u32 2147483647, %v1637_v44 }
 0x2ac   :  { %v1639_v11 = vsub.f32 0.0, %v1638_v19 }
 0x2ae   :  { %v2618_v61 = vpop.eup %2617  ;;  %v1640_v1 = vmul.f32 1.442695, %v1639_v11 }
 0x2af   :  { %v1813_v59 = vpack.c.bf16 %v2618_v61, %v3077_v56 }
 0x2b0   :  { %2619 = vpow2.f32 %v1640_v1 }
 0x2b1   :  { %1878 = vmatmul.bf16.vlgmr.msrb.gmra.mxu2 %v1813_v59 }
 0x2b6   :  { %v2620_v17 = vpop.eup %2619 }
 0x2b7   :  { %v1642_v15 = vadd.f32 1.0, %v2620_v17 }
 0x2b9   :  { %2621 = vlog2.f32 %v1642_v15 }
 0x2bf   :  { %v2622_v37 = vpop.eup %2621 }
 0x2c0   :  { %v1644_v48 = vmul.f32 0.6931472, %v2622_v37 }
 0x2c2   :  { %v1645_v7 = vadd.f32 %v1644_v48, %v1636_v49 }
 0x2c4   :  { %v1648_v20 = vadd.f32 %v1645_v7, %v1422_v58  ;;  %v1761_v57 = vmul.f32 1.442695, %v1645_v7 }
 0x2c6   :  { %v1650_v23 = vmax.f32 %v1648_v20, %v3389_v8  ;;  %v1651_v26 = vsub.f32 %v1648_v20, %v3389_v8 }
 0x2c8   :  { %v1652_v43 = vand.u32 2147483647, %v1651_v26 }
 0x2ca   :  { %v1653_v50 = vsub.f32 0.0, %v1652_v43 }
 0x2cc   :  { %v1654_v31 = vmul.f32 1.442695, %v1653_v50 }
 0x2ce   :  { %2623 = vpow2.f32 %v1654_v31 }
 0x2d4   :  { %v2624_v56 = vpop.eup %2623 }
 0x2d5   :  { %v1656_v53 = vadd.f32 1.0, %v2624_v56 }
 0x2d7   :  { %2625 = vlog2.f32 %v1656_v53 }
 0x2d8   :  { %2627 = vpow2.f32 %v1761_v57 }
 0x2dd   :  { %v2626_v3 = vpop.eup %2625 }
 0x2de   :  { %v1658_v47 = vmul.f32 0.6931472, %v2626_v3  ;;  %v2628_v25 = vpop.eup %2627 }
 0x2e0   :  { %v1659_v40 = vadd.f32 %v1658_v47, %v1650_v23  ;;  %v1426_v23 = vsub.f32 0.0, %v3549_v34 }
 0x2e2   :  { %v1662_v52 = vadd.f32 %v1659_v40, %v1423_v16  ;;  %v1763_v21 = vmul.f32 1.442695, %v1659_v40 }
 0x2e4   :  { %v1665_v62 = vsub.f32 %v1662_v52, %v3404_v51  ;;  %2629 = vpow2.f32 %v1763_v21  ;;  %v1664_v8 = vmax.f32 %v1662_v52, %v3404_v51 }
 0x2e6   :  { %v1666_v38 = vand.u32 2147483647, %v1665_v62  ;;  %v1427_v62 = vsub.f32 0.0, %v3575_v45 }
 0x2e8   :  { %v1667_v13 = vsub.f32 0.0, %v1666_v38 }
 0x2ea   :  { %v2630_v41 = vpop.eup %2629  ;;  %v1668_v2 = vmul.f32 1.442695, %v1667_v13 }
 0x2eb   :  { %v1814_v12 = vpack.c.bf16 %v2630_v41, %v2628_v25 }
 0x2ec   :  { %2631 = vpow2.f32 %v1668_v2 }
 0x2ed   :  { %1883 = vmatmul.bf16.gmra.mxu2 %v1814_v12 }
 0x2f2   :  { %v2632_v35 = vpop.eup %2631 }
 0x2f3   :  { %v1670_v24 = vadd.f32 1.0, %v2632_v35 }
 0x2f5   :  { %2633 = vlog2.f32 %v1670_v24 }
 0x2fb   :  { %v2634_v39 = vpop.eup %2633 }
 0x2fc   :  { %v1672_v0 = vmul.f32 0.6931472, %v2634_v39 }
 0x2fe   :  { %v1673_v6 = vadd.f32 %v1672_v0, %v1664_v8 }
 0x300   :  { %v1676_v28 = vadd.f32 %v1673_v6, %v1424_v4  ;;  %v1765_v29 = vmul.f32 1.442695, %v1673_v6 }
 0x302   :  { %v1678_v36 = vmax.f32 %v1676_v28, %v3453_v30  ;;  %v1679_v51 = vsub.f32 %v1676_v28, %v3453_v30 }
 0x304   :  { %v1680_v60 = vand.u32 2147483647, %v1679_v51 }
 0x306   :  { %v1681_v55 = vsub.f32 0.0, %v1680_v60 }
 0x308   :  { %v1682_v5 = vmul.f32 1.442695, %v1681_v55 }
 0x30a   :  { %2635 = vpow2.f32 %v1682_v5 }
 0x310   :  { %v2636_v33 = vpop.eup %2635 }
 0x311   :  { %v1684_v54 = vadd.f32 1.0, %v2636_v33 }
 0x313   :  { %2637 = vlog2.f32 %v1684_v54 }
 0x314   :  { %2639 = vpow2.f32 %v1765_v29 }
 0x319   :  { %v2638_v63 = vpop.eup %2637 }
 0x31a   :  { %v1686_v46 = vmul.f32 0.6931472, %v2638_v63  ;;  %v2640_v59 = vpop.eup %2639 }
 0x31c   :  { %v1687_v44 = vadd.f32 %v1686_v46, %v1678_v36  ;;  %v1428_v36 = vsub.f32 0.0, %v3612_v42 }
 0x31e   :  { %v1690_v14 = vadd.f32 %v1687_v44, %v1425_v27  ;;  %v1767_v19 = vmul.f32 1.442695, %v1687_v44 }
 0x320   :  { %v1693_v11 = vsub.f32 %v1690_v14, %v3480_v9  ;;  %2641 = vpow2.f32 %v1767_v19  ;;  %v1692_v30 = vmax.f32 %v1690_v14, %v3480_v9 }
 0x322   :  { %v1694_v61 = vand.u32 2147483647, %v1693_v11 }
 0x324   :  { %v1695_v1 = vsub.f32 0.0, %v1694_v61 }
 0x326   :  { %v2642_v17 = vpop.eup %2641  ;;  %v1696_v15 = vmul.f32 1.442695, %v1695_v1 }
 0x327   :  { %v1815_v37 = vpack.c.bf16 %v2642_v17, %v2640_v59 }
 0x328   :  { %2643 = vpow2.f32 %v1696_v15 }
 0x329   :  { %1888 = vmatmul.bf16.gmra.mxu2 %v1815_v37 }
 0x32e   :  { %v2644_v49 = vpop.eup %2643 }
 0x32f   :  { %v1698_v48 = vadd.f32 1.0, %v2644_v49 }
 0x331   :  { %2645 = vlog2.f32 %v1698_v48 }
 0x334   :  { %v1879_v58 = vpop.f32.mrf.mxu2 }
 0x335   :  { %v1880_v7 = vadd.f32 %v3645_v32, %v1879_v58 }
 0x337   :  { %v2646_v9 = vpop.eup %2645  ;;  %1904 = vst [vmem:[%s3701_s5] sm:$0xff] %v1880_v7 }
 0x338   :  { %v1700_v20 = vmul.f32 0.6931472, %v2646_v9 }
 0x33a   :  { %v1701_v26 = vadd.f32 %v1700_v20, %v1692_v30 }
 0x33c   :  { %v1881_v43 = vpop.f32.mrf.mxu2  ;;  %v1704_v50 = vadd.f32 %v1701_v26, %v1426_v23  ;;  %v1769_v21 = vmul.f32 1.442695, %v1701_v26 }
 0x33d   :  { %v1882_v31 = vadd.f32 %v3645_v32, %v1881_v43 }
 0x33e   :  { %v1706_v56 = vmax.f32 %v1704_v50, %v3564_v10  ;;  %v1707_v53 = vsub.f32 %v1704_v50, %v3564_v10 }
 0x33f   :  { %1905 = vst [vmem:[%s3701_s5 + $0x8] sm:$0xff] %v1882_v31 }
 0x340   :  { %v1708_v3 = vand.u32 2147483647, %v1707_v53 }
 0x342   :  { %v1709_v47 = vsub.f32 0.0, %v1708_v3 }
 0x344   :  { %v1710_v57 = vmul.f32 1.442695, %v1709_v47 }
 0x346   :  { %2647 = vpow2.f32 %v1710_v57 }
 0x34c   :  { %v2648_v16 = vpop.eup %2647 }
 0x34d   :  { %v1712_v40 = vadd.f32 1.0, %v2648_v16 }
 0x34f   :  { %2649 = vlog2.f32 %v1712_v40 }
 0x350   :  { %2651 = vpow2.f32 %v1769_v21 }
 0x355   :  { %v2650_v34 = vpop.eup %2649 }
 0x356   :  { %v1714_v52 = vmul.f32 0.6931472, %v2650_v34  ;;  %v2652_v12 = vpop.eup %2651 }
 0x358   :  { %v1715_v8 = vadd.f32 %v1714_v52, %v1706_v56 }
 0x35a   :  { %v1718_v38 = vadd.f32 %v1715_v8, %v1427_v62  ;;  %v1771_v13 = vmul.f32 1.442695, %v1715_v8 }
 0x35c   :  { %v1720_v10 = vmax.f32 %v1718_v38, %v3585_v18  ;;  %v1721_v25 = vsub.f32 %v1718_v38, %v3585_v18  ;;  %2653 = vpow2.f32 %v1771_v13 }
 0x35e   :  { %v1722_v41 = vand.u32 2147483647, %v1721_v25 }
 0x360   :  { %v1723_v2 = vsub.f32 0.0, %v1722_v41 }
 0x362   :  { %v2654_v35 = vpop.eup %2653  ;;  %v1724_v24 = vmul.f32 1.442695, %v1723_v2 }
 0x363   :  { %v1816_v39 = vpack.c.bf16 %v2654_v35, %v2652_v12 }
 0x364   :  { %2655 = vpow2.f32 %v1724_v24 }
 0x365   :  { %1893 = vmatmul.bf16.gmra.mxu2 %v1816_v39 }
 0x36a   :  { %v2656_v0 = vpop.eup %2655 }
 0x36b   :  { %v1726_v4 = vadd.f32 1.0, %v2656_v0 }
 0x36d   :  { %2657 = vlog2.f32 %v1726_v4 }
 0x370   :  { %v1884_v45 = vpop.f32.mrf.mxu2 }
 0x371   :  { %v1885_v6 = vadd.f32 %v3645_v32, %v1884_v45 }
 0x373   :  { %v2658_v28 = vpop.eup %2657  ;;  %1906 = vst [vmem:[%s3701_s5 + $0x10] sm:$0xff] %v1885_v6 }
 0x374   :  { %v1728_v18 = vmul.f32 0.6931472, %v2658_v28 }
 0x376   :  { %v1729_v51 = vadd.f32 %v1728_v18, %v1720_v10 }
 0x378   :  { %v1886_v60 = vpop.f32.mrf.mxu2  ;;  %v1733_v55 = vadd.f32 %v1729_v51, %v1428_v36  ;;  %v1773_v19 = vmul.f32 1.442695, %v1729_v51 }
 0x379   :  { %v1887_v5 = vadd.f32 %v3645_v32, %v1886_v60 }
 0x37a   :  { %v1736_v33 = vmax.f32 %v1733_v55, %v3620_v22  ;;  %v1737_v54 = vsub.f32 %v1733_v55, %v3620_v22 }
 0x37b   :  { %1907 = vst [vmem:[%s3701_s5 + $0x18] sm:$0xff] %v1887_v5 }
 0x37c   :  { %v1738_v63 = vand.u32 2147483647, %v1737_v54 }
 0x37e   :  { %v1739_v46 = vsub.f32 0.0, %v1738_v63 }
 0x380   :  { %v1740_v29 = vmul.f32 1.442695, %v1739_v46 }
 0x382   :  { %2659 = vpow2.f32 %v1740_v29 }
 0x388   :  { %v2660_v27 = vpop.eup %2659 }
 0x389   :  { %v1742_v44 = vadd.f32 1.0, %v2660_v27 }
 0x38b   :  { %2661 = vlog2.f32 %v1742_v44 }
 0x38c   :  { %2663 = vpow2.f32 %v1773_v19 }
 0x391   :  { %v2662_v42 = vpop.eup %2661 }
 0x392   :  { %v1744_v14 = vmul.f32 0.6931472, %v2662_v42  ;;  %v2664_v61 = vpop.eup %2663 }
 0x394   :  { %v1745_v11 = vadd.f32 %v1744_v14, %v1736_v33 }
 0x396   :  { %v1775_v30 = vmul.f32 1.442695, %v1745_v11 }
 0x398   :  { %2665 = vpow2.f32 %v1775_v30 }
 0x39e   :  { %v2666_v22 = vpop.eup %2665 }
 0x39f   :  { %v1817_v1 = vpack.c.bf16 %v2666_v22, %v2664_v61 }
 0x3a1   :  { %1898 = vmatmul.bf16.vlgmr.msra.gmra.mxu3 %v1817_v1 }
 0x3ac   :  { %v1889_v59 = vpop.f32.mrf.mxu2 }
 0x3ad   :  { %v1890_v17 = vadd.f32 %v3645_v32, %v1889_v59 }
 0x3af   :  { %1908 = vst [vmem:[%s3701_s5 + $0x20] sm:$0xff] %v1890_v17 }
 0x3b4   :  { %v1891_v15 = vpop.f32.mrf.mxu2 }
 0x3b5   :  { %v1892_v37 = vadd.f32 %v3645_v32, %v1891_v15 }
 0x3b7   :  { %1909 = vst [vmem:[%s3701_s5 + $0x28] sm:$0xff] %v1892_v37 }
 0x3e8   :  { %v1894_v49 = vpop.f32.mrf.mxu2 }
 0x3e9   :  { %v1895_v48 = vadd.f32 %v3645_v32, %v1894_v49 }
 0x3eb   :  { %1910 = vst [vmem:[%s3701_s5 + $0x30] sm:$0xff] %v1895_v48 }
 0x3f0   :  { %v1896_v58 = vpop.f32.mrf.mxu2 }
 0x3f1   :  { %v1897_v7 = vadd.f32 %v3645_v32, %v1896_v58 }
 0x3f3   :  { %1911 = vst [vmem:[%s3701_s5 + $0x38] sm:$0xff] %v1897_v7 }
 0x424   :  { %v1899_v9 = vpop.f32.mrf.mxu3 }
 0x425   :  { %v1900_v20 = vadd.f32 %v3645_v32, %v1899_v9 }
 0x427   :  { %1912 = vst [vmem:[%s3701_s5 + $0x40] sm:$0xff] %v1900_v20 }
 0x42c   :  { %v1901_v23 = vpop.f32.mrf.mxu3 }
 0x42d   :  { %v1902_v26 = vadd.f32 %v3645_v32, %v1901_v23 }
 0x42f   :  { %1913 = vst [vmem:[%s3701_s5 + $0x48] sm:$0xff] %v1902_v26 }

</bundles_post_ra>
